<compile_context>
chip_gen: v5e
topology: v5e:2x2
jax: 0.10.0
libtpu: 0.0.40
codegen_flags: <defaults>
</compile_context>

<pallas_src>
import math

import jax
import jax.numpy as jnp
import numpy as np
from jax import lax
from jax.experimental import pallas as pl
from jax.experimental.pallas import tpu as pltpu

# ---- model hyper-parameters (small, consistent with the module) -------------
B = 2
POINT_FEAT_DIM = 32        # C  (== out_dim, required by the residual add)
TEXT_FEAT_DIM = 16         # D
OUT_DIM = 32               # O
NUM_HEADS = 4
HEAD_DIM = OUT_DIM // NUM_HEADS
N = 128                    # number of points
BN = B * N                 # batch folded onto the lane axis
AUG = POINT_FEAT_DIM + 1 + B   # x rows: C features + ones(bias) + B batch one-hots

_INV_SQRT2 = 1.0 / math.sqrt(2.0)

# dot_general dimension numbers
_CONTRACT_DIM0 = (((0,), (0,)), ((), ()))   # out[i,j] = sum_d lhs[d,i] * rhs[d,j]
_CONTRACT_DIM1 = (((1,), (1,)), ((), ()))   # out[i,j] = sum_k lhs[i,k] * rhs[j,k]


def _gelu_exact(x):
    # PyTorch's default nn.GELU (erf based).
    return 0.5 * x * (1.0 + lax.erf(x * _INV_SQRT2))


def tggat_kernel(x_ref, wqkv_ref, w1_ref, w2_ref, o_ref, acc_ref):
    """Refs:
       x_ref    [C+1+B, B*N] f32   (features | ones row | per-batch one-hot rows)
       wqkv_ref [3O, C+1+B]  bf16  (Wq/Wk/Wv | bias col | per-batch text-K-corr cols)
       w1_ref   [O, O+1]     bf16  (W1 | b1)
       w2_ref   [O, O+1]     bf16  (gamma*W2 | gamma*b2)
       o_ref    [B, C, N]    f32   (output, native PyTorch layout)
       acc_ref  [O+1, B*N]   f32   VMEM scratch (head outputs + ones row; reused for h1)
    """
    x = x_ref[...]                                  # [AUG, BN] f32 (kept for residual)
    x_bf = x.astype(jnp.bfloat16)

    # Fused Q/K/V 1x1 convs; biases and the per-batch text correction of K are
    # all carried by the augmented rows/cols => one bf16 MXU matmul, f32 accum.
    qkv = jnp.dot(wqkv_ref[...], x_bf, preferred_element_type=jnp.float32)   # [3O, BN]

    # ones row used to fold the MLP biases into their matmuls.
    acc_ref[OUT_DIM:OUT_DIM + 1, :] = jnp.ones((1, BN), jnp.float32)

    # Multi-head attention (no 1/sqrt(d) scale, matching the module).  Lane
    # slices are 128-aligned (per batch), sublane slices are 8-aligned (per
    # head == one sublane tile).  Scores contract directly over the sublane
    # (head_dim) axis -> no explicit q transpose.
    for b in range(B):
        c0 = b * N
        for h in range(NUM_HEADS):
            r0 = h * HEAD_DIM
            qh = qkv[r0:r0 + HEAD_DIM, c0:c0 + N].astype(jnp.bfloat16)          # [hd, N]
            kh = qkv[OUT_DIM + r0:OUT_DIM + r0 + HEAD_DIM,
                     c0:c0 + N].astype(jnp.bfloat16)
            vh = qkv[2 * OUT_DIM + r0:2 * OUT_DIM + r0 + HEAD_DIM,
                     c0:c0 + N].astype(jnp.bfloat16)
            # s[n, m] = sum_d q[d, n] * k[d, m]
            s = lax.dot_general(qh, kh, _CONTRACT_DIM0,
                                preferred_element_type=jnp.float32)             # [N, N]
            s = s - jnp.max(s, axis=-1, keepdims=True)
            p = jnp.exp(s)
            inv = pl.reciprocal(jnp.sum(p, axis=-1, keepdims=True), approx=True)
            p = (p * inv).astype(jnp.bfloat16)                                  # softmax over m
            # out[d, n] = sum_m v[d, m] * p[n, m]
            oh = lax.dot_general(vh, p, _CONTRACT_DIM1,
                                 preferred_element_type=jnp.float32)            # [hd, N]
            acc_ref[r0:r0 + HEAD_DIM, c0:c0 + N] = oh

    # Per-point channel MLP: Linear -> ReLU -> Linear.  Biases come from the
    # ones row of the scratch; gamma is pre-folded into w2.
    h1 = jnp.dot(w1_ref[...], acc_ref[...].astype(jnp.bfloat16),
                 preferred_element_type=jnp.float32)                            # [O, BN]
    acc_ref[0:OUT_DIM, :] = jnp.maximum(h1, 0.0)                                # reuse scratch
    y = jnp.dot(w2_ref[...], acc_ref[...].astype(jnp.bfloat16),
                preferred_element_type=jnp.float32)                             # [O, BN]

    # gamma-gated residual, stored straight into the [B, C, N] output layout
    # (two fully lane-dense 128-wide stores; residual uses the f32 x).
    for b in range(B):
        c0 = b * N
        o_ref[b] = y[:, c0:c0 + N] + x[0:POINT_FEAT_DIM, c0:c0 + N]


def text_guided_gat(point_feats, text_feats, params):
    """point_feats: [B, C, N] f32, text_feats: [B, D] f32 -> [B, C, N] f32."""
    Bb, C, Nn = point_feats.shape
    O = params["wq"].shape[0]
    assert (Bb, C, Nn, O) == (B, POINT_FEAT_DIM, N, OUT_DIM)

    # ---- tiny text branch in plain XLA (badly shaped for the MXU) ------------
    tp = _gelu_exact(text_feats @ params["wt"].T + params["bt"])     # [B, C]
    k_corr = tp @ params["wk"].T                                     # [B, O] = (Wk tp_b)

    # ---- augmented activation: batch on lanes + ones row + batch one-hots ----
    x_lanes = jnp.transpose(point_feats, (1, 0, 2)).reshape(C, Bb * Nn)   # [C, B*N]
    ones_row = jnp.ones((1, Bb * Nn), jnp.float32)
    batch_rows = jnp.repeat(jnp.eye(Bb, dtype=jnp.float32), Nn, axis=1)   # [B, B*N]
    x_cat = jnp.concatenate([x_lanes, ones_row, batch_rows], axis=0)      # [AUG, B*N]

    # ---- augmented weights: bias column + per-batch K-correction columns -----
    zeros_ob = jnp.zeros((O, Bb), jnp.float32)
    wq_aug = jnp.concatenate([params["wq"], params["bq"][:, None], zeros_ob], axis=1)
    wk_aug = jnp.concatenate([params["wk"], params["bk"][:, None], k_corr.T], axis=1)
    wv_aug = jnp.concatenate([params["wv"], params["bv"][:, None], zeros_ob], axis=1)
    wqkv_aug = jnp.concatenate([wq_aug, wk_aug, wv_aug], axis=0).astype(jnp.bfloat16)

    w1_aug = jnp.concatenate([params["w1"], params["b1"][:, None]],
                             axis=1).astype(jnp.bfloat16)                 # [O, O+1]
    gamma = params["gamma"][0]
    w2_aug = (gamma * jnp.concatenate([params["w2"], params["b2"][:, None]], axis=1)
              ).astype(jnp.bfloat16)                                      # [O, O+1]

    # Advisory cost estimate for XLA's scheduler around this tiny custom call.
    flops = (2 * (3 * O) * AUG * BN                               # fused QKV
             + Bb * NUM_HEADS * (2 * Nn * Nn * HEAD_DIM) * 2      # QK^T and PV
             + 2 * 2 * O * (O + 1) * BN)                          # 2-layer MLP
    transcendentals = Bb * NUM_HEADS * Nn * Nn + Bb * NUM_HEADS * Nn
    bytes_accessed = int(x_cat.size * 4 + wqkv_aug.size * 2 + w1_aug.size * 2
                         + w2_aug.size * 2 + Bb * C * Nn * 4)

    return pl.pallas_call(
        tggat_kernel,
        out_shape=jax.ShapeDtypeStruct((Bb, C, Nn), jnp.float32),
        scratch_shapes=[pltpu.VMEM((O + 1, Bb * Nn), jnp.float32)],
        cost_estimate=pl.CostEstimate(flops=flops,
                                      transcendentals=transcendentals,
                                      bytes_accessed=bytes_accessed),
    )(x_cat, wqkv_aug, w1_aug, w2_aug)


# ---- pure-JAX reference (mirrors the PyTorch code, NCW layout) ---------------
def reference_forward(point_feats, text_feats, params):
    Bb, C, Nn = point_feats.shape
    t = _gelu_exact(text_feats @ params["wt"].T + params["bt"])          # [B, C]
    fused = point_feats + t[:, :, None]

    def conv1x1(xx, w, b):                                               # xx: [B,C,N], w: [O,C]
        return jnp.einsum("oc,bcn->bon", w, xx) + b[None, :, None]

    q = conv1x1(point_feats, params["wq"], params["bq"]).reshape(Bb, NUM_HEADS, HEAD_DIM, Nn)
    k = conv1x1(fused, params["wk"], params["bk"]).reshape(Bb, NUM_HEADS, HEAD_DIM, Nn)
    v = conv1x1(point_feats, params["wv"], params["bv"]).reshape(Bb, NUM_HEADS, HEAD_DIM, Nn)

    attn = jnp.einsum("bhdn,bhdm->bhnm", q, k)
    attn = jax.nn.softmax(attn, axis=-1)
    out = jnp.einsum("bhnm,bhdm->bhdn", attn, v)
    out = out.reshape(Bb, OUT_DIM, Nn)
    out = jnp.transpose(out, (0, 2, 1))                                  # [B, N, O]
    out = jnp.maximum(out @ params["w1"].T + params["b1"], 0.0)
    out = out @ params["w2"].T + params["b2"]
    out = jnp.transpose(out, (0, 2, 1))                                  # [B, O, N]
    return params["gamma"][0] * out + point_feats


def make_params(key):
    ks = jax.random.split(key, 10)
    s = 0.1
    return {
        "wt": s * jax.random.normal(ks[0], (POINT_FEAT_DIM, TEXT_FEAT_DIM), jnp.float32),
        "bt": s * jax.random.normal(ks[1], (POINT_FEAT_DIM,), jnp.float32),
        "wq": s * jax.random.normal(ks[2], (OUT_DIM, POINT_FEAT_DIM), jnp.float32),
        "bq": s * jax.random.normal(ks[3], (OUT_DIM,), jnp.float32),
        "wk": s * jax.random.normal(ks[4], (OUT_DIM, POINT_FEAT_DIM), jnp.float32),
        "bk": s * jax.random.normal(ks[5], (OUT_DIM,), jnp.float32),
        "wv": s * jax.random.normal(ks[6], (OUT_DIM, POINT_FEAT_DIM), jnp.float32),
        "bv": s * jax.random.normal(ks[7], (OUT_DIM,), jnp.float32),
        "w1": s * jax.random.normal(ks[8], (OUT_DIM, OUT_DIM), jnp.float32),
        "b1": jnp.zeros((OUT_DIM,), jnp.float32),
        "w2": s * jax.random.normal(ks[9], (OUT_DIM, OUT_DIM), jnp.float32),
        "b2": jnp.zeros((OUT_DIM,), jnp.float32),
        # NOTE: nn.Parameter(torch.zeros(1)) -> gamma=0 makes the layer an
        # identity; we use a nonzero gamma so the full path is exercised.
        "gamma": jnp.array([0.5], jnp.float32),
    }


if __name__ == "__main__":
    key = jax.random.PRNGKey(0)
    k_pf, k_tf, k_par = jax.random.split(key, 3)

    point_feats = jax.random.normal(k_pf, (B, POINT_FEAT_DIM, N), jnp.float32)
    text_feats = jax.random.normal(k_tf, (B, TEXT_FEAT_DIM), jnp.float32)
    params = make_params(k_par)

    out = jax.block_until_ready(text_guided_gat(point_feats, text_feats, params))
    ref = jax.block_until_ready(reference_forward(point_feats, text_feats, params))

    # Tolerance reflects bf16 MXU operands (f32 accumulation) and the EUP
    # approximate reciprocal in the softmax denominator; the residual path and
    # the gamma*MLP gain (<1) keep the final error well inside 2e-3.
    np.testing.assert_allclose(np.asarray(out), np.asarray(ref), rtol=2e-3, atol=2e-3)

    print("KERNEL_OK")
</pallas_src>

<mosaic_0001>
module attributes {stable_mosaic.version = 11 : i64} {
  func.func @tggat_kernel(%arg0: memref<35x256xf32, #tpu.memory_space<vmem>>, %arg1: memref<96x35xbf16, #tpu.memory_space<vmem>>, %arg2: memref<32x33xbf16, #tpu.memory_space<vmem>>, %arg3: memref<32x33xbf16, #tpu.memory_space<vmem>>, %arg4: memref<2x32x128xf32, #tpu.memory_space<vmem>>, %arg5: memref<33x256xf32, #tpu.memory_space<vmem>>) attributes {dimension_semantics = [], scalar_prefetch = 0 : i64, scratch_operands = 1 : i64, tpu.core_type = #tpu.core_type<tc>} {
    %c0 = arith.constant 0 : index
    %c0_0 = arith.constant 0 : index
    %0 = vector.load %arg0[%c0, %c0_0] : memref<35x256xf32, #tpu.memory_space<vmem>>, vector<35x256xf32>
    %1 = arith.truncf %0 : vector<35x256xf32> to vector<35x256xbf16>
    %c0_1 = arith.constant 0 : index
    %c0_2 = arith.constant 0 : index
    %2 = vector.load %arg1[%c0_1, %c0_2] : memref<96x35xbf16, #tpu.memory_space<vmem>>, vector<96x35xbf16>
    %cst = arith.constant dense<0.000000e+00> : vector<96x256xf32>
    %3 = tpu.matmul %2, %1, %cst {dimension_numbers = #tpu.dot_dimension_numbers<[1], [0], [0], [1], [0, 0, 1, 1], [], []>} : vector<96x35xbf16>, vector<35x256xbf16>, vector<96x256xf32> -> vector<96x256xf32>
    %cst_3 = arith.constant 1.000000e+00 : f32
    %4 = vector.broadcast %cst_3 : f32 to vector<1x256xf32>
    %c32 = arith.constant 32 : index
    %c0_4 = arith.constant 0 : index
    %5 = vector.load %arg5[%c32, %c0_4] : memref<33x256xf32, #tpu.memory_space<vmem>>, vector<1x256xf32>
    tpu.vector_store %arg5[%c32, %c0_4], %4 {strides = array<i32>} : memref<33x256xf32, #tpu.memory_space<vmem>>, vector<1x256xf32>,
    %6 = vector.extract_strided_slice %3 {offsets = [0, 0], sizes = [8, 128], strides = [1, 1]} : vector<96x256xf32> to vector<8x128xf32>
    %7 = arith.truncf %6 : vector<8x128xf32> to vector<8x128xbf16>
    %8 = vector.extract_strided_slice %3 {offsets = [32, 0], sizes = [8, 128], strides = [1, 1]} : vector<96x256xf32> to vector<8x128xf32>
    %9 = arith.truncf %8 : vector<8x128xf32> to vector<8x128xbf16>
    %10 = vector.extract_strided_slice %3 {offsets = [64, 0], sizes = [8, 128], strides = [1, 1]} : vector<96x256xf32> to vector<8x128xf32>
    %11 = arith.truncf %10 : vector<8x128xf32> to vector<8x128xbf16>
    %cst_5 = arith.constant dense<0.000000e+00> : vector<128x128xf32>
    %12 = tpu.matmul %7, %9, %cst_5 {dimension_numbers = #tpu.dot_dimension_numbers<[0], [0], [1], [1], [0, 1, 1, 1], [], []>} : vector<8x128xbf16>, vector<8x128xbf16>, vector<128x128xf32> -> vector<128x128xf32>
    %cst_6 = arith.constant dense<0xFF800000> : vector<128xf32>
    %13 = vector.multi_reduction <maximumf>, %12, %cst_6 [1] : vector<128x128xf32> to vector<128xf32>
    %14 = vector.shape_cast %13 : vector<128xf32> to vector<128x1xf32>
    %15 = vector.broadcast %14 : vector<128x1xf32> to vector<128x128xf32>
    %16 = arith.subf %12, %15 : vector<128x128xf32>
    %17 = math.exp %16 : vector<128x128xf32>
    %cst_7 = arith.constant dense<0.000000e+00> : vector<128xf32>
    %18 = vector.multi_reduction <add>, %17, %cst_7 [1] : vector<128x128xf32> to vector<128xf32>
    %19 = vector.shape_cast %18 : vector<128xf32> to vector<128x1xf32>
    %20 = tpu.reciprocal %19 {approx = true} : vector<128x1xf32> -> vector<128x1xf32>
    %21 = vector.broadcast %20 : vector<128x1xf32> to vector<128x128xf32>
    %22 = arith.mulf %17, %21 : vector<128x128xf32>
    %23 = arith.truncf %22 : vector<128x128xf32> to vector<128x128xbf16>
    %cst_8 = arith.constant dense<0.000000e+00> : vector<8x128xf32>
    %24 = tpu.matmul %11, %23, %cst_8 {dimension_numbers = #tpu.dot_dimension_numbers<[1], [1], [0], [0], [0, 0, 1, 0], [], []>} : vector<8x128xbf16>, vector<128x128xbf16>, vector<8x128xf32> -> vector<8x128xf32>
    %c0_9 = arith.constant 0 : index
    %c0_10 = arith.constant 0 : index
    %25 = vector.load %arg5[%c0_9, %c0_10] : memref<33x256xf32, #tpu.memory_space<vmem>>, vector<8x128xf32>
    tpu.vector_store %arg5[%c0_9, %c0_10], %24 {strides = array<i32>} : memref<33x256xf32, #tpu.memory_space<vmem>>, vector<8x128xf32>,
    %26 = vector.extract_strided_slice %3 {offsets = [8, 0], sizes = [8, 128], strides = [1, 1]} : vector<96x256xf32> to vector<8x128xf32>
    %27 = arith.truncf %26 : vector<8x128xf32> to vector<8x128xbf16>
    %28 = vector.extract_strided_slice %3 {offsets = [40, 0], sizes = [8, 128], strides = [1, 1]} : vector<96x256xf32> to vector<8x128xf32>
    %29 = arith.truncf %28 : vector<8x128xf32> to vector<8x128xbf16>
    %30 = vector.extract_strided_slice %3 {offsets = [72, 0], sizes = [8, 128], strides = [1, 1]} : vector<96x256xf32> to vector<8x128xf32>
    %31 = arith.truncf %30 : vector<8x128xf32> to vector<8x128xbf16>
    %cst_11 = arith.constant dense<0.000000e+00> : vector<128x128xf32>
    %32 = tpu.matmul %27, %29, %cst_11 {dimension_numbers = #tpu.dot_dimension_numbers<[0], [0], [1], [1], [0, 1, 1, 1], [], []>} : vector<8x128xbf16>, vector<8x128xbf16>, vector<128x128xf32> -> vector<128x128xf32>
    %cst_12 = arith.constant dense<0xFF800000> : vector<128xf32>
    %33 = vector.multi_reduction <maximumf>, %32, %cst_12 [1] : vector<128x128xf32> to vector<128xf32>
    %34 = vector.shape_cast %33 : vector<128xf32> to vector<128x1xf32>
    %35 = vector.broadcast %34 : vector<128x1xf32> to vector<128x128xf32>
    %36 = arith.subf %32, %35 : vector<128x128xf32>
    %37 = math.exp %36 : vector<128x128xf32>
    %cst_13 = arith.constant dense<0.000000e+00> : vector<128xf32>
    %38 = vector.multi_reduction <add>, %37, %cst_13 [1] : vector<128x128xf32> to vector<128xf32>
    %39 = vector.shape_cast %38 : vector<128xf32> to vector<128x1xf32>
    %40 = tpu.reciprocal %39 {approx = true} : vector<128x1xf32> -> vector<128x1xf32>
    %41 = vector.broadcast %40 : vector<128x1xf32> to vector<128x128xf32>
    %42 = arith.mulf %37, %41 : vector<128x128xf32>
    %43 = arith.truncf %42 : vector<128x128xf32> to vector<128x128xbf16>
    %cst_14 = arith.constant dense<0.000000e+00> : vector<8x128xf32>
    %44 = tpu.matmul %31, %43, %cst_14 {dimension_numbers = #tpu.dot_dimension_numbers<[1], [1], [0], [0], [0, 0, 1, 0], [], []>} : vector<8x128xbf16>, vector<128x128xbf16>, vector<8x128xf32> -> vector<8x128xf32>
    %c8 = arith.constant 8 : index
    %c0_15 = arith.constant 0 : index
    %45 = vector.load %arg5[%c8, %c0_15] : memref<33x256xf32, #tpu.memory_space<vmem>>, vector<8x128xf32>
    tpu.vector_store %arg5[%c8, %c0_15], %44 {strides = array<i32>} : memref<33x256xf32, #tpu.memory_space<vmem>>, vector<8x128xf32>,
    %46 = vector.extract_strided_slice %3 {offsets = [16, 0], sizes = [8, 128], strides = [1, 1]} : vector<96x256xf32> to vector<8x128xf32>
    %47 = arith.truncf %46 : vector<8x128xf32> to vector<8x128xbf16>
    %48 = vector.extract_strided_slice %3 {offsets = [48, 0], sizes = [8, 128], strides = [1, 1]} : vector<96x256xf32> to vector<8x128xf32>
    %49 = arith.truncf %48 : vector<8x128xf32> to vector<8x128xbf16>
    %50 = vector.extract_strided_slice %3 {offsets = [80, 0], sizes = [8, 128], strides = [1, 1]} : vector<96x256xf32> to vector<8x128xf32>
    %51 = arith.truncf %50 : vector<8x128xf32> to vector<8x128xbf16>
    %cst_16 = arith.constant dense<0.000000e+00> : vector<128x128xf32>
    %52 = tpu.matmul %47, %49, %cst_16 {dimension_numbers = #tpu.dot_dimension_numbers<[0], [0], [1], [1], [0, 1, 1, 1], [], []>} : vector<8x128xbf16>, vector<8x128xbf16>, vector<128x128xf32> -> vector<128x128xf32>
    %cst_17 = arith.constant dense<0xFF800000> : vector<128xf32>
    %53 = vector.multi_reduction <maximumf>, %52, %cst_17 [1] : vector<128x128xf32> to vector<128xf32>
    %54 = vector.shape_cast %53 : vector<128xf32> to vector<128x1xf32>
    %55 = vector.broadcast %54 : vector<128x1xf32> to vector<128x128xf32>
    %56 = arith.subf %52, %55 : vector<128x128xf32>
    %57 = math.exp %56 : vector<128x128xf32>
    %cst_18 = arith.constant dense<0.000000e+00> : vector<128xf32>
    %58 = vector.multi_reduction <add>, %57, %cst_18 [1] : vector<128x128xf32> to vector<128xf32>
    %59 = vector.shape_cast %58 : vector<128xf32> to vector<128x1xf32>
    %60 = tpu.reciprocal %59 {approx = true} : vector<128x1xf32> -> vector<128x1xf32>
    %61 = vector.broadcast %60 : vector<128x1xf32> to vector<128x128xf32>
    %62 = arith.mulf %57, %61 : vector<128x128xf32>
    %63 = arith.truncf %62 : vector<128x128xf32> to vector<128x128xbf16>
    %cst_19 = arith.constant dense<0.000000e+00> : vector<8x128xf32>
    %64 = tpu.matmul %51, %63, %cst_19 {dimension_numbers = #tpu.dot_dimension_numbers<[1], [1], [0], [0], [0, 0, 1, 0], [], []>} : vector<8x128xbf16>, vector<128x128xbf16>, vector<8x128xf32> -> vector<8x128xf32>
    %c16 = arith.constant 16 : index
    %c0_20 = arith.constant 0 : index
    %65 = vector.load %arg5[%c16, %c0_20] : memref<33x256xf32, #tpu.memory_space<vmem>>, vector<8x128xf32>
    tpu.vector_store %arg5[%c16, %c0_20], %64 {strides = array<i32>} : memref<33x256xf32, #tpu.memory_space<vmem>>, vector<8x128xf32>,
    %66 = vector.extract_strided_slice %3 {offsets = [24, 0], sizes = [8, 128], strides = [1, 1]} : vector<96x256xf32> to vector<8x128xf32>
    %67 = arith.truncf %66 : vector<8x128xf32> to vector<8x128xbf16>
    %68 = vector.extract_strided_slice %3 {offsets = [56, 0], sizes = [8, 128], strides = [1, 1]} : vector<96x256xf32> to vector<8x128xf32>
    %69 = arith.truncf %68 : vector<8x128xf32> to vector<8x128xbf16>
    %70 = vector.extract_strided_slice %3 {offsets = [88, 0], sizes = [8, 128], strides = [1, 1]} : vector<96x256xf32> to vector<8x128xf32>
    %71 = arith.truncf %70 : vector<8x128xf32> to vector<8x128xbf16>
    %cst_21 = arith.constant dense<0.000000e+00> : vector<128x128xf32>
    %72 = tpu.matmul %67, %69, %cst_21 {dimension_numbers = #tpu.dot_dimension_numbers<[0], [0], [1], [1], [0, 1, 1, 1], [], []>} : vector<8x128xbf16>, vector<8x128xbf16>, vector<128x128xf32> -> vector<128x128xf32>
    %cst_22 = arith.constant dense<0xFF800000> : vector<128xf32>
    %73 = vector.multi_reduction <maximumf>, %72, %cst_22 [1] : vector<128x128xf32> to vector<128xf32>
    %74 = vector.shape_cast %73 : vector<128xf32> to vector<128x1xf32>
    %75 = vector.broadcast %74 : vector<128x1xf32> to vector<128x128xf32>
    %76 = arith.subf %72, %75 : vector<128x128xf32>
    %77 = math.exp %76 : vector<128x128xf32>
    %cst_23 = arith.constant dense<0.000000e+00> : vector<128xf32>
    %78 = vector.multi_reduction <add>, %77, %cst_23 [1] : vector<128x128xf32> to vector<128xf32>
    %79 = vector.shape_cast %78 : vector<128xf32> to vector<128x1xf32>
    %80 = tpu.reciprocal %79 {approx = true} : vector<128x1xf32> -> vector<128x1xf32>
    %81 = vector.broadcast %80 : vector<128x1xf32> to vector<128x128xf32>
    %82 = arith.mulf %77, %81 : vector<128x128xf32>
    %83 = arith.truncf %82 : vector<128x128xf32> to vector<128x128xbf16>
    %cst_24 = arith.constant dense<0.000000e+00> : vector<8x128xf32>
    %84 = tpu.matmul %71, %83, %cst_24 {dimension_numbers = #tpu.dot_dimension_numbers<[1], [1], [0], [0], [0, 0, 1, 0], [], []>} : vector<8x128xbf16>, vector<128x128xbf16>, vector<8x128xf32> -> vector<8x128xf32>
    %c24 = arith.constant 24 : index
    %c0_25 = arith.constant 0 : index
    %85 = vector.load %arg5[%c24, %c0_25] : memref<33x256xf32, #tpu.memory_space<vmem>>, vector<8x128xf32>
    tpu.vector_store %arg5[%c24, %c0_25], %84 {strides = array<i32>} : memref<33x256xf32, #tpu.memory_space<vmem>>, vector<8x128xf32>,
    %86 = vector.extract_strided_slice %3 {offsets = [0, 128], sizes = [8, 128], strides = [1, 1]} : vector<96x256xf32> to vector<8x128xf32>
    %87 = arith.truncf %86 : vector<8x128xf32> to vector<8x128xbf16>
    %88 = vector.extract_strided_slice %3 {offsets = [32, 128], sizes = [8, 128], strides = [1, 1]} : vector<96x256xf32> to vector<8x128xf32>
    %89 = arith.truncf %88 : vector<8x128xf32> to vector<8x128xbf16>
    %90 = vector.extract_strided_slice %3 {offsets = [64, 128], sizes = [8, 128], strides = [1, 1]} : vector<96x256xf32> to vector<8x128xf32>
    %91 = arith.truncf %90 : vector<8x128xf32> to vector<8x128xbf16>
    %cst_26 = arith.constant dense<0.000000e+00> : vector<128x128xf32>
    %92 = tpu.matmul %87, %89, %cst_26 {dimension_numbers = #tpu.dot_dimension_numbers<[0], [0], [1], [1], [0, 1, 1, 1], [], []>} : vector<8x128xbf16>, vector<8x128xbf16>, vector<128x128xf32> -> vector<128x128xf32>
    %cst_27 = arith.constant dense<0xFF800000> : vector<128xf32>
    %93 = vector.multi_reduction <maximumf>, %92, %cst_27 [1] : vector<128x128xf32> to vector<128xf32>
    %94 = vector.shape_cast %93 : vector<128xf32> to vector<128x1xf32>
    %95 = vector.broadcast %94 : vector<128x1xf32> to vector<128x128xf32>
    %96 = arith.subf %92, %95 : vector<128x128xf32>
    %97 = math.exp %96 : vector<128x128xf32>
    %cst_28 = arith.constant dense<0.000000e+00> : vector<128xf32>
    %98 = vector.multi_reduction <add>, %97, %cst_28 [1] : vector<128x128xf32> to vector<128xf32>
    %99 = vector.shape_cast %98 : vector<128xf32> to vector<128x1xf32>
    %100 = tpu.reciprocal %99 {approx = true} : vector<128x1xf32> -> vector<128x1xf32>
    %101 = vector.broadcast %100 : vector<128x1xf32> to vector<128x128xf32>
    %102 = arith.mulf %97, %101 : vector<128x128xf32>
    %103 = arith.truncf %102 : vector<128x128xf32> to vector<128x128xbf16>
    %cst_29 = arith.constant dense<0.000000e+00> : vector<8x128xf32>
    %104 = tpu.matmul %91, %103, %cst_29 {dimension_numbers = #tpu.dot_dimension_numbers<[1], [1], [0], [0], [0, 0, 1, 0], [], []>} : vector<8x128xbf16>, vector<128x128xbf16>, vector<8x128xf32> -> vector<8x128xf32>
    %c0_30 = arith.constant 0 : index
    %c128 = arith.constant 128 : index
    %105 = vector.load %arg5[%c0_30, %c128] : memref<33x256xf32, #tpu.memory_space<vmem>>, vector<8x128xf32>
    tpu.vector_store %arg5[%c0_30, %c128], %104 {strides = array<i32>} : memref<33x256xf32, #tpu.memory_space<vmem>>, vector<8x128xf32>,
    %106 = vector.extract_strided_slice %3 {offsets = [8, 128], sizes = [8, 128], strides = [1, 1]} : vector<96x256xf32> to vector<8x128xf32>
    %107 = arith.truncf %106 : vector<8x128xf32> to vector<8x128xbf16>
    %108 = vector.extract_strided_slice %3 {offsets = [40, 128], sizes = [8, 128], strides = [1, 1]} : vector<96x256xf32> to vector<8x128xf32>
    %109 = arith.truncf %108 : vector<8x128xf32> to vector<8x128xbf16>
    %110 = vector.extract_strided_slice %3 {offsets = [72, 128], sizes = [8, 128], strides = [1, 1]} : vector<96x256xf32> to vector<8x128xf32>
    %111 = arith.truncf %110 : vector<8x128xf32> to vector<8x128xbf16>
    %cst_31 = arith.constant dense<0.000000e+00> : vector<128x128xf32>
    %112 = tpu.matmul %107, %109, %cst_31 {dimension_numbers = #tpu.dot_dimension_numbers<[0], [0], [1], [1], [0, 1, 1, 1], [], []>} : vector<8x128xbf16>, vector<8x128xbf16>, vector<128x128xf32> -> vector<128x128xf32>
    %cst_32 = arith.constant dense<0xFF800000> : vector<128xf32>
    %113 = vector.multi_reduction <maximumf>, %112, %cst_32 [1] : vector<128x128xf32> to vector<128xf32>
    %114 = vector.shape_cast %113 : vector<128xf32> to vector<128x1xf32>
    %115 = vector.broadcast %114 : vector<128x1xf32> to vector<128x128xf32>
    %116 = arith.subf %112, %115 : vector<128x128xf32>
    %117 = math.exp %116 : vector<128x128xf32>
    %cst_33 = arith.constant dense<0.000000e+00> : vector<128xf32>
    %118 = vector.multi_reduction <add>, %117, %cst_33 [1] : vector<128x128xf32> to vector<128xf32>
    %119 = vector.shape_cast %118 : vector<128xf32> to vector<128x1xf32>
    %120 = tpu.reciprocal %119 {approx = true} : vector<128x1xf32> -> vector<128x1xf32>
    %121 = vector.broadcast %120 : vector<128x1xf32> to vector<128x128xf32>
    %122 = arith.mulf %117, %121 : vector<128x128xf32>
    %123 = arith.truncf %122 : vector<128x128xf32> to vector<128x128xbf16>
    %cst_34 = arith.constant dense<0.000000e+00> : vector<8x128xf32>
    %124 = tpu.matmul %111, %123, %cst_34 {dimension_numbers = #tpu.dot_dimension_numbers<[1], [1], [0], [0], [0, 0, 1, 0], [], []>} : vector<8x128xbf16>, vector<128x128xbf16>, vector<8x128xf32> -> vector<8x128xf32>
    %c8_35 = arith.constant 8 : index
    %c128_36 = arith.constant 128 : index
    %125 = vector.load %arg5[%c8_35, %c128_36] : memref<33x256xf32, #tpu.memory_space<vmem>>, vector<8x128xf32>
    tpu.vector_store %arg5[%c8_35, %c128_36], %124 {strides = array<i32>} : memref<33x256xf32, #tpu.memory_space<vmem>>, vector<8x128xf32>,
    %126 = vector.extract_strided_slice %3 {offsets = [16, 128], sizes = [8, 128], strides = [1, 1]} : vector<96x256xf32> to vector<8x128xf32>
    %127 = arith.truncf %126 : vector<8x128xf32> to vector<8x128xbf16>
    %128 = vector.extract_strided_slice %3 {offsets = [48, 128], sizes = [8, 128], strides = [1, 1]} : vector<96x256xf32> to vector<8x128xf32>
    %129 = arith.truncf %128 : vector<8x128xf32> to vector<8x128xbf16>
    %130 = vector.extract_strided_slice %3 {offsets = [80, 128], sizes = [8, 128], strides = [1, 1]} : vector<96x256xf32> to vector<8x128xf32>
    %131 = arith.truncf %130 : vector<8x128xf32> to vector<8x128xbf16>
    %cst_37 = arith.constant dense<0.000000e+00> : vector<128x128xf32>
    %132 = tpu.matmul %127, %129, %cst_37 {dimension_numbers = #tpu.dot_dimension_numbers<[0], [0], [1], [1], [0, 1, 1, 1], [], []>} : vector<8x128xbf16>, vector<8x128xbf16>, vector<128x128xf32> -> vector<128x128xf32>
    %cst_38 = arith.constant dense<0xFF800000> : vector<128xf32>
    %133 = vector.multi_reduction <maximumf>, %132, %cst_38 [1] : vector<128x128xf32> to vector<128xf32>
    %134 = vector.shape_cast %133 : vector<128xf32> to vector<128x1xf32>
    %135 = vector.broadcast %134 : vector<128x1xf32> to vector<128x128xf32>
    %136 = arith.subf %132, %135 : vector<128x128xf32>
    %137 = math.exp %136 : vector<128x128xf32>
    %cst_39 = arith.constant dense<0.000000e+00> : vector<128xf32>
    %138 = vector.multi_reduction <add>, %137, %cst_39 [1] : vector<128x128xf32> to vector<128xf32>
    %139 = vector.shape_cast %138 : vector<128xf32> to vector<128x1xf32>
    %140 = tpu.reciprocal %139 {approx = true} : vector<128x1xf32> -> vector<128x1xf32>
    %141 = vector.broadcast %140 : vector<128x1xf32> to vector<128x128xf32>
    %142 = arith.mulf %137, %141 : vector<128x128xf32>
    %143 = arith.truncf %142 : vector<128x128xf32> to vector<128x128xbf16>
    %cst_40 = arith.constant dense<0.000000e+00> : vector<8x128xf32>
    %144 = tpu.matmul %131, %143, %cst_40 {dimension_numbers = #tpu.dot_dimension_numbers<[1], [1], [0], [0], [0, 0, 1, 0], [], []>} : vector<8x128xbf16>, vector<128x128xbf16>, vector<8x128xf32> -> vector<8x128xf32>
    %c16_41 = arith.constant 16 : index
    %c128_42 = arith.constant 128 : index
    %145 = vector.load %arg5[%c16_41, %c128_42] : memref<33x256xf32, #tpu.memory_space<vmem>>, vector<8x128xf32>
    tpu.vector_store %arg5[%c16_41, %c128_42], %144 {strides = array<i32>} : memref<33x256xf32, #tpu.memory_space<vmem>>, vector<8x128xf32>,
    %146 = vector.extract_strided_slice %3 {offsets = [24, 128], sizes = [8, 128], strides = [1, 1]} : vector<96x256xf32> to vector<8x128xf32>
    %147 = arith.truncf %146 : vector<8x128xf32> to vector<8x128xbf16>
    %148 = vector.extract_strided_slice %3 {offsets = [56, 128], sizes = [8, 128], strides = [1, 1]} : vector<96x256xf32> to vector<8x128xf32>
    %149 = arith.truncf %148 : vector<8x128xf32> to vector<8x128xbf16>
    %150 = vector.extract_strided_slice %3 {offsets = [88, 128], sizes = [8, 128], strides = [1, 1]} : vector<96x256xf32> to vector<8x128xf32>
    %151 = arith.truncf %150 : vector<8x128xf32> to vector<8x128xbf16>
    %cst_43 = arith.constant dense<0.000000e+00> : vector<128x128xf32>
    %152 = tpu.matmul %147, %149, %cst_43 {dimension_numbers = #tpu.dot_dimension_numbers<[0], [0], [1], [1], [0, 1, 1, 1], [], []>} : vector<8x128xbf16>, vector<8x128xbf16>, vector<128x128xf32> -> vector<128x128xf32>
    %cst_44 = arith.constant dense<0xFF800000> : vector<128xf32>
    %153 = vector.multi_reduction <maximumf>, %152, %cst_44 [1] : vector<128x128xf32> to vector<128xf32>
    %154 = vector.shape_cast %153 : vector<128xf32> to vector<128x1xf32>
    %155 = vector.broadcast %154 : vector<128x1xf32> to vector<128x128xf32>
    %156 = arith.subf %152, %155 : vector<128x128xf32>
    %157 = math.exp %156 : vector<128x128xf32>
    %cst_45 = arith.constant dense<0.000000e+00> : vector<128xf32>
    %158 = vector.multi_reduction <add>, %157, %cst_45 [1] : vector<128x128xf32> to vector<128xf32>
    %159 = vector.shape_cast %158 : vector<128xf32> to vector<128x1xf32>
    %160 = tpu.reciprocal %159 {approx = true} : vector<128x1xf32> -> vector<128x1xf32>
    %161 = vector.broadcast %160 : vector<128x1xf32> to vector<128x128xf32>
    %162 = arith.mulf %157, %161 : vector<128x128xf32>
    %163 = arith.truncf %162 : vector<128x128xf32> to vector<128x128xbf16>
    %cst_46 = arith.constant dense<0.000000e+00> : vector<8x128xf32>
    %164 = tpu.matmul %151, %163, %cst_46 {dimension_numbers = #tpu.dot_dimension_numbers<[1], [1], [0], [0], [0, 0, 1, 0], [], []>} : vector<8x128xbf16>, vector<128x128xbf16>, vector<8x128xf32> -> vector<8x128xf32>
    %c24_47 = arith.constant 24 : index
    %c128_48 = arith.constant 128 : index
    %165 = vector.load %arg5[%c24_47, %c128_48] : memref<33x256xf32, #tpu.memory_space<vmem>>, vector<8x128xf32>
    tpu.vector_store %arg5[%c24_47, %c128_48], %164 {strides = array<i32>} : memref<33x256xf32, #tpu.memory_space<vmem>>, vector<8x128xf32>,
    %c0_49 = arith.constant 0 : index
    %c0_50 = arith.constant 0 : index
    %166 = vector.load %arg2[%c0_49, %c0_50] : memref<32x33xbf16, #tpu.memory_space<vmem>>, vector<32x33xbf16>
    %c0_51 = arith.constant 0 : index
    %c0_52 = arith.constant 0 : index
    %167 = vector.load %arg5[%c0_51, %c0_52] : memref<33x256xf32, #tpu.memory_space<vmem>>, vector<33x256xf32>
    %168 = arith.truncf %167 : vector<33x256xf32> to vector<33x256xbf16>
    %cst_53 = arith.constant dense<0.000000e+00> : vector<32x256xf32>
    %169 = tpu.matmul %166, %168, %cst_53 {dimension_numbers = #tpu.dot_dimension_numbers<[1], [0], [0], [1], [0, 0, 1, 1], [], []>} : vector<32x33xbf16>, vector<33x256xbf16>, vector<32x256xf32> -> vector<32x256xf32>
    %cst_54 = arith.constant 0.000000e+00 : f32
    %170 = vector.broadcast %cst_54 : f32 to vector<32x256xf32>
    %171 = arith.maximumf %169, %170 : vector<32x256xf32>
    %c0_55 = arith.constant 0 : index
    %c0_56 = arith.constant 0 : index
    %172 = vector.load %arg5[%c0_55, %c0_56] : memref<33x256xf32, #tpu.memory_space<vmem>>, vector<32x256xf32>
    tpu.vector_store %arg5[%c0_55, %c0_56], %171 {strides = array<i32>} : memref<33x256xf32, #tpu.memory_space<vmem>>, vector<32x256xf32>,
    %c0_57 = arith.constant 0 : index
    %c0_58 = arith.constant 0 : index
    %173 = vector.load %arg3[%c0_57, %c0_58] : memref<32x33xbf16, #tpu.memory_space<vmem>>, vector<32x33xbf16>
    %c0_59 = arith.constant 0 : index
    %c0_60 = arith.constant 0 : index
    %174 = vector.load %arg5[%c0_59, %c0_60] : memref<33x256xf32, #tpu.memory_space<vmem>>, vector<33x256xf32>
    %175 = arith.truncf %174 : vector<33x256xf32> to vector<33x256xbf16>
    %cst_61 = arith.constant dense<0.000000e+00> : vector<32x256xf32>
    %176 = tpu.matmul %173, %175, %cst_61 {dimension_numbers = #tpu.dot_dimension_numbers<[1], [0], [0], [1], [0, 0, 1, 1], [], []>} : vector<32x33xbf16>, vector<33x256xbf16>, vector<32x256xf32> -> vector<32x256xf32>
    %177 = vector.extract_strided_slice %176 {offsets = [0, 0], sizes = [32, 128], strides = [1, 1]} : vector<32x256xf32> to vector<32x128xf32>
    %178 = vector.extract_strided_slice %0 {offsets = [0, 0], sizes = [32, 128], strides = [1, 1]} : vector<35x256xf32> to vector<32x128xf32>
    %179 = arith.addf %177, %178 : vector<32x128xf32>
    %c0_62 = arith.constant 0 : index
    %c0_63 = arith.constant 0 : index
    %c0_64 = arith.constant 0 : index
    %180 = vector.load %arg4[%c0_62, %c0_63, %c0_64] : memref<2x32x128xf32, #tpu.memory_space<vmem>>, vector<1x32x128xf32>
    %181 = vector.shape_cast %180 : vector<1x32x128xf32> to vector<32x128xf32>
    %182 = vector.shape_cast %179 : vector<32x128xf32> to vector<1x32x128xf32>
    tpu.vector_store %arg4[%c0_62, %c0_63, %c0_64], %182 {strides = array<i32>} : memref<2x32x128xf32, #tpu.memory_space<vmem>>, vector<1x32x128xf32>,
    %183 = vector.extract_strided_slice %176 {offsets = [0, 128], sizes = [32, 128], strides = [1, 1]} : vector<32x256xf32> to vector<32x128xf32>
    %184 = vector.extract_strided_slice %0 {offsets = [0, 128], sizes = [32, 128], strides = [1, 1]} : vector<35x256xf32> to vector<32x128xf32>
    %185 = arith.addf %183, %184 : vector<32x128xf32>
    %c1 = arith.constant 1 : index
    %c0_65 = arith.constant 0 : index
    %c0_66 = arith.constant 0 : index
    %186 = vector.load %arg4[%c1, %c0_65, %c0_66] : memref<2x32x128xf32, #tpu.memory_space<vmem>>, vector<1x32x128xf32>
    %187 = vector.shape_cast %186 : vector<1x32x128xf32> to vector<32x128xf32>
    %188 = vector.shape_cast %185 : vector<32x128xf32> to vector<1x32x128xf32>
    tpu.vector_store %arg4[%c1, %c0_65, %c0_66], %188 {strides = array<i32>} : memref<2x32x128xf32, #tpu.memory_space<vmem>>, vector<1x32x128xf32>,
    return
  }
}

</mosaic_0001>

<bundles_post_ra>
// kernel: tpu_custom_call.1
= control target key start
LH: loop header
LB: loop body
LE: loop exit
PB: predicated region body
PF: predicated region fallthrough
CT: control target
= control target key end

     0   :  { %9 = vsyncpa [#allocation4], 0  ;;  %s4611_s0 = inlined_call_operand.hbm [shape: f32[35,256], index: 0, kind: input, shape index: {}]   ;;  %s4612_s1 = inlined_call_operand.vmem [shape: bf16[96,35], index: 1, kind: input, shape index: {}]   ;;  %s4613_s2 = inlined_call_operand.vmem [shape: bf16[32,33], index: 2, kind: input, shape index: {}]   ;;  %s4614_s3 = inlined_call_operand.vmem [shape: bf16[32,33], index: 3, kind: input, shape index: {}]   ;;  %s4615_s4 = inlined_call_operand.hbm [shape: f32[2,32,128], index: 4, kind: output, shape index: {}]  }
   0x1   :  { %10 = vsyncpa [#allocation5], 0  ;;  %s15_s17 = sshll.u32 %s4611_s0, 4  ;;  %s3261_s18 = smov [#allocation3]   ;;  %s16_s17 = int_to_ptr.hbm [resolvable:$true] %s15_s17 }
   0x2   :  { %s17_s19 = sshll.u32 %s3261_s18, 4  ;;  %s3262_s20 = smov 256   ;;  %s18_s19 = int_to_ptr.vmem [resolvable:$true] %s17_s19 }
   0x3   :  { %s3263_s21 = smov 16  }
   0x4   :  { %23 = dma.hbm_to_vmem [thread:$0]  %s16_s17, 1280, %s18_s19, [#allocation4], %s3262_s20, %s3262_s20, %s3263_s21  }
   0x5   :  { %3257 = dma.done.wait [#allocation4], 1280  }
   0x6   :  { %3258 = vsyncadd [#allocation4], 4294966016  ;;  %vm112_vm0 = vcmask 1040384   ;;  %vm113_vm1 = vcmask 1041408   ;;  %v3264_v0 = vmov 65535   ;;  %v39_v5 = vld [vmem:[#allocation3 + $0x20] sm:$0xff] }
   0x7   :  { %v114_v1 = vsel %vm112_vm0, 4294967295, %v3264_v0  ;;  %v43_v2 = vld [vmem:[#allocation3 + $0x40] sm:$0x7]  ;;  %v41_v6 = vld [vmem:[#allocation3 + $0x30] sm:$0xff]  ;;  %vm93_vm2 = vcmask 285696   ;;  %v3312_v13 = vld [vmem:[%s4612_s1 + $0x8] sm:$0xff] }
   0x8   :  { %v3299_v3 = vsel %vm113_vm1, %v114_v1, 0  ;;  %v49_v4 = vpack.c.bf16 %v43_v2, %v43_v2  ;;  %v47_v8 = vpack.c.bf16 %v41_v6, %v39_v5  ;;  %v35_v9 = vld [vmem:[#allocation3] sm:$0xff]  ;;  %v37_v10 = vld [vmem:[#allocation3 + $0x10] sm:$0xff]  ;;  %vm251_vm3 = vcmask 1043456   ;;  %s2499_s16 = sshll.u32 %s4615_s4, 4  ;;  %s3268_s17 = smov 128   ;;  %s2500_s16 = int_to_ptr.hbm [resolvable:$true] %s2499_s16 }
   0x9   :  { %v45_v11 = vpack.c.bf16 %v37_v10, %v35_v9  ;;  %v3305_v12 = vld [vmem:[%s4612_s1] sm:$0xff]  ;;  %v3319_v14 = vld [vmem:[%s4612_s1 + $0x10] sm:$0xff]  ;;  %vm226_vm4 = vcmask 64512   ;;  %vm2327_vm6 = vcmask 269312   ;;  %s3269_s18 = smov 8  }
   0xa   :  { %v117_v7 = vand.u32 %v3299_v3, %v49_v4 }
   0xc   :  { %127 = vmatpush.bf16.msra.mxu3 %v117_v7 }
  0x10   :  { %128 = vmatpush.bf16.msra.mxu3 %v47_v8 }
  0x14   :  { %129 = vmatpush.bf16.msra.mxu3 %v45_v11 }
  0x17   :  { %2536 = vmatmul.msk.bf16.vlgmr.msra.gmra.mxu3 %vm93_vm2, %v3305_v12 }
  0x27   :  { %2537 = vmatmul.msk.bf16.gmra.mxu3 %vm93_vm2, %v3312_v13 }
  0x37   :  { %2538 = vmatmul.msk.bf16.gmra.mxu3 %vm93_vm2, %v3319_v14 }
  0x9a   :  { %v131_v15 = vpop.f32.mrf.mxu3 }
  0x9b   :  { %v207_v16 = vpack.c.bf16 %v131_v15, %v131_v15 }
  0x9d   :  { %210 = vxpose.xlu0.c.b16.start.end [1/1] (short) %v207_v16, 128 }
  0xa2   :  { %v3323_v17 = vpop.f32.mrf.mxu3 }
  0xaa   :  { %v3325_v18 = vpop.f32.mrf.mxu3 }
  0xb2   :  { %v3327_v19 = vpop.f32.mrf.mxu3 }
  0xba   :  { %v141_v20 = vpop.f32.mrf.mxu3 }
  0xbb   :  { %v208_v21 = vpack.c.bf16 %v141_v20, %v141_v20 }
  0xbd   :  { %v253_v22 = vsel %vm251_vm3, %v208_v21, 0 }
  0xbe   :  { %262 = vmatpush.bf16.msra.mxu2 %v253_v22 }
 0x149   :  { %v218_v23 = vpop.trf.xlu0 }
 0x14a   :  { %2548 = vmatmul.msk.bf16.vlgmr.msra.gmra.mxu2 %vm226_vm4, %v218_v23 }
 0x159   :  { %v219_v24 = vpop.trf.xlu0 }
 0x15a   :  { %2549 = vmatmul.msk.bf16.gmra.mxu2 %vm226_vm4, %v219_v24 }
 0x169   :  { %v220_v25 = vpop.trf.xlu0 }
 0x16a   :  { %2550 = vmatmul.msk.bf16.gmra.mxu2 %vm226_vm4, %v220_v25 }
 0x179   :  { %v221_v26 = vpop.trf.xlu0 }
 0x17a   :  { %2551 = vmatmul.msk.bf16.gmra.mxu2 %vm226_vm4, %v221_v26 }
 0x189   :  { %v222_v27 = vpop.trf.xlu0 }
 0x18a   :  { %2552 = vmatmul.msk.bf16.gmra.mxu2 %vm226_vm4, %v222_v27 }
 0x199   :  { %v223_v28 = vpop.trf.xlu0 }
 0x19a   :  { %2553 = vmatmul.msk.bf16.gmra.mxu2 %vm226_vm4, %v223_v28 }
 0x1a9   :  { %v224_v29 = vpop.trf.xlu0 }
 0x1aa   :  { %2554 = vmatmul.msk.bf16.gmra.mxu2 %vm226_vm4, %v224_v29 }
 0x1b9   :  { %v225_v30 = vpop.trf.xlu0 }
 0x1ba   :  { %2555 = vmatmul.msk.bf16.gmra.mxu2 %vm226_vm4, %v225_v30 }
 0x1cd   :  { %v3338_v31 = vpop.f32.mrf.mxu2 }
 0x1d5   :  { %v3340_v32 = vpop.f32.mrf.mxu2 }
 0x1dd   :  { %v3342_v33 = vpop.f32.mrf.mxu2 }
 0x1e5   :  { %v3344_v34 = vpop.f32.mrf.mxu2 }
 0x1ed   :  { %v3346_v35 = vpop.f32.mrf.mxu2 }
 0x1f5   :  { %v3348_v36 = vpop.f32.mrf.mxu2 }
 0x1fd   :  { %v3350_v37 = vpop.f32.mrf.mxu2 }
 0x205   :  { %v3352_v38 = vpop.f32.mrf.mxu2 }
 0x20d   :  { %v284_v39 = vpop.f32.mrf.mxu2 }
 0x215   :  { %v3354_v40 = vpop.f32.mrf.mxu2 }
 0x21d   :  { %v289_v41 = vpop.f32.mrf.mxu2 }
 0x225   :  { %v291_v42 = vpop.f32.mrf.mxu2 }
 0x22d   :  { %v294_v43 = vpop.f32.mrf.mxu2 }
 0x22e   :  { %328 = vmax.xlane.f32.xlu1 %v294_v43 }
 0x235   :  { %v296_v44 = vpop.f32.mrf.mxu2 }
 0x236   :  { %330 = vmax.xlane.f32.xlu2 %v296_v44 }
 0x23d   :  { %v299_v45 = vpop.f32.mrf.mxu2 }
 0x23e   :  { %324 = vmax.xlane.f32.xlu2 %v289_v41  ;;  %332 = vmax.xlane.f32.xlu0 %v299_v45 }
 0x245   :  { %v301_v46 = vpop.f32.mrf.mxu2 }
 0x246   :  { %320 = vmax.xlane.f32.xlu2 %v284_v39  ;;  %334 = vmax.xlane.f32.xlu1 %v301_v46 }
 0x24e   :  { %316 = vmax.xlane.f32.xlu2 %v3350_v37  ;;  %326 = vmax.xlane.f32.xlu1 %v291_v42 }
 0x256   :  { %312 = vmax.xlane.f32.xlu2 %v3346_v35  ;;  %322 = vmax.xlane.f32.xlu1 %v3354_v40 }
 0x25e   :  { %308 = vmax.xlane.f32.xlu2 %v3342_v33  ;;  %318 = vmax.xlane.f32.xlu1 %v3352_v38 }
 0x266   :  { %304 = vmax.xlane.f32.xlu2 %v3338_v31  ;;  %314 = vmax.xlane.f32.xlu1 %v3348_v36 }
 0x26e   :  { %310 = vmax.xlane.f32.xlu1 %v3344_v34 }
 0x276   :  { %306 = vmax.xlane.f32.xlu1 %v3340_v32 }
 0x2a1   :  { %v329_v48 = vpop.xlane.xlu1 %328 }
 0x2a2   :  { %v348_v53 = vsub.f32 %v294_v43, %v329_v48 }
 0x2a4   :  { %v376_v55 = vmul.f32 1.442695, %v348_v53 }
 0x2a9   :  { %v331_v47 = vpop.xlane.xlu2 %330 }
 0x2aa   :  { %v349_v60 = vsub.f32 %v296_v44, %v331_v47 }
 0x2ac   :  { %v378_v63 = vmul.f32 1.442695, %v349_v60 }
 0x2b1   :  { %v325_v49 = vpop.xlane.xlu2 %324  ;;  %v333_v50 = vpop.xlane.xlu0 %332 }
 0x2b2   :  { %v350_v51 = vsub.f32 %v299_v45, %v333_v50  ;;  %v346_v61 = vsub.f32 %v289_v41, %v325_v49 }
 0x2b4   :  { %v380_v52 = vmul.f32 1.442695, %v350_v51  ;;  %v372_v0 = vmul.f32 1.442695, %v346_v61 }
 0x2b6   :  { %2689 = vpow2.f32 %v380_v52 }
 0x2b7   :  { %2691 = vpow2.f32 %v376_v55 }
 0x2b9   :  { %v335_v54 = vpop.xlane.xlu1 %334  ;;  %v321_v57 = vpop.xlane.xlu2 %320 }
 0x2ba   :  { %v351_v56 = vsub.f32 %v301_v46, %v335_v54  ;;  %v344_v5 = vsub.f32 %v284_v39, %v321_v57 }
 0x2bc   :  { %v382_v58 = vmul.f32 1.442695, %v351_v56  ;;  %v3365_v59 = vpop.eup %2689  ;;  %v368_v8 = vmul.f32 1.442695, %v344_v5  ;;  %v3432_v56 = vld [vmem:[%s4612_s1 + $0x20] sm:$0xff] }
 0x2bd   :  { %412 = vadd.xlane.f32.xlu2 %v3365_v59  ;;  %v3368_v1 = vpop.eup %2691 }
 0x2be   :  { %2693 = vpow2.f32 %v382_v58 }
 0x2bf   :  { %2695 = vpow2.f32 %v378_v63 }
 0x2c0   :  { %2697 = vpow2.f32 %v372_v0 }
 0x2c1   :  { %v327_v62 = vpop.xlane.xlu1 %326  ;;  %v317_v4 = vpop.xlane.xlu2 %316  ;;  %2699 = vpow2.f32 %v368_v8 }
 0x2c2   :  { %v347_v6 = vsub.f32 %v291_v42, %v327_v62  ;;  %v342_v15 = vsub.f32 %v3350_v37, %v317_v4 }
 0x2c4   :  { %v3370_v2 = vpop.eup %2693  ;;  %v374_v9 = vmul.f32 1.442695, %v347_v6  ;;  %v364_v22 = vmul.f32 1.442695, %v342_v15 }
 0x2c5   :  { %408 = vadd.xlane.f32.xlu2 %v3368_v1  ;;  %414 = vadd.xlane.f32.xlu1 %v3370_v2  ;;  %v3374_v10 = vpop.eup %2695 }
 0x2c6   :  { %v3376_v11 = vpop.eup %2697  ;;  %2701 = vpow2.f32 %v374_v9 }
 0x2c7   :  { %v3382_v24 = vpop.eup %2699  ;;  %2703 = vpow2.f32 %v364_v22 }
 0x2c9   :  { %v323_v7 = vpop.xlane.xlu1 %322  ;;  %v313_v16 = vpop.xlane.xlu2 %312 }
 0x2ca   :  { %v345_v20 = vsub.f32 %v3354_v40, %v323_v7  ;;  %v340_v26 = vsub.f32 %v3346_v35, %v313_v16  ;;  %v3400_v35 = vld [vmem:[%s4612_s1 + $0x18] sm:$0xff] }
 0x2cb   :  { %2539 = vmatmul.msk.bf16.gmra.mxu3 %vm93_vm2, %v3400_v35 }
 0x2cc   :  { %v370_v23 = vmul.f32 1.442695, %v345_v20  ;;  %v3384_v25 = vpop.eup %2701  ;;  %v360_v30 = vmul.f32 1.442695, %v340_v26 }
 0x2cd   :  { %404 = vadd.xlane.f32.xlu2 %v3376_v11  ;;  %410 = vadd.xlane.f32.xlu1 %v3374_v10  ;;  %v3390_v39 = vpop.eup %2703 }
 0x2ce   :  { %2705 = vpow2.f32 %v370_v23 }
 0x2cf   :  { %2707 = vpow2.f32 %v360_v30 }
 0x2d1   :  { %v319_v21 = vpop.xlane.xlu1 %318  ;;  %v309_v28 = vpop.xlane.xlu2 %308 }
 0x2d2   :  { %v343_v27 = vsub.f32 %v3352_v38, %v319_v21  ;;  %v338_v41 = vsub.f32 %v3342_v33, %v309_v28 }
 0x2d4   :  { %v366_v37 = vmul.f32 1.442695, %v343_v27  ;;  %v3392_v40 = vpop.eup %2705  ;;  %v356_v42 = vmul.f32 1.442695, %v338_v41 }
 0x2d5   :  { %400 = vadd.xlane.f32.xlu2 %v3382_v24  ;;  %406 = vadd.xlane.f32.xlu1 %v3384_v25  ;;  %v3405_v33 = vpop.eup %2707 }
 0x2d6   :  { %2709 = vpow2.f32 %v366_v37 }
 0x2d7   :  { %2711 = vpow2.f32 %v356_v42 }
 0x2d9   :  { %v315_v29 = vpop.xlane.xlu1 %314  ;;  %v305_v44 = vpop.xlane.xlu2 %304 }
 0x2da   :  { %v341_v38 = vsub.f32 %v3348_v36, %v315_v29  ;;  %v336_v47 = vsub.f32 %v3338_v31, %v305_v44 }
 0x2db   :  { %2540 = vmatmul.msk.bf16.gmra.mxu3 %vm93_vm2, %v3432_v56 }
 0x2dc   :  { %v362_v45 = vmul.f32 1.442695, %v341_v38  ;;  %v3407_v46 = vpop.eup %2709  ;;  %v352_v48 = vmul.f32 1.442695, %v336_v47  ;;  %v143_v38 = vpop.f32.mrf.mxu3 }
 0x2dd   :  { %396 = vadd.xlane.f32.xlu2 %v3390_v39  ;;  %402 = vadd.xlane.f32.xlu1 %v3392_v40  ;;  %v3413_v50 = vpop.eup %2711 }
 0x2de   :  { %2713 = vpow2.f32 %v362_v45 }
 0x2df   :  { %2715 = vpow2.f32 %v352_v48 }
 0x2e1   :  { %v311_v43 = vpop.xlane.xlu1 %310 }
 0x2e2   :  { %v339_v36 = vsub.f32 %v3344_v34, %v311_v43 }
 0x2e4   :  { %v358_v49 = vmul.f32 1.442695, %v339_v36  ;;  %v3415_v52 = vpop.eup %2713 }
 0x2e5   :  { %392 = vadd.xlane.f32.xlu2 %v3405_v33  ;;  %398 = vadd.xlane.f32.xlu1 %v3407_v46  ;;  %v3420_v54 = vpop.eup %2715 }
 0x2e6   :  { %2717 = vpow2.f32 %v358_v49 }
 0x2e9   :  { %v307_v51 = vpop.xlane.xlu1 %306 }
 0x2ea   :  { %v337_v31 = vsub.f32 %v3340_v32, %v307_v51  ;;  %v470_v32 = vpack.c.bf16 %v3323_v17, %v3323_v17 }
 0x2ec   :  { %v354_v53 = vmul.f32 1.442695, %v337_v31  ;;  %v3422_v55 = vpop.eup %2717 }
 0x2ed   :  { %388 = vadd.xlane.f32.xlu2 %v3413_v50  ;;  %394 = vadd.xlane.f32.xlu1 %v3415_v52 }
 0x2ee   :  { %2719 = vpow2.f32 %v354_v53 }
 0x2f4   :  { %v3426_v34 = vpop.eup %2719 }
 0x2f5   :  { %384 = vadd.xlane.f32.xlu2 %v3420_v54  ;;  %390 = vadd.xlane.f32.xlu1 %v3422_v55 }
 0x2fd   :  { %386 = vadd.xlane.f32.xlu1 %v3426_v34 }
 0x31e   :  { %473 = vxpose.xlu2.c.b16.start.end [1/1] (short) %v470_v32, 128  ;;  %v36_v32 = vld [vmem:[#allocation3 + $0x8] sm:$0xff] }
 0x330   :  { %v413_v57 = vpop.xlane.xlu2 %412 }
 0x331   :  { %2721 = vrcp.f32 %v413_v57  ;;  %v38_v57 = vld [vmem:[#allocation3 + $0x18] sm:$0xff] }
 0x337   :  { %v2722_v61 = vpop.eup %2721 }
 0x338   :  { %v409_v58 = vpop.xlane.xlu2 %408  ;;  %v415_v60 = vpop.xlane.xlu1 %414  ;;  %v446_v4 = vmul.f32 %v2722_v61, %v3365_v59  ;;  %v46_v61 = vpack.c.bf16 %v38_v57, %v36_v32 }
 0x339   :  { %2723 = vrcp.f32 %v415_v60 }
 0x33a   :  { %2725 = vrcp.f32 %v409_v58 }
 0x33f   :  { %v2724_v62 = vpop.eup %2723 }
 0x340   :  { %v405_v63 = vpop.xlane.xlu2 %404  ;;  %v411_v0 = vpop.xlane.xlu1 %410  ;;  %v447_v5 = vmul.f32 %v2724_v62, %v3370_v2 }
 0x341   :  { %2727 = vrcp.f32 %v411_v0  ;;  %v2726_v7 = vpop.eup %2725 }
 0x342   :  { %v455_v6 = vpack.c.bf16 %v447_v5, %v446_v4  ;;  %2729 = vrcp.f32 %v405_v63  ;;  %v444_v15 = vmul.f32 %v2726_v7, %v3368_v1 }
 0x344   :  { %456 = vmatpush.bf16.xpose.msrb.mxu3 %v455_v6 }
 0x347   :  { %v2728_v17 = vpop.eup %2727 }
 0x348   :  { %v401_v8 = vpop.xlane.xlu2 %400  ;;  %v407_v9 = vpop.xlane.xlu1 %406  ;;  %v445_v16 = vmul.f32 %v2728_v17, %v3374_v10 }
 0x349   :  { %2731 = vrcp.f32 %v407_v9  ;;  %v2730_v21 = vpop.eup %2729 }
 0x34a   :  { %v454_v20 = vpack.c.bf16 %v445_v16, %v444_v15  ;;  %2733 = vrcp.f32 %v401_v8  ;;  %v442_v23 = vmul.f32 %v2730_v21, %v3376_v11  ;;  %v3449_v11 = vld [vmem:[%s4612_s1 + $0x28] sm:$0xff] }
 0x34b   :  { %2541 = vmatmul.msk.bf16.gmra.mxu3 %vm93_vm2, %v3449_v11 }
 0x34c   :  { %457 = vmatpush.bf16.xpose.msrb.mxu3 %v454_v20  ;;  %v471_v20 = vpack.c.bf16 %v143_v38, %v143_v38 }
 0x34e   :  { %v146_v53 = vpop.f32.mrf.mxu3 }
 0x34f   :  { %v2732_v22 = vpop.eup %2731  ;;  %v732_v58 = vpack.c.bf16 %v146_v53, %v146_v53 }
 0x350   :  { %v397_v59 = vpop.xlane.xlu2 %396  ;;  %v403_v2 = vpop.xlane.xlu1 %402  ;;  %v443_v26 = vmul.f32 %v2732_v22, %v3384_v25  ;;  %v44_v25 = vld [vmem:[#allocation3 + $0x48] sm:$0x7]  ;;  %v514_v22 = vsel %vm251_vm3, %v471_v20, 0 }
 0x351   :  { %2735 = vrcp.f32 %v403_v2  ;;  %v2734_v28 = vpop.eup %2733  ;;  %v50_v43 = vpack.c.bf16 %v44_v25, %v44_v25  ;;  %v775_v63 = vsel %vm251_vm3, %v732_v58, 0 }
 0x352   :  { %v453_v27 = vpack.c.bf16 %v443_v26, %v442_v23  ;;  %2737 = vrcp.f32 %v397_v59  ;;  %v440_v30 = vmul.f32 %v2734_v28, %v3382_v24  ;;  %v40_v24 = vld [vmem:[#allocation3 + $0x28] sm:$0xff] }
 0x353   :  { %v120_v48 = vand.u32 %v3299_v3, %v50_v43 }
 0x354   :  { %458 = vmatpush.bf16.xpose.msrb.mxu3 %v453_v27 }
 0x355   :  { %166 = vmatpush.bf16.msra.mxu1 %v120_v48 }
 0x356   :  { %v3465_v21 = vpop.f32.mrf.mxu3 }
 0x357   :  { %v2736_v29 = vpop.eup %2735 }
 0x358   :  { %v393_v1 = vpop.xlane.xlu2 %392  ;;  %v399_v10 = vpop.xlane.xlu1 %398  ;;  %v441_v37 = vmul.f32 %v2736_v29, %v3392_v40  ;;  %v42_v40 = vld [vmem:[#allocation3 + $0x38] sm:$0xff] }
 0x359   :  { %2739 = vrcp.f32 %v399_v10  ;;  %v2738_v42 = vpop.eup %2737  ;;  %v48_v31 = vpack.c.bf16 %v42_v40, %v40_v24 }
 0x35a   :  { %v452_v41 = vpack.c.bf16 %v441_v37, %v440_v30  ;;  %2741 = vrcp.f32 %v393_v1  ;;  %v438_v47 = vmul.f32 %v2738_v42, %v3390_v39 }
 0x35b   :  { %167 = vmatpush.bf16.msra.mxu1 %v48_v31 }
 0x35c   :  { %459 = vmatpush.bf16.xpose.msrb.mxu3 %v452_v41 }
 0x35f   :  { %v2740_v44 = vpop.eup %2739  ;;  %168 = vmatpush.bf16.msra.mxu1 %v46_v61 }
 0x360   :  { %v395_v45 = vpop.xlane.xlu1 %394  ;;  %v439_v36 = vmul.f32 %v2740_v44, %v3407_v46  ;;  %v389_v49 = vpop.xlane.xlu2 %388 }
 0x361   :  { %2743 = vrcp.f32 %v395_v45  ;;  %v2742_v60 = vpop.eup %2741 }
 0x362   :  { %v451_v51 = vpack.c.bf16 %v439_v36, %v438_v47  ;;  %2745 = vrcp.f32 %v389_v49  ;;  %v436_v46 = vmul.f32 %v2742_v60, %v3405_v33  ;;  %2542 = vmatmul.msk.bf16.vlgmr.msra.gmra.mxu1 %vm93_vm2, %v3305_v12 }
 0x363   :  { %784 = vmatpush.bf16.msrb.mxu1 %v775_v63 }
 0x364   :  { %460 = vmatpush.bf16.xpose.msrb.mxu3 %v451_v51 }
 0x367   :  { %v2744_v62 = vpop.eup %2743 }
 0x368   :  { %v391_v39 = vpop.xlane.xlu1 %390  ;;  %v437_v3 = vmul.f32 %v2744_v62, %v3415_v52  ;;  %v385_v4 = vpop.xlane.xlu2 %384 }
 0x369   :  { %2747 = vrcp.f32 %v391_v39  ;;  %v2746_v5 = vpop.eup %2745 }
 0x36a   :  { %v450_v0 = vpack.c.bf16 %v437_v3, %v436_v46  ;;  %2749 = vrcp.f32 %v385_v4  ;;  %v434_v33 = vmul.f32 %v2746_v5, %v3413_v50  ;;  %v151_v50 = vpop.f32.mrf.mxu3 }
 0x36c   :  { %461 = vmatpush.bf16.xpose.msrb.mxu3 %v450_v0 }
 0x36f   :  { %v2748_v6 = vpop.eup %2747 }
 0x370   :  { %v387_v7 = vpop.xlane.xlu1 %386  ;;  %v435_v52 = vmul.f32 %v2748_v6, %v3422_v55  ;;  %v2750_v8 = vpop.eup %2749  ;;  %v209_v55 = vpack.c.bf16 %v151_v50, %v151_v50 }
 0x371   :  { %2751 = vrcp.f32 %v387_v7  ;;  %v432_v15 = vmul.f32 %v2750_v8, %v3420_v54 }
 0x372   :  { %v449_v17 = vpack.c.bf16 %v435_v52, %v434_v33  ;;  %2543 = vmatmul.msk.bf16.gmra.mxu1 %vm93_vm2, %v3312_v13  ;;  %v3481_v59 = vpop.f32.mrf.mxu3 }
 0x374   :  { %462 = vmatpush.bf16.xpose.msrb.mxu3 %v449_v17 }
 0x377   :  { %v2752_v9 = vpop.eup %2751 }
 0x378   :  { %v433_v16 = vmul.f32 %v2752_v9, %v3426_v34 }
 0x37a   :  { %v448_v12 = vpack.c.bf16 %v433_v16, %v432_v15 }
 0x37c   :  { %463 = vmatpush.bf16.xpose.msrb.mxu3 %v448_v12 }
 0x382   :  { %2544 = vmatmul.msk.bf16.gmra.mxu1 %vm93_vm2, %v3319_v14 }
 0x383   :  { %464 = vmatmul.bf16.vlgmr.msrb.gmra.mxu3 %v209_v55 }
 0x384   :  { %523 = vmatpush.bf16.msra.mxu3 %v514_v22 }
 0x392   :  { %2545 = vmatmul.msk.bf16.gmra.mxu1 %vm93_vm2, %v3400_v35 }
 0x3a2   :  { %2546 = vmatmul.msk.bf16.gmra.mxu1 %vm93_vm2, %v3432_v56 }
 0x3b2   :  { %2547 = vmatmul.msk.bf16.gmra.mxu1 %vm93_vm2, %v3449_v11 }
 0x3bf   :  { %v481_v54 = vpop.trf.xlu2 }
 0x3c0   :  { %2556 = vmatmul.msk.bf16.vlgmr.msra.gmra.mxu3 %vm226_vm4, %v481_v54 }
 0x3ce   :  { %v3484_v35 = vpop.f32.mrf.mxu3 }
 0x3cf   :  { %v482_v34 = vpop.trf.xlu2  ;;  %4623 = vst [vmem:[#allocation9_spill] sm:$0xff] %v3484_v35 }
 0x3d0   :  { %2557 = vmatmul.msk.bf16.gmra.mxu3 %vm226_vm4, %v482_v34 }
 0x3d6   :  { %v3486_v2 = vpop.f32.mrf.mxu3 }
 0x3d7   :  { %4624 = vst [vmem:[#allocation10_spill] sm:$0xff] %v3486_v2 }
 0x3df   :  { %v483_v13 = vpop.trf.xlu2 }
 0x3e0   :  { %2558 = vmatmul.msk.bf16.gmra.mxu3 %vm226_vm4, %v483_v13 }
 0x3ef   :  { %v484_v14 = vpop.trf.xlu2 }
 0x3f0   :  { %2559 = vmatmul.msk.bf16.gmra.mxu3 %vm226_vm4, %v484_v14 }
 0x3ff   :  { %v485_v56 = vpop.trf.xlu2 }
 0x400   :  { %2560 = vmatmul.msk.bf16.gmra.mxu3 %vm226_vm4, %v485_v56 }
 0x406   :  { %v465_v23 = vpop.f32.mrf.mxu3 }
 0x407   :  { %469 = vst [vmem:[#allocation2] sm:$0xff] %v465_v23 }
 0x40e   :  { %v467_v27 = vpop.f32.mrf.mxu3 }
 0x40f   :  { %v486_v26 = vpop.trf.xlu2 }
 0x410   :  { %2561 = vmatmul.msk.bf16.gmra.mxu3 %vm226_vm4, %v486_v26 }
 0x41f   :  { %v487_v28 = vpop.trf.xlu2 }
 0x420   :  { %2562 = vmatmul.msk.bf16.gmra.mxu3 %vm226_vm4, %v487_v28 }
 0x42f   :  { %v488_v29 = vpop.trf.xlu2 }
 0x430   :  { %2563 = vmatmul.msk.bf16.gmra.mxu3 %vm226_vm4, %v488_v29 }
 0x443   :  { %v3492_v1 = vpop.f32.mrf.mxu3 }
 0x44b   :  { %v3494_v10 = vpop.f32.mrf.mxu3 }
 0x44c   :  { %567 = vmax.xlane.f32.xlu0 %v3494_v10 }
 0x453   :  { %v3497_v30 = vpop.f32.mrf.mxu3 }
 0x45b   :  { %v3499_v37 = vpop.f32.mrf.mxu3 }
 0x463   :  { %v3501_v41 = vpop.f32.mrf.mxu3 }
 0x46b   :  { %v3503_v38 = vpop.f32.mrf.mxu3 }
 0x473   :  { %v3505_v42 = vpop.f32.mrf.mxu3 }
 0x47b   :  { %v3507_v11 = vpop.f32.mrf.mxu3 }
 0x483   :  { %v545_v25 = vpop.f32.mrf.mxu3 }
 0x48b   :  { %v3509_v43 = vpop.f32.mrf.mxu3 }
 0x493   :  { %v550_v44 = vpop.f32.mrf.mxu3 }
 0x494   :  { %585 = vmax.xlane.f32.xlu1 %v550_v44 }
 0x49b   :  { %v552_v45 = vpop.f32.mrf.mxu3 }
 0x49c   :  { %581 = vmax.xlane.f32.xlu1 %v545_v25  ;;  %587 = vmax.xlane.f32.xlu2 %v552_v45 }
 0x4a3   :  { %v555_v24 = vpop.f32.mrf.mxu3 }
 0x4a4   :  { %583 = vmax.xlane.f32.xlu1 %v3509_v43 }
 0x4ab   :  { %v557_v40 = vpop.f32.mrf.mxu3 }
 0x4ac   :  { %577 = vmax.xlane.f32.xlu1 %v3505_v42 }
 0x4b3   :  { %v560_v47 = vpop.f32.mrf.mxu3 }
 0x4b4   :  { %579 = vmax.xlane.f32.xlu1 %v3507_v11 }
 0x4bb   :  { %v562_v36 = vpop.f32.mrf.mxu3 }
 0x4bc   :  { %573 = vmax.xlane.f32.xlu1 %v3501_v41 }
 0x4c4   :  { %575 = vmax.xlane.f32.xlu1 %v3503_v38 }
 0x4cc   :  { %589 = vmax.xlane.f32.xlu1 %v555_v24 }
 0x4d4   :  { %591 = vmax.xlane.f32.xlu1 %v557_v40 }
 0x4dc   :  { %593 = vmax.xlane.f32.xlu1 %v560_v47 }
 0x4e4   :  { %595 = vmax.xlane.f32.xlu1 %v562_v36 }
 0x4ec   :  { %569 = vmax.xlane.f32.xlu1 %v3497_v30 }
 0x4f4   :  { %571 = vmax.xlane.f32.xlu1 %v3499_v37 }
 0x4fc   :  { %565 = vmax.xlane.f32.xlu1 %v3492_v1 }
 0x507   :  { %v586_v48 = vpop.xlane.xlu1 %585 }
 0x508   :  { %v607_v49 = vsub.f32 %v550_v44, %v586_v48 }
 0x50a   :  { %v633_v51 = vmul.f32 1.442695, %v607_v49 }
 0x50c   :  { %2753 = vpow2.f32 %v633_v51 }
 0x50f   :  { %v582_v31 = vpop.xlane.xlu1 %581  ;;  %v588_v9 = vpop.xlane.xlu2 %587 }
 0x510   :  { %v605_v52 = vsub.f32 %v545_v25, %v582_v31  ;;  %v608_v12 = vsub.f32 %v552_v45, %v588_v9  ;;  %v568_v31 = vpop.xlane.xlu0 %567 }
 0x512   :  { %v3519_v53 = vpop.eup %2753  ;;  %v629_v17 = vmul.f32 1.442695, %v605_v52  ;;  %v635_v50 = vmul.f32 1.442695, %v608_v12 }
 0x513   :  { %665 = vadd.xlane.f32.xlu1 %v3519_v53 }
 0x517   :  { %v584_v32 = vpop.xlane.xlu1 %583 }
 0x518   :  { %v606_v14 = vsub.f32 %v3509_v43, %v584_v32 }
 0x51a   :  { %v631_v23 = vmul.f32 1.442695, %v606_v14 }
 0x51f   :  { %v578_v57 = vpop.xlane.xlu1 %577 }
 0x520   :  { %v603_v22 = vsub.f32 %v3505_v42, %v578_v57 }
 0x522   :  { %v625_v54 = vmul.f32 1.442695, %v603_v22 }
 0x527   :  { %v580_v58 = vpop.xlane.xlu1 %579 }
 0x528   :  { %v604_v42 = vsub.f32 %v3507_v11, %v580_v58 }
 0x52a   :  { %v627_v43 = vmul.f32 1.442695, %v604_v42 }
 0x52f   :  { %v574_v60 = vpop.xlane.xlu1 %573 }
 0x530   :  { %v601_v56 = vsub.f32 %v3501_v41, %v574_v60  ;;  %v170_v60 = vpop.f32.mrf.mxu1 }
 0x532   :  { %v621_v27 = vmul.f32 1.442695, %v601_v56 }
 0x537   :  { %v576_v61 = vpop.xlane.xlu1 %575 }
 0x53f   :  { %v590_v62 = vpop.xlane.xlu1 %589 }
 0x540   :  { %v609_v39 = vsub.f32 %v555_v24, %v590_v62  ;;  %v731_v62 = vpack.c.bf16 %v3325_v18, %v3325_v18 }
 0x542   :  { %v637_v46 = vmul.f32 1.442695, %v609_v39  ;;  %v992_v39 = vpack.c.bf16 %v3327_v19, %v3327_v19 }
 0x544   :  { %2755 = vpow2.f32 %v637_v46 }
 0x547   :  { %v592_v3 = vpop.xlane.xlu1 %591 }
 0x548   :  { %v610_v63 = vsub.f32 %v557_v40, %v592_v3  ;;  %v602_v40 = vsub.f32 %v3503_v38, %v576_v61  ;;  %v1253_v61 = vpack.c.bf16 %v170_v60, %v170_v60 }
 0x54a   :  { %v3522_v0 = vpop.eup %2755  ;;  %v639_v4 = vmul.f32 1.442695, %v610_v63 }
 0x54b   :  { %669 = vadd.xlane.f32.xlu1 %v3522_v0 }
 0x54c   :  { %2757 = vpow2.f32 %v639_v4 }
 0x54f   :  { %v594_v5 = vpop.xlane.xlu1 %593 }
 0x550   :  { %v611_v6 = vsub.f32 %v560_v47, %v594_v5  ;;  %v623_v47 = vmul.f32 1.442695, %v602_v40 }
 0x552   :  { %v3525_v7 = vpop.eup %2757  ;;  %v641_v33 = vmul.f32 1.442695, %v611_v6 }
 0x553   :  { %671 = vadd.xlane.f32.xlu0 %v3525_v7 }
 0x554   :  { %2759 = vpow2.f32 %v641_v33 }
 0x555   :  { %2761 = vpow2.f32 %v629_v17 }
 0x557   :  { %v596_v8 = vpop.xlane.xlu1 %595 }
 0x558   :  { %v612_v15 = vsub.f32 %v562_v36, %v596_v8 }
 0x55a   :  { %v3528_v16 = vpop.eup %2759  ;;  %v643_v20 = vmul.f32 1.442695, %v612_v15 }
 0x55b   :  { %673 = vadd.xlane.f32.xlu1 %v3528_v16  ;;  %v3532_v34 = vpop.eup %2761 }
 0x55c   :  { %2763 = vpow2.f32 %v643_v20 }
 0x55d   :  { %2765 = vpow2.f32 %v635_v50 }
 0x55e   :  { %2767 = vpow2.f32 %v625_v54 }
 0x55f   :  { %v570_v55 = vpop.xlane.xlu1 %569  ;;  %2769 = vpow2.f32 %v631_v23 }
 0x560   :  { %2771 = vpow2.f32 %v621_v27  ;;  %v599_v25 = vsub.f32 %v3497_v30, %v570_v55 }
 0x561   :  { %2773 = vpow2.f32 %v627_v43 }
 0x562   :  { %v3534_v13 = vpop.eup %2763  ;;  %v617_v44 = vmul.f32 1.442695, %v599_v25 }
 0x563   :  { %661 = vadd.xlane.f32.xlu1 %v3532_v34  ;;  %675 = vadd.xlane.f32.xlu0 %v3534_v13  ;;  %v3540_v28 = vpop.eup %2765 }
 0x564   :  { %v3542_v29 = vpop.eup %2767  ;;  %2775 = vpow2.f32 %v617_v44 }
 0x565   :  { %v3548_v41 = vpop.eup %2769  ;;  %2777 = vpow2.f32 %v623_v47 }
 0x566   :  { %v3550_v24 = vpop.eup %2771 }
 0x567   :  { %v572_v26 = vpop.xlane.xlu1 %571  ;;  %v3556_v30 = vpop.eup %2773 }
 0x568   :  { %v600_v38 = vsub.f32 %v3499_v37, %v572_v26 }
 0x56a   :  { %v3558_v48 = vpop.eup %2775  ;;  %v619_v49 = vmul.f32 1.442695, %v600_v38 }
 0x56b   :  { %657 = vadd.xlane.f32.xlu1 %v3542_v29  ;;  %667 = vadd.xlane.f32.xlu0 %v3540_v28  ;;  %v3563_v51 = vpop.eup %2777 }
 0x56f   :  { %v566_v45 = vpop.xlane.xlu1 %565 }
 0x570   :  { %v597_v11 = vsub.f32 %v3492_v1, %v566_v45  ;;  %v598_v1 = vsub.f32 %v3494_v10, %v568_v31 }
 0x572   :  { %v613_v36 = vmul.f32 1.442695, %v597_v11  ;;  %v615_v57 = vmul.f32 1.442695, %v598_v1 }
 0x573   :  { %653 = vadd.xlane.f32.xlu1 %v3550_v24  ;;  %663 = vadd.xlane.f32.xlu0 %v3548_v41 }
 0x574   :  { %2779 = vpow2.f32 %v613_v36 }
 0x575   :  { %2781 = vpow2.f32 %v619_v49 }
 0x576   :  { %2783 = vpow2.f32 %v615_v57 }
 0x57a   :  { %v3565_v32 = vpop.eup %2779 }
 0x57b   :  { %659 = vadd.xlane.f32.xlu0 %v3556_v30  ;;  %649 = vadd.xlane.f32.xlu1 %v3558_v48  ;;  %v3570_v58 = vpop.eup %2781 }
 0x57c   :  { %v3573_v37 = vpop.eup %2783 }
 0x583   :  { %655 = vadd.xlane.f32.xlu0 %v3563_v51  ;;  %645 = vadd.xlane.f32.xlu1 %v3565_v32 }
 0x586   :  { %v666_v10 = vpop.xlane.xlu1 %665 }
 0x58b   :  { %651 = vadd.xlane.f32.xlu0 %v3570_v58 }
 0x593   :  { %647 = vadd.xlane.f32.xlu0 %v3573_v37 }
 0x5bc   :  { %1256 = vxpose.xlu0.c.b16.start.end [1/1] (short) %v1253_v61, 128 }
 0x5bd   :  { %2655 = vxpose.binary.xlu1.c.b16.start.end [1/2] (short) %v992_v39, %v731_v62, 128 }
 0x5be   :  { %v670_v46 = vpop.xlane.xlu1 %669 }
 0x5c6   :  { %v672_v3 = vpop.xlane.xlu0 %671 }
 0x5ce   :  { %v674_v63 = vpop.xlane.xlu1 %673 }
 0x5cf   :  { %2785 = vrcp.f32 %v674_v63 }
 0x5d5   :  { %v2786_v5 = vpop.eup %2785 }
 0x5d6   :  { %v676_v4 = vpop.xlane.xlu0 %675  ;;  %v707_v52 = vmul.f32 %v2786_v5, %v3528_v16  ;;  %v662_v8 = vpop.xlane.xlu1 %661 }
 0x5d7   :  { %2787 = vrcp.f32 %v676_v4 }
 0x5d8   :  { %2789 = vrcp.f32 %v672_v3 }
 0x5d9   :  { %2791 = vrcp.f32 %v670_v46 }
 0x5dd   :  { %v2788_v6 = vpop.eup %2787 }
 0x5de   :  { %v668_v33 = vpop.xlane.xlu0 %667  ;;  %v708_v18 = vmul.f32 %v2788_v6, %v3534_v13  ;;  %v2790_v19 = vpop.eup %2789 }
 0x5df   :  { %v2792_v9 = vpop.eup %2791  ;;  %2793 = vrcp.f32 %v668_v33  ;;  %v706_v15 = vmul.f32 %v2790_v19, %v3525_v7  ;;  %v658_v16 = vpop.xlane.xlu1 %657 }
 0x5e0   :  { %v716_v17 = vpack.c.bf16 %v708_v18, %v707_v52  ;;  %2795 = vrcp.f32 %v666_v10  ;;  %v705_v12 = vmul.f32 %v2792_v9, %v3522_v0 }
 0x5e2   :  { %717 = vmatpush.bf16.xpose.msra.mxu0 %v716_v17  ;;  %v715_v22 = vpack.c.bf16 %v706_v15, %v705_v12 }
 0x5e5   :  { %v2794_v50 = vpop.eup %2793 }
 0x5e6   :  { %v664_v20 = vpop.xlane.xlu0 %663  ;;  %v2796_v55 = vpop.eup %2795  ;;  %v704_v54 = vmul.f32 %v2794_v50, %v3540_v28 }
 0x5e7   :  { %2797 = vrcp.f32 %v664_v20  ;;  %v703_v14 = vmul.f32 %v2796_v55, %v3519_v53  ;;  %v654_v0 = vpop.xlane.xlu1 %653 }
 0x5e8   :  { %2799 = vrcp.f32 %v662_v8 }
 0x5e9   :  { %v714_v56 = vpack.c.bf16 %v704_v54, %v703_v14 }
 0x5ea   :  { %718 = vmatpush.bf16.xpose.msra.mxu0 %v715_v22 }
 0x5ed   :  { %v2798_v23 = vpop.eup %2797 }
 0x5ee   :  { %v660_v13 = vpop.xlane.xlu0 %659  ;;  %v2800_v7 = vpop.eup %2799  ;;  %v702_v26 = vmul.f32 %v2798_v23, %v3548_v41 }
 0x5ef   :  { %2801 = vrcp.f32 %v660_v13  ;;  %v701_v42 = vmul.f32 %v2800_v7, %v3532_v34  ;;  %v650_v40 = vpop.xlane.xlu1 %649 }
 0x5f0   :  { %2803 = vrcp.f32 %v658_v16 }
 0x5f1   :  { %v713_v25 = vpack.c.bf16 %v702_v26, %v701_v42 }
 0x5f2   :  { %719 = vmatpush.bf16.xpose.msra.mxu0 %v714_v56 }
 0x5f5   :  { %v2802_v43 = vpop.eup %2801 }
 0x5f6   :  { %v656_v27 = vpop.xlane.xlu0 %655  ;;  %v2804_v28 = vpop.eup %2803  ;;  %v700_v44 = vmul.f32 %v2802_v43, %v3556_v30 }
 0x5f7   :  { %2805 = vrcp.f32 %v656_v27  ;;  %v699_v45 = vmul.f32 %v2804_v28, %v3542_v29  ;;  %v646_v1 = vpop.xlane.xlu1 %645 }
 0x5f8   :  { %2807 = vrcp.f32 %v654_v0 }
 0x5f9   :  { %v712_v11 = vpack.c.bf16 %v700_v44, %v699_v45 }
 0x5fa   :  { %720 = vmatpush.bf16.xpose.msra.mxu0 %v713_v25 }
 0x5fd   :  { %v2806_v47 = vpop.eup %2805 }
 0x5fe   :  { %v652_v53 = vpop.xlane.xlu0 %651  ;;  %v2808_v41 = vpop.eup %2807  ;;  %v698_v36 = vmul.f32 %v2806_v47, %v3563_v51 }
 0x5ff   :  { %2809 = vrcp.f32 %v652_v53  ;;  %v697_v34 = vmul.f32 %v2808_v41, %v3550_v24  ;;  %v993_v24 = vpack.c.bf16 %v3465_v21, %v3465_v21 }
 0x600   :  { %2811 = vrcp.f32 %v650_v40 }
 0x601   :  { %v711_v49 = vpack.c.bf16 %v698_v36, %v697_v34  ;;  %v1036_v46 = vsel %vm251_vm3, %v993_v24, 0 }
 0x602   :  { %721 = vmatpush.bf16.xpose.msra.mxu0 %v712_v11 }
 0x605   :  { %v2810_v31 = vpop.eup %2809 }
 0x606   :  { %v648_v38 = vpop.xlane.xlu0 %647  ;;  %v2812_v30 = vpop.eup %2811  ;;  %v696_v29 = vmul.f32 %v2810_v31, %v3570_v58  ;;  %v472_v58 = vpack.c.bf16 %v3481_v59, %v3481_v59 }
 0x607   :  { %2813 = vrcp.f32 %v648_v38  ;;  %v695_v57 = vmul.f32 %v2812_v30, %v3558_v48  ;;  %v3601_v48 = vpop.f32.mrf.mxu1 }
 0x608   :  { %2815 = vrcp.f32 %v646_v1  ;;  %4625 = vst [vmem:[#allocation11_spill] sm:$0xff] %v3601_v48 }
 0x609   :  { %v710_v60 = vpack.c.bf16 %v696_v29, %v695_v57 }
 0x60a   :  { %722 = vmatpush.bf16.xpose.msra.mxu0 %v711_v49 }
 0x60d   :  { %v2814_v61 = vpop.eup %2813 }
 0x60e   :  { %v2816_v62 = vpop.eup %2815  ;;  %v694_v51 = vmul.f32 %v2814_v61, %v3573_v37 }
 0x60f   :  { %v693_v39 = vmul.f32 %v2816_v62, %v3565_v32  ;;  %v3603_v3 = vpop.f32.mrf.mxu1 }
 0x610   :  { %4626 = vst [vmem:[#allocation12_spill] sm:$0xff] %v3603_v3 }
 0x611   :  { %v709_v10 = vpack.c.bf16 %v694_v51, %v693_v39 }
 0x612   :  { %723 = vmatpush.bf16.xpose.msra.mxu0 %v710_v60 }
 0x617   :  { %v3605_v63 = vpop.f32.mrf.mxu1 }
 0x618   :  { %4627 = vst [vmem:[#allocation13_spill] sm:$0xff] %v3605_v63 }
 0x61a   :  { %724 = vmatpush.bf16.xpose.msra.mxu0 %v709_v10 }
 0x61f   :  { %v180_v37 = vpop.f32.mrf.mxu1 }
 0x620   :  { %v1254_v4 = vpack.c.bf16 %v180_v37, %v180_v37 }
 0x621   :  { %725 = vmatmul.bf16.vlgmr.msra.gmra.mxu0 %v472_v58 }
 0x622   :  { %1045 = vmatpush.bf16.msrb.mxu0 %v1036_v46  ;;  %v1297_v21 = vsel %vm251_vm3, %v1254_v4, 0 }
 0x623   :  { %1306 = vmatpush.bf16.msrb.mxu3 %v1297_v21 }
 0x627   :  { %v3620_v12 = vpop.f32.mrf.mxu1 }
 0x628   :  { %4628 = vst [vmem:[#allocation14_spill] sm:$0xff] %v3620_v12 }
 0x62f   :  { %v3624_v16 = vpop.f32.mrf.mxu1 }
 0x630   :  { %4629 = vst [vmem:[#allocation15_spill] sm:$0xff] %v3624_v16 }
 0x637   :  { %v3627_v13 = vpop.f32.mrf.mxu1 }
 0x638   :  { %4630 = vst [vmem:[#allocation16_spill] sm:$0xff] %v3627_v13 }
 0x63f   :  { %v3631_v23 = vpop.f32.mrf.mxu1 }
 0x640   :  { %4631 = vst [vmem:[#allocation17_spill] sm:$0xff] %v3631_v23 }
 0x647   :  { %v3635_v0 = vpop.f32.mrf.mxu1 }
 0x648   :  { %4632 = vst [vmem:[#allocation18_spill] sm:$0xff] %v3635_v0 }
 0x64f   :  { %v3639_v25 = vpop.f32.mrf.mxu1 }
 0x650   :  { %4633 = vst [vmem:[#allocation19_spill] sm:$0xff] %v3639_v25 }
 0x657   :  { %v3642_v28 = vpop.f32.mrf.mxu1 }
 0x658   :  { %4634 = vst [vmem:[#allocation20_spill] sm:$0xff] %v3642_v28 }
 0x668   :  { %v1264_v5 = vpop.trf.xlu0 }
 0x669   :  { %v2656_v32 = vpop.trf.xlu1  ;;  %2580 = vmatmul.msk.bf16.vlgmr.msrb.gmra.mxu3 %vm226_vm4, %v1264_v5 }
 0x66a   :  { %2564 = vmatmul.msk.bf16.vlgmr.msrb.gmra.mxu1 %vm226_vm4, %v2656_v32 }
 0x671   :  { %v2657_v6 = vpop.trf.xlu1 }
 0x672   :  { %2572 = vmatmul.msk.bf16.vlgmr.msrb.gmra.mxu0 %vm226_vm4, %v2657_v6 }
 0x678   :  { %v1265_v33 = vpop.trf.xlu0 }
 0x679   :  { %v2658_v59 = vpop.trf.xlu1  ;;  %2581 = vmatmul.msk.bf16.gmra.mxu3 %vm226_vm4, %v1265_v33 }
 0x67a   :  { %2565 = vmatmul.msk.bf16.gmra.mxu1 %vm226_vm4, %v2658_v59 }
 0x681   :  { %v2659_v52 = vpop.trf.xlu1 }
 0x682   :  { %2573 = vmatmul.msk.bf16.gmra.mxu0 %vm226_vm4, %v2659_v52 }
 0x688   :  { %v1266_v17 = vpop.trf.xlu0 }
 0x689   :  { %v2660_v18 = vpop.trf.xlu1  ;;  %2582 = vmatmul.msk.bf16.gmra.mxu3 %vm226_vm4, %v1266_v17 }
 0x68a   :  { %2566 = vmatmul.msk.bf16.gmra.mxu1 %vm226_vm4, %v2660_v18 }
 0x691   :  { %v2661_v19 = vpop.trf.xlu1 }
 0x692   :  { %2574 = vmatmul.msk.bf16.gmra.mxu0 %vm226_vm4, %v2661_v19 }
 0x698   :  { %v1267_v9 = vpop.trf.xlu0 }
 0x699   :  { %v2662_v8 = vpop.trf.xlu1  ;;  %2583 = vmatmul.msk.bf16.gmra.mxu3 %vm226_vm4, %v1267_v9 }
 0x69a   :  { %2567 = vmatmul.msk.bf16.gmra.mxu1 %vm226_vm4, %v2662_v8 }
 0x69e   :  { %v726_v15 = vpop.f32.mrf.mxu0 }
 0x69f   :  { %730 = vst [vmem:[#allocation2 + $0x10] sm:$0xff] %v726_v15 }
 0x6a1   :  { %v2663_v20 = vpop.trf.xlu1 }
 0x6a2   :  { %2575 = vmatmul.msk.bf16.gmra.mxu0 %vm226_vm4, %v2663_v20 }
 0x6a6   :  { %v728_v22 = vpop.f32.mrf.mxu0 }
 0x6a8   :  { %v1268_v55 = vpop.trf.xlu0 }
 0x6a9   :  { %v2664_v50 = vpop.trf.xlu1  ;;  %2584 = vmatmul.msk.bf16.gmra.mxu3 %vm226_vm4, %v1268_v55 }
 0x6aa   :  { %2568 = vmatmul.msk.bf16.gmra.mxu1 %vm226_vm4, %v2664_v50 }
 0x6b1   :  { %v2665_v54 = vpop.trf.xlu1 }
 0x6b2   :  { %2576 = vmatmul.msk.bf16.gmra.mxu0 %vm226_vm4, %v2665_v54 }
 0x6b8   :  { %v1269_v56 = vpop.trf.xlu0 }
 0x6b9   :  { %v2666_v14 = vpop.trf.xlu1  ;;  %2585 = vmatmul.msk.bf16.gmra.mxu3 %vm226_vm4, %v1269_v56 }
 0x6ba   :  { %2569 = vmatmul.msk.bf16.gmra.mxu1 %vm226_vm4, %v2666_v14 }
 0x6c1   :  { %v2667_v7 = vpop.trf.xlu1 }
 0x6c2   :  { %2577 = vmatmul.msk.bf16.gmra.mxu0 %vm226_vm4, %v2667_v7 }
 0x6c8   :  { %v1270_v27 = vpop.trf.xlu0 }
 0x6c9   :  { %v2668_v26 = vpop.trf.xlu1  ;;  %2586 = vmatmul.msk.bf16.gmra.mxu3 %vm226_vm4, %v1270_v27 }
 0x6ca   :  { %2570 = vmatmul.msk.bf16.gmra.mxu1 %vm226_vm4, %v2668_v26 }
 0x6d1   :  { %v2669_v42 = vpop.trf.xlu1 }
 0x6d2   :  { %2578 = vmatmul.msk.bf16.gmra.mxu0 %vm226_vm4, %v2669_v42 }
 0x6d8   :  { %v1271_v44 = vpop.trf.xlu0 }
 0x6d9   :  { %v2670_v43 = vpop.trf.xlu1  ;;  %2587 = vmatmul.msk.bf16.gmra.mxu3 %vm226_vm4, %v1271_v44 }
 0x6da   :  { %2571 = vmatmul.msk.bf16.gmra.mxu1 %vm226_vm4, %v2670_v43 }
 0x6e1   :  { %v2671_v33 = vpop.trf.xlu1 }
 0x6e2   :  { %2579 = vmatmul.msk.bf16.gmra.mxu0 %vm226_vm4, %v2671_v33 }
 0x6e7   :  { %v3645_v53 = vpop.f32.mrf.mxu1 }
 0x6ec   :  { %v3651_v11 = vpop.f32.mrf.mxu3 }
 0x6ef   :  { %v3647_v45 = vpop.f32.mrf.mxu1  ;;  %v3712_v19 = vpop.f32.mrf.mxu0 }
 0x6f4   :  { %v3655_v41 = vpop.f32.mrf.mxu3 }
 0x6f7   :  { %v3649_v40 = vpop.f32.mrf.mxu1  ;;  %v3717_v15 = vpop.f32.mrf.mxu0 }
 0x6f8   :  { %4640 = vst [vmem:[#allocation26_spill] sm:$0xff] %v3717_v15 }
 0x6fc   :  { %v3659_v34 = vpop.f32.mrf.mxu3 }
 0x6fd   :  { %4635 = vst [vmem:[#allocation21_spill] sm:$0xff] %v3659_v34 }
 0x6ff   :  { %v3653_v47 = vpop.f32.mrf.mxu1  ;;  %v3720_v7 = vpop.f32.mrf.mxu0 }
 0x700   :  { %4641 = vst [vmem:[#allocation27_spill] sm:$0xff] %v3720_v7 }
 0x704   :  { %v3665_v31 = vpop.f32.mrf.mxu3 }
 0x705   :  { %4636 = vst [vmem:[#allocation22_spill] sm:$0xff] %v3665_v31 }
 0x707   :  { %v3657_v36 = vpop.f32.mrf.mxu1  ;;  %v3728_v33 = vpop.f32.mrf.mxu0 }
 0x70c   :  { %v3669_v30 = vpop.f32.mrf.mxu3 }
 0x70d   :  { %4637 = vst [vmem:[#allocation23_spill] sm:$0xff] %v3669_v30 }
 0x70f   :  { %v3661_v38 = vpop.f32.mrf.mxu1 }
 0x714   :  { %v3673_v57 = vpop.f32.mrf.mxu3 }
 0x715   :  { %4638 = vst [vmem:[#allocation24_spill] sm:$0xff] %v3673_v57 }
 0x717   :  { %v3663_v49 = vpop.f32.mrf.mxu1 }
 0x71c   :  { %v3677_v61 = vpop.f32.mrf.mxu3 }
 0x71f   :  { %v3667_v1 = vpop.f32.mrf.mxu1 }
 0x724   :  { %v3681_v24 = vpop.f32.mrf.mxu3 }
 0x725   :  { %4639 = vst [vmem:[#allocation25_spill] sm:$0xff] %v3681_v24 }
 0x727   :  { %v3671_v29 = vpop.f32.mrf.mxu1 }
 0x72c   :  { %v3683_v10 = vpop.f32.mrf.mxu3 }
 0x72f   :  { %v3675_v60 = vpop.f32.mrf.mxu1 }
 0x734   :  { %v3685_v58 = vpop.f32.mrf.mxu3 }
 0x737   :  { %v811_v62 = vpop.f32.mrf.mxu1 }
 0x73c   :  { %v3687_v4 = vpop.f32.mrf.mxu3 }
 0x73f   :  { %v3679_v51 = vpop.f32.mrf.mxu1 }
 0x744   :  { %v3691_v32 = vpop.f32.mrf.mxu3 }
 0x747   :  { %v816_v39 = vpop.f32.mrf.mxu1 }
 0x748   :  { %850 = vmax.xlane.f32.xlu2 %v816_v39 }
 0x74c   :  { %v3697_v5 = vpop.f32.mrf.mxu3 }
 0x74f   :  { %v818_v46 = vpop.f32.mrf.mxu1 }
 0x750   :  { %852 = vmax.xlane.f32.xlu2 %v818_v46 }
 0x754   :  { %v3700_v6 = vpop.f32.mrf.mxu3 }
 0x757   :  { %v821_v37 = vpop.f32.mrf.mxu1 }
 0x758   :  { %846 = vmax.xlane.f32.xlu2 %v811_v62  ;;  %854 = vmax.xlane.f32.xlu0 %v821_v37 }
 0x75c   :  { %v3703_v59 = vpop.f32.mrf.mxu3 }
 0x75f   :  { %v823_v21 = vpop.f32.mrf.mxu1 }
 0x760   :  { %848 = vmax.xlane.f32.xlu2 %v3679_v51  ;;  %1368 = vmax.xlane.f32.xlu0 %v3687_v4 }
 0x761   :  { %856 = vmax.xlane.f32.xlu1 %v823_v21 }
 0x768   :  { %842 = vmax.xlane.f32.xlu2 %v3671_v29  ;;  %828 = vmax.xlane.f32.xlu0 %v3647_v45 }
 0x769   :  { %832 = vmax.xlane.f32.xlu1 %v3653_v47 }
 0x770   :  { %844 = vmax.xlane.f32.xlu2 %v3675_v60 }
 0x778   :  { %838 = vmax.xlane.f32.xlu2 %v3663_v49 }
 0x780   :  { %840 = vmax.xlane.f32.xlu2 %v3667_v1 }
 0x788   :  { %1376 = vmax.xlane.f32.xlu2 %v3703_v59 }
 0x790   :  { %834 = vmax.xlane.f32.xlu2 %v3657_v36 }
 0x798   :  { %836 = vmax.xlane.f32.xlu2 %v3661_v38 }
 0x7a0   :  { %1372 = vmax.xlane.f32.xlu2 %v3697_v5 }
 0x7a8   :  { %1374 = vmax.xlane.f32.xlu2 %v3700_v6 }
 0x7b0   :  { %830 = vmax.xlane.f32.xlu2 %v3649_v40 }
 0x7bb   :  { %v851_v52 = vpop.xlane.xlu2 %850 }
 0x7bc   :  { %v870_v18 = vsub.f32 %v816_v39, %v851_v52 }
 0x7be   :  { %v898_v17 = vmul.f32 1.442695, %v870_v18 }
 0x7c0   :  { %2817 = vpow2.f32 %v898_v17 }
 0x7c3   :  { %v853_v8 = vpop.xlane.xlu2 %852 }
 0x7c6   :  { %v3714_v9 = vpop.eup %2817 }
 0x7c7   :  { %930 = vadd.xlane.f32.xlu0 %v3714_v9 }
 0x7cb   :  { %v847_v20 = vpop.xlane.xlu2 %846  ;;  %v855_v22 = vpop.xlane.xlu0 %854 }
 0x7cc   :  { %v868_v50 = vsub.f32 %v811_v62, %v847_v20  ;;  %v872_v55 = vsub.f32 %v821_v37, %v855_v22  ;;  %v871_v62 = vsub.f32 %v818_v46, %v853_v8  ;;  %v3738_v8 = vpop.f32.mrf.mxu0 }
 0x7ce   :  { %v894_v54 = vmul.f32 1.442695, %v868_v50  ;;  %v902_v14 = vmul.f32 1.442695, %v872_v55  ;;  %v900_v37 = vmul.f32 1.442695, %v871_v62 }
 0x7cf   :  { %1366 = vmax.xlane.f32.xlu0 %v3685_v58 }
 0x7d0   :  { %2819 = vpow2.f32 %v894_v54 }
 0x7d1   :  { %2821 = vpow2.f32 %v902_v14 }
 0x7d3   :  { %v849_v56 = vpop.xlane.xlu2 %848 }
 0x7d4   :  { %v857_v26 = vpop.xlane.xlu1 %856 }
 0x7d5   :  { %v873_v27 = vsub.f32 %v823_v21, %v857_v26  ;;  %v869_v21 = vsub.f32 %v3679_v51, %v849_v56 }
 0x7d6   :  { %v3722_v42 = vpop.eup %2819 }
 0x7d7   :  { %v3724_v43 = vpop.eup %2821  ;;  %v904_v44 = vmul.f32 1.442695, %v873_v27  ;;  %926 = vadd.xlane.f32.xlu0 %v3722_v42  ;;  %v896_v20 = vmul.f32 1.442695, %v869_v21 }
 0x7d8   :  { %934 = vadd.xlane.f32.xlu1 %v3724_v43 }
 0x7d9   :  { %2823 = vpow2.f32 %v904_v44 }
 0x7da   :  { %2825 = vpow2.f32 %v900_v37 }
 0x7db   :  { %v843_v39 = vpop.xlane.xlu2 %842 }
 0x7dc   :  { %v866_v55 = vsub.f32 %v3671_v29, %v843_v39  ;;  %v3768_v39 = vpop.f32.mrf.mxu3 }
 0x7de   :  { %v890_v14 = vmul.f32 1.442695, %v866_v55 }
 0x7df   :  { %v3730_v52 = vpop.eup %2823 }
 0x7e0   :  { %1370 = vmax.xlane.f32.xlu1 %v3691_v32  ;;  %936 = vadd.xlane.f32.xlu2 %v3730_v52  ;;  %v3736_v46 = vpop.eup %2825 }
 0x7e3   :  { %v845_v18 = vpop.xlane.xlu2 %844 }
 0x7e4   :  { %v867_v17 = vsub.f32 %v3675_v60, %v845_v18  ;;  %v3749_v60 = vpop.f32.mrf.mxu0 }
 0x7e6   :  { %v892_v22 = vmul.f32 1.442695, %v867_v17 }
 0x7e8   :  { %2827 = vpow2.f32 %v892_v22  ;;  %932 = vadd.xlane.f32.xlu1 %v3736_v46  ;;  %826 = vmax.xlane.f32.xlu2 %v3645_v53 }
 0x7e9   :  { %2829 = vpow2.f32 %v896_v20 }
 0x7ea   :  { %2831 = vpow2.f32 %v890_v14 }
 0x7eb   :  { %v3752_v54 = vpop.xlane.xlu2 %838 }
 0x7ec   :  { %v3757_v56 = vpop.f32.mrf.mxu0  ;;  %v864_v3 = vsub.f32 %v3663_v49, %v3752_v54 }
 0x7ee   :  { %v3742_v50 = vpop.eup %2827 }
 0x7ef   :  { %v3744_v51 = vpop.eup %2829  ;;  %924 = vadd.xlane.f32.xlu0 %v3742_v50 }
 0x7f0   :  { %928 = vadd.xlane.f32.xlu1 %v3744_v51  ;;  %1364 = vmax.xlane.f32.xlu2 %v3683_v10  ;;  %v3760_v27 = vpop.eup %2831 }
 0x7f3   :  { %v841_v26 = vpop.xlane.xlu2 %840 }
 0x7f4   :  { %v865_v44 = vsub.f32 %v3667_v1, %v841_v26  ;;  %v3765_v62 = vpop.f32.mrf.mxu0 }
 0x7f6   :  { %v888_v29 = vmul.f32 1.442695, %v865_v44  ;;  %v3800_v44 = vpop.xlane.xlu0 %1368 }
 0x7f7   :  { %1356 = vmax.xlane.f32.xlu0 %v3669_v30 }
 0x7f8   :  { %1360 = vmax.xlane.f32.xlu1 %v3677_v61  ;;  %1362 = vmax.xlane.f32.xlu2 %v3681_v24  ;;  %2833 = vpow2.f32 %v888_v29  ;;  %v886_v24 = vmul.f32 1.442695, %v864_v3 }
 0x7fb   :  { %v3772_v37 = vpop.xlane.xlu2 %1376 }
 0x7fc   :  { %v3783_v17 = vpop.f32.mrf.mxu0  ;;  %v1394_v49 = vsub.f32 %v3703_v59, %v3772_v37 }
 0x7fe   :  { %v3774_v21 = vpop.eup %2833 }
 0x7ff   :  { %1087 = vmax.xlane.f32.xlu0 %v3712_v19 }
 0x800   :  { %1358 = vmax.xlane.f32.xlu1 %v3673_v57  ;;  %922 = vadd.xlane.f32.xlu2 %v3760_v27 }
 0x803   :  { %v835_v1 = vpop.xlane.xlu2 %834 }
 0x804   :  { %v862_v18 = vsub.f32 %v3657_v36, %v835_v1  ;;  %v3787_v22 = vpop.f32.mrf.mxu0 }
 0x806   :  { %v882_v20 = vmul.f32 1.442695, %v862_v18  ;;  %v3808_v18 = vpop.xlane.xlu0 %828 }
 0x807   :  { %1101 = vmax.xlane.f32.xlu0 %v3765_v62 }
 0x808   :  { %1089 = vmax.xlane.f32.xlu1 %v3717_v15  ;;  %1378 = vmax.xlane.f32.xlu2 %v3768_v39  ;;  %2835 = vpow2.f32 %v882_v20  ;;  %v3810_v20 = vpop.xlane.xlu1 %832 }
 0x80b   :  { %v3793_v14 = vpop.xlane.xlu2 %836 }
 0x80c   :  { %v3795_v36 = vpop.f32.mrf.mxu0  ;;  %v863_v59 = vsub.f32 %v3661_v38, %v3793_v14 }
 0x80e   :  { %v3789_v55 = vpop.eup %2835  ;;  %v884_v37 = vmul.f32 1.442695, %v863_v59 }
 0x80f   :  { %920 = vadd.xlane.f32.xlu0 %v3774_v21 }
 0x810   :  { %1091 = vmax.xlane.f32.xlu1 %v3720_v7  ;;  %1093 = vmax.xlane.f32.xlu2 %v3728_v33 }
 0x813   :  { %v3798_v26 = vpop.xlane.xlu2 %1372 }
 0x814   :  { %v3803_v29 = vpop.f32.mrf.mxu0 }
 0x817   :  { %1352 = vmax.xlane.f32.xlu0 %v3659_v34 }
 0x818   :  { %1095 = vmax.xlane.f32.xlu1 %v3738_v8  ;;  %1097 = vmax.xlane.f32.xlu2 %v3749_v60 }
 0x81b   :  { %v3806_v1 = vpop.xlane.xlu2 %1374 }
 0x81c   :  { %v3812_v28 = vpop.f32.mrf.mxu0 }
 0x820   :  { %1354 = vmax.xlane.f32.xlu1 %v3665_v31  ;;  %1099 = vmax.xlane.f32.xlu2 %v3757_v56 }
 0x823   :  { %v3815_v0 = vpop.xlane.xlu2 %830 }
 0x824   :  { %v3817_v63 = vpop.f32.mrf.mxu0 }
 0x828   :  { %914 = vadd.xlane.f32.xlu1 %v3789_v55  ;;  %1103 = vmax.xlane.f32.xlu2 %v3783_v17 }
 0x82c   :  { %v3824_v12 = vpop.f32.mrf.mxu0 }
 0x830   :  { %1105 = vmax.xlane.f32.xlu2 %v3787_v22 }
 0x834   :  { %v3833_v57 = vpop.f32.mrf.mxu0 }
 0x838   :  { %1107 = vmax.xlane.f32.xlu2 %v3795_v36 }
 0x83a   :  { %v931_v25 = vpop.xlane.xlu0 %930 }
 0x840   :  { %1109 = vmax.xlane.f32.xlu2 %v3803_v29 }
 0x842   :  { %v3822_v2 = vpop.xlane.xlu0 %1366 }
 0x848   :  { %1111 = vmax.xlane.f32.xlu2 %v3812_v28 }
 0x84a   :  { %v927_v7 = vpop.xlane.xlu0 %926 }
 0x84b   :  { %v935_v13 = vpop.xlane.xlu1 %934 }
 0x84c   :  { %2837 = vrcp.f32 %v935_v13 }
 0x850   :  { %1113 = vmax.xlane.f32.xlu2 %v3817_v63 }
 0x852   :  { %v2838_v35 = vpop.eup %2837 }
 0x853   :  { %v3820_v23 = vpop.xlane.xlu1 %1370  ;;  %v937_v16 = vpop.xlane.xlu2 %936  ;;  %v968_v13 = vmul.f32 %v2838_v35, %v3724_v43  ;;  %v1424_v43 = vmul.f32 1.442695, %v1394_v49 }
 0x854   :  { %2839 = vrcp.f32 %v937_v16 }
 0x855   :  { %2841 = vrcp.f32 %v931_v25 }
 0x858   :  { %1115 = vmax.xlane.f32.xlu2 %v3824_v12 }
 0x85a   :  { %v2840_v48 = vpop.eup %2839 }
 0x85b   :  { %v933_v31 = vpop.xlane.xlu1 %932  ;;  %v3829_v30 = vpop.xlane.xlu2 %826  ;;  %v969_v34 = vmul.f32 %v2840_v48, %v3730_v52 }
 0x85c   :  { %2843 = vrcp.f32 %v933_v31  ;;  %v2842_v15 = vpop.eup %2841 }
 0x85d   :  { %v977_v16 = vpack.c.bf16 %v969_v34, %v968_v13  ;;  %2845 = vpow2.f32 %v886_v24  ;;  %v966_v35 = vmul.f32 %v2842_v15, %v3714_v9 }
 0x85e   :  { %2847 = vrcp.f32 %v927_v7 }
 0x85f   :  { %978 = vmatpush.bf16.xpose.msrb.mxu2 %v977_v16 }
 0x860   :  { %1117 = vmax.xlane.f32.xlu2 %v3833_v57 }
 0x862   :  { %v2844_v25 = vpop.eup %2843  ;;  %v925_v16 = vpop.xlane.xlu0 %924 }
 0x863   :  { %v929_v31 = vpop.xlane.xlu1 %928  ;;  %v967_v48 = vmul.f32 %v2844_v25, %v3736_v46  ;;  %v3840_v3 = vpop.xlane.xlu2 %1364 }
 0x864   :  { %2849 = vrcp.f32 %v929_v31  ;;  %v3842_v52 = vpop.eup %2845 }
 0x865   :  { %v976_v34 = vpack.c.bf16 %v967_v48, %v966_v35  ;;  %v2848_v24 = vpop.eup %2847  ;;  %2851 = vpow2.f32 %v1424_v43 }
 0x866   :  { %v964_v9 = vmul.f32 %v2848_v24, %v3722_v42  ;;  %2853 = vpow2.f32 %v884_v37 }
 0x867   :  { %979 = vmatpush.bf16.xpose.msrb.mxu2 %v976_v34  ;;  %2855 = vrcp.f32 %v925_v16 }
 0x868   :  { %918 = vadd.xlane.f32.xlu2 %v3842_v52 }
 0x86a   :  { %v2850_v54 = vpop.eup %2849 }
 0x86b   :  { %v965_v15 = vmul.f32 %v2850_v54, %v3744_v51  ;;  %v3849_v7 = vpop.xlane.xlu2 %1362  ;;  %v3851_v13 = vpop.eup %2851 }
 0x86c   :  { %v3854_v49 = vpop.eup %2853  ;;  %v3875_v16 = vpop.xlane.xlu1 %1360 }
 0x86d   :  { %v975_v46 = vpack.c.bf16 %v965_v15, %v964_v9  ;;  %v2856_v38 = vpop.eup %2855 }
 0x86e   :  { %v963_v31 = vmul.f32 %v2856_v38, %v3742_v50 }
 0x86f   :  { %980 = vmatpush.bf16.xpose.msrb.mxu2 %v975_v46 }
 0x870   :  { %1456 = vadd.xlane.f32.xlu2 %v3851_v13 }
 0x873   :  { %v923_v25 = vpop.xlane.xlu2 %922 }
 0x874   :  { %2857 = vrcp.f32 %v923_v25 }
 0x878   :  { %916 = vadd.xlane.f32.xlu2 %v3854_v49 }
 0x87a   :  { %v2858_v42 = vpop.eup %2857 }
 0x87b   :  { %v1379_v51 = vpop.xlane.xlu2 %1378  ;;  %v962_v14 = vmul.f32 %v2858_v42, %v3760_v27 }
 0x87c   :  { %v1395_v35 = vsub.f32 %v3768_v39, %v1379_v51 }
 0x87d   :  { %v974_v48 = vpack.c.bf16 %v963_v31, %v962_v14  ;;  %v3882_v14 = vpop.xlane.xlu1 %1358 }
 0x87e   :  { %v1426_v34 = vmul.f32 1.442695, %v1395_v35 }
 0x87f   :  { %981 = vmatpush.bf16.xpose.msrb.mxu2 %v974_v48  ;;  %v3887_v48 = vpop.xlane.xlu0 %1356 }
 0x880   :  { %2859 = vpow2.f32 %v1426_v34  ;;  %1348 = vmax.xlane.f32.xlu2 %v3651_v11 }
 0x883   :  { %v3861_v43 = vpop.xlane.xlu2 %1093 }
 0x886   :  { %v3863_v24 = vpop.eup %2859 }
 0x887   :  { %1458 = vadd.xlane.f32.xlu0 %v3863_v24 }
 0x88b   :  { %v3866_v54 = vpop.xlane.xlu2 %1097 }
 0x893   :  { %v3868_v59 = vpop.xlane.xlu2 %1099 }
 0x89b   :  { %v1104_v27 = vpop.xlane.xlu2 %1103 }
 0x89c   :  { %v1127_v50 = vsub.f32 %v3783_v17, %v1104_v27 }
 0x89e   :  { %v1151_v39 = vmul.f32 1.442695, %v1127_v50 }
 0x8a0   :  { %2861 = vpow2.f32 %v1151_v39  ;;  %v1392_v39 = vsub.f32 %v3697_v5, %v3798_v26 }
 0x8a3   :  { %v1106_v9 = vpop.xlane.xlu2 %1105 }
 0x8a4   :  { %v1128_v15 = vsub.f32 %v3787_v22, %v1106_v9  ;;  %v1420_v9 = vmul.f32 1.442695, %v1392_v39 }
 0x8a6   :  { %v3872_v46 = vpop.eup %2861  ;;  %v1153_v37 = vmul.f32 1.442695, %v1128_v15  ;;  %v3897_v15 = vpop.xlane.xlu0 %1087 }
 0x8a7   :  { %1183 = vadd.xlane.f32.xlu0 %v3872_v46 }
 0x8a8   :  { %2863 = vpow2.f32 %v1153_v37 }
 0x8ab   :  { %v1108_v25 = vpop.xlane.xlu2 %1107 }
 0x8ac   :  { %v1129_v38 = vsub.f32 %v3795_v36, %v1108_v25 }
 0x8ae   :  { %v3878_v42 = vpop.eup %2863  ;;  %v1155_v51 = vmul.f32 1.442695, %v1129_v38 }
 0x8af   :  { %1185 = vadd.xlane.f32.xlu1 %v3878_v42 }
 0x8b0   :  { %2865 = vpow2.f32 %v1155_v51  ;;  %v861_v51 = vsub.f32 %v3653_v47, %v3810_v20  ;;  %v1393_v47 = vsub.f32 %v3700_v6, %v3806_v1  ;;  %v1390_v20 = vsub.f32 %v3687_v4, %v3800_v44 }
 0x8b1   :  { %v1125_v4 = vsub.f32 %v3757_v56, %v3868_v59  ;;  %v860_v56 = vsub.f32 %v3649_v40, %v3815_v0  ;;  %v1388_v59 = vsub.f32 %v3683_v10, %v3840_v3 }
 0x8b2   :  { %v880_v26 = vmul.f32 1.442695, %v861_v51 }
 0x8b3   :  { %v1110_v17 = vpop.xlane.xlu2 %1109  ;;  %v1147_v1 = vmul.f32 1.442695, %v1125_v4 }
 0x8b4   :  { %v1130_v22 = vsub.f32 %v3803_v29, %v1110_v17  ;;  %v3894_v29 = vpop.xlane.xlu1 %1089 }
 0x8b6   :  { %v3884_v31 = vpop.eup %2865  ;;  %v1157_v35 = vmul.f32 1.442695, %v1130_v22 }
 0x8b7   :  { %1187 = vadd.xlane.f32.xlu1 %v3884_v31 }
 0x8b8   :  { %2867 = vpow2.f32 %v1157_v35 }
 0x8bb   :  { %v1112_v36 = vpop.xlane.xlu2 %1111 }
 0x8bc   :  { %v1131_v34 = vsub.f32 %v3812_v28, %v1112_v36  ;;  %v3905_v5 = vpop.xlane.xlu1 %1091  ;;  %v3910_v36 = vpop.xlane.xlu0 %1101 }
 0x8be   :  { %v3890_v27 = vpop.eup %2867  ;;  %v1159_v50 = vmul.f32 1.442695, %v1131_v34 }
 0x8bf   :  { %1189 = vadd.xlane.f32.xlu2 %v3890_v27 }
 0x8c0   :  { %2869 = vpow2.f32 %v1159_v50 }
 0x8c1   :  { %2871 = vpow2.f32 %v1420_v9 }
 0x8c3   :  { %v1114_v37 = vpop.xlane.xlu2 %1113 }
 0x8c4   :  { %v1132_v25 = vsub.f32 %v3817_v63, %v1114_v37  ;;  %v1096_v50 = vpop.xlane.xlu1 %1095  ;;  %v921_v6 = vpop.xlane.xlu0 %920 }
 0x8c5   :  { %v1123_v10 = vsub.f32 %v3738_v8, %v1096_v50  ;;  %v1389_v8 = vsub.f32 %v3685_v58, %v3822_v2 }
 0x8c6   :  { %v3900_v38 = vpop.eup %2869  ;;  %v1161_v28 = vmul.f32 1.442695, %v1132_v25  ;;  %v1416_v25 = vmul.f32 1.442695, %v1390_v20 }
 0x8c7   :  { %1191 = vadd.xlane.f32.xlu1 %v3900_v38  ;;  %v3908_v35 = vpop.eup %2871  ;;  %v1414_v2 = vmul.f32 1.442695, %v1389_v8 }
 0x8c8   :  { %2873 = vpow2.f32 %v1161_v28 }
 0x8c9   :  { %2875 = vpow2.f32 %v880_v26 }
 0x8cb   :  { %v1116_v17 = vpop.xlane.xlu2 %1115 }
 0x8cc   :  { %v1133_v22 = vsub.f32 %v3824_v12, %v1116_v17  ;;  %v1422_v12 = vmul.f32 1.442695, %v1393_v47  ;;  %v1353_v58 = vpop.xlane.xlu0 %1352 }
 0x8ce   :  { %v3912_v63 = vpop.eup %2873  ;;  %v1163_v34 = vmul.f32 1.442695, %v1133_v22  ;;  %v3933_v22 = vpop.xlane.xlu1 %1354 }
 0x8cf   :  { %1452 = vadd.xlane.f32.xlu1 %v3908_v35  ;;  %1193 = vadd.xlane.f32.xlu2 %v3912_v63  ;;  %v3921_v37 = vpop.eup %2875 }
 0x8d0   :  { %2877 = vpow2.f32 %v1163_v34 }
 0x8d1   :  { %2879 = vpow2.f32 %v1422_v12  ;;  %v878_v12 = vmul.f32 1.442695, %v860_v56 }
 0x8d3   :  { %v1118_v39 = vpop.xlane.xlu2 %1117 }
 0x8d4   :  { %v1134_v9 = vsub.f32 %v3833_v57, %v1118_v39  ;;  %v859_v57 = vsub.f32 %v3647_v45, %v3808_v18  ;;  %v1391_v18 = vsub.f32 %v3691_v32, %v3820_v23  ;;  %v1126_v32 = vsub.f32 %v3765_v62, %v3910_v36 }
 0x8d6   :  { %v3923_v28 = vpop.eup %2877  ;;  %v1165_v51 = vmul.f32 1.442695, %v1134_v9  ;;  %v876_v17 = vmul.f32 1.442695, %v859_v57  ;;  %v1418_v9 = vmul.f32 1.442695, %v1391_v18  ;;  %v915_v4 = vpop.xlane.xlu1 %914 }
 0x8d7   :  { %1195 = vadd.xlane.f32.xlu2 %v3923_v28  ;;  %912 = vadd.xlane.f32.xlu1 %v3921_v37  ;;  %v3931_v26 = vpop.eup %2879  ;;  %v1149_v3 = vmul.f32 1.442695, %v1126_v32  ;;  %v1143_v57 = vmul.f32 1.442695, %v1123_v10 }
 0x8d8   :  { %2881 = vpow2.f32 %v1165_v51 }
 0x8d9   :  { %2883 = vpow2.f32 %v1416_v25  ;;  %v1412_v25 = vmul.f32 1.442695, %v1388_v59 }
 0x8da   :  { %2885 = vrcp.f32 %v921_v6 }
 0x8db   :  { %v919_v44 = vpop.xlane.xlu2 %918 }
 0x8dc   :  { %2887 = vrcp.f32 %v919_v44 }
 0x8dd   :  { %2889 = vpow2.f32 %v1147_v1  ;;  %v858_v1 = vsub.f32 %v3645_v53, %v3829_v30 }
 0x8de   :  { %v3935_v34 = vpop.eup %2881  ;;  %2891 = vpow2.f32 %v876_v17 }
 0x8df   :  { %v3937_v47 = vpop.eup %2883  ;;  %1454 = vadd.xlane.f32.xlu2 %v3931_v26  ;;  %1197 = vadd.xlane.f32.xlu0 %v3935_v34  ;;  %2893 = vpow2.f32 %v878_v12  ;;  %v874_v56 = vmul.f32 1.442695, %v858_v1 }
 0x8e0   :  { %v2886_v45 = vpop.eup %2885  ;;  %1448 = vadd.xlane.f32.xlu1 %v3937_v47  ;;  %2895 = vpow2.f32 %v1418_v9 }
 0x8e1   :  { %v961_v40 = vmul.f32 %v2886_v45, %v3774_v21  ;;  %2897 = vpow2.f32 %v1412_v25  ;;  %v1122_v21 = vsub.f32 %v3728_v33, %v3861_v43  ;;  %v1119_v43 = vsub.f32 %v3712_v19, %v3897_v15 }
 0x8e2   :  { %v2888_v20 = vpop.eup %2887  ;;  %2899 = vrcp.f32 %v915_v4  ;;  %v1386_v15 = vsub.f32 %v3677_v61, %v3875_v16 }
 0x8e3   :  { %v1457_v39 = vpop.xlane.xlu2 %1456  ;;  %v960_v0 = vmul.f32 %v2888_v20, %v3842_v52  ;;  %v3950_v6 = vpop.eup %2889  ;;  %v1141_v36 = vmul.f32 1.442695, %v1122_v21  ;;  %v1135_v30 = vmul.f32 1.442695, %v1119_v43  ;;  %v4645_v43 = vld [vmem:[#allocation25_spill] sm:$0xff] }
 0x8e4   :  { %v3952_v23 = vpop.eup %2891 }
 0x8e5   :  { %v973_v51 = vpack.c.bf16 %v961_v40, %v960_v0  ;;  %v3962_v62 = vpop.eup %2893  ;;  %v1408_v40 = vmul.f32 1.442695, %v1386_v15 }
 0x8e6   :  { %v3964_v44 = vpop.eup %2895 }
 0x8e7   :  { %1179 = vadd.xlane.f32.xlu2 %v3950_v6  ;;  %1350 = vmax.xlane.f32.xlu0 %v3655_v41  ;;  %v3968_v50 = vpop.eup %2897 }
 0x8e8   :  { %908 = vadd.xlane.f32.xlu1 %v3952_v23  ;;  %982 = vmatpush.bf16.xpose.msrb.mxu2 %v973_v51  ;;  %v2900_v33 = vpop.eup %2899 }
 0x8e9   :  { %v958_v45 = vmul.f32 %v2900_v33, %v3789_v55  ;;  %v1124_v55 = vsub.f32 %v3749_v60, %v3866_v54  ;;  %v4643_v54 = vld [vmem:[#allocation26_spill] sm:$0xff] }
 0x8ea   :  { %v1120_v4 = vsub.f32 %v4643_v54, %v3894_v29 }
 0x8eb   :  { %v917_v52 = vpop.xlane.xlu2 %916  ;;  %v1145_v61 = vmul.f32 1.442695, %v1124_v55  ;;  %v4648_v55 = vld [vmem:[#allocation22_spill] sm:$0xff] }
 0x8ec   :  { %2901 = vrcp.f32 %v917_v52 }
 0x8ed   :  { %2903 = vpow2.f32 %v1149_v3 }
 0x8ee   :  { %2905 = vpow2.f32 %v1143_v57  ;;  %v1137_v57 = vmul.f32 1.442695, %v1120_v4 }
 0x8ef   :  { %910 = vadd.xlane.f32.xlu0 %v3962_v62  ;;  %1450 = vadd.xlane.f32.xlu2 %v3964_v44  ;;  %2907 = vpow2.f32 %v1141_v36 }
 0x8f0   :  { %1444 = vadd.xlane.f32.xlu1 %v3968_v50  ;;  %2909 = vpow2.f32 %v1414_v2 }
 0x8f1   :  { %2911 = vpow2.f32 %v874_v56 }
 0x8f2   :  { %v2902_v17 = vpop.eup %2901  ;;  %2913 = vpow2.f32 %v1135_v30 }
 0x8f3   :  { %v959_v53 = vmul.f32 %v2902_v17, %v3854_v49  ;;  %v3979_v18 = vpop.eup %2903  ;;  %v4642_v49 = vld [vmem:[#allocation24_spill] sm:$0xff]  ;;  %2915 = vrcp.f32 %v1457_v39  ;;  %v1349_v32 = vpop.xlane.xlu2 %1348  ;;  %v1387_v17 = vsub.f32 %v4645_v43, %v3849_v7  ;;  %v4647_v7 = vld [vmem:[#allocation23_spill] sm:$0xff] }
 0x8f4   :  { %v3981_v20 = vpop.eup %2905  ;;  %v1385_v12 = vsub.f32 %v4642_v49, %v3882_v14  ;;  %v4644_v14 = vld [vmem:[#allocation27_spill] sm:$0xff]  ;;  %v1380_v21 = vsub.f32 %v3651_v11, %v1349_v32  ;;  %v4646_v11 = vld [vmem:[#allocation21_spill] sm:$0xff]  ;;  %v1384_v30 = vsub.f32 %v4647_v7, %v3887_v48  ;;  %v1383_v49 = vsub.f32 %v4648_v55, %v3933_v22 }
 0x8f5   :  { %v972_v59 = vpack.c.bf16 %v959_v53, %v958_v45  ;;  %v3983_v19 = vpop.eup %2907  ;;  %v1121_v39 = vsub.f32 %v4644_v14, %v3905_v5  ;;  %v4649_v14 = vld [vmem:[#allocation11_spill] sm:$0xff] }
 0x8f6   :  { %v3994_v9 = vpop.eup %2909  ;;  %v1406_v25 = vmul.f32 1.442695, %v1385_v12  ;;  %v1396_v1 = vmul.f32 1.442695, %v1380_v21  ;;  %v1402_v12 = vmul.f32 1.442695, %v1383_v49 }
 0x8f7   :  { %1181 = vadd.xlane.f32.xlu0 %v3979_v18  ;;  %1175 = vadd.xlane.f32.xlu2 %v3981_v20  ;;  %v3996_v16 = vpop.eup %2911  ;;  %v1139_v29 = vmul.f32 1.442695, %v1121_v39  ;;  %v1514_v39 = vpack.c.bf16 %v4649_v14, %v4649_v14 }
 0x8f8   :  { %1173 = vadd.xlane.f32.xlu1 %v3983_v19  ;;  %983 = vmatpush.bf16.xpose.msrb.mxu2 %v972_v59  ;;  %v3998_v51 = vpop.eup %2913 }
 0x8f9   :  { %v2916_v60 = vpop.eup %2915 }
 0x8fa   :  { %v1459_v0 = vpop.xlane.xlu0 %1458  ;;  %v1490_v3 = vmul.f32 %v2916_v60, %v3851_v13  ;;  %v1382_v13 = vsub.f32 %v4646_v11, %v1353_v58  ;;  %v1404_v58 = vmul.f32 1.442695, %v1384_v30 }
 0x8fb   :  { %2917 = vrcp.f32 %v1459_v0 }
 0x8fc   :  { %2919 = vpow2.f32 %v1408_v40  ;;  %v1400_v2 = vmul.f32 1.442695, %v1382_v13 }
 0x8fd   :  { %2921 = vpow2.f32 %v1145_v61 }
 0x8fe   :  { %2923 = vpow2.f32 %v1406_v25 }
 0x8ff   :  { %906 = vadd.xlane.f32.xlu0 %v3996_v16  ;;  %1446 = vadd.xlane.f32.xlu2 %v3994_v9  ;;  %2925 = vpow2.f32 %v1137_v57 }
 0x900   :  { %1167 = vadd.xlane.f32.xlu1 %v3998_v51  ;;  %2927 = vpow2.f32 %v1139_v29 }
 0x901   :  { %v2918_v10 = vpop.eup %2917  ;;  %2929 = vpow2.f32 %v1396_v1 }
 0x902   :  { %v1491_v52 = vmul.f32 %v2918_v10, %v3863_v24  ;;  %v4010_v8 = vpop.eup %2919  ;;  %v1410_v24 = vmul.f32 1.442695, %v1387_v17  ;;  %v4650_v10 = vld [vmem:[#allocation12_spill] sm:$0xff] }
 0x903   :  { %v4012_v33 = vpop.eup %2921  ;;  %v1775_v21 = vpack.c.bf16 %v4650_v10, %v4650_v10 }
 0x904   :  { %v1499_v36 = vpack.c.bf16 %v1491_v52, %v1490_v3  ;;  %v4014_v5 = vpop.eup %2923  ;;  %2931 = vpow2.f32 %v1410_v24 }
 0x905   :  { %v4022_v56 = vpop.eup %2925  ;;  %2933 = vpow2.f32 %v1400_v2 }
 0x906   :  { %1500 = vmatpush.bf16.xpose.msra.mxu1 %v1499_v36  ;;  %v4024_v45 = vpop.eup %2927  ;;  %2935 = vpow2.f32 %v1404_v58 }
 0x907   :  { %1177 = vadd.xlane.f32.xlu0 %v4012_v33  ;;  %1440 = vadd.xlane.f32.xlu2 %v4010_v8  ;;  %v4026_v53 = vpop.eup %2929  ;;  %2937 = vpow2.f32 %v1402_v12 }
 0x908   :  { %1438 = vadd.xlane.f32.xlu1 %v4014_v5 }
 0x90a   :  { %v4033_v59 = vpop.eup %2931 }
 0x90b   :  { %v4035_v15 = vpop.eup %2933 }
 0x90c   :  { %v4041_v0 = vpop.eup %2935 }
 0x90d   :  { %v4044_v48 = vpop.eup %2937 }
 0x90f   :  { %1171 = vadd.xlane.f32.xlu0 %v4024_v45  ;;  %1169 = vadd.xlane.f32.xlu2 %v4022_v56 }
 0x910   :  { %1428 = vadd.xlane.f32.xlu1 %v4026_v53 }
 0x917   :  { %1442 = vadd.xlane.f32.xlu0 %v4033_v59  ;;  %1432 = vadd.xlane.f32.xlu2 %v4035_v15 }
 0x91a   :  { %v4055_v54 = vpop.xlane.xlu0 %1183 }
 0x91f   :  { %1436 = vadd.xlane.f32.xlu0 %v4041_v0 }
 0x922   :  { %v4047_v40 = vpop.xlane.xlu1 %1185 }
 0x927   :  { %1434 = vadd.xlane.f32.xlu0 %v4044_v48 }
 0x92a   :  { %v4049_v61 = vpop.xlane.xlu1 %1187 }
 0x932   :  { %v4051_v25 = vpop.xlane.xlu2 %1189 }
 0x93a   :  { %v4053_v32 = vpop.xlane.xlu1 %1191 }
 0x942   :  { %v1194_v60 = vpop.xlane.xlu2 %1193  ;;  %v1453_v22 = vpop.xlane.xlu1 %1452 }
 0x943   :  { %2939 = vrcp.f32 %v1453_v22 }
 0x949   :  { %v2940_v29 = vpop.eup %2939 }
 0x94a   :  { %v1196_v4 = vpop.xlane.xlu2 %1195  ;;  %v913_v3 = vpop.xlane.xlu1 %912  ;;  %v1488_v13 = vmul.f32 %v2940_v29, %v3908_v35 }
 0x950   :  { %2672 = vxpose.binary.xlu0.c.b16.start.end [1/2] (short) %v1775_v21, %v1514_v39, 128 }
 0x952   :  { %v1198_v52 = vpop.xlane.xlu0 %1197  ;;  %v1455_v57 = vpop.xlane.xlu2 %1454 }
 0x953   :  { %2941 = vrcp.f32 %v1455_v57  ;;  %v1449_v17 = vpop.xlane.xlu1 %1448 }
 0x959   :  { %v2942_v36 = vpop.eup %2941 }
 0x95a   :  { %v1351_v1 = vpop.xlane.xlu0 %1350  ;;  %v4061_v43 = vpop.xlane.xlu2 %1179  ;;  %v1489_v24 = vmul.f32 %v2942_v36, %v3931_v26 }
 0x95b   :  { %v1381_v11 = vsub.f32 %v3655_v41, %v1351_v1  ;;  %v909_v49 = vpop.xlane.xlu1 %908 }
 0x95c   :  { %v1498_v7 = vpack.c.bf16 %v1489_v24, %v1488_v13 }
 0x95d   :  { %v1398_v2 = vmul.f32 1.442695, %v1381_v11 }
 0x95e   :  { %1501 = vmatpush.bf16.xpose.msra.mxu1 %v1498_v7 }
 0x95f   :  { %2943 = vpow2.f32 %v1398_v2 }
 0x960   :  { %2945 = vrcp.f32 %v913_v3 }
 0x961   :  { %2947 = vrcp.f32 %v1449_v17 }
 0x962   :  { %v911_v30 = vpop.xlane.xlu0 %910  ;;  %v1451_v58 = vpop.xlane.xlu2 %1450 }
 0x963   :  { %2949 = vrcp.f32 %v911_v30  ;;  %v1445_v36 = vpop.xlane.xlu1 %1444 }
 0x964   :  { %2951 = vrcp.f32 %v1451_v58 }
 0x965   :  { %v4066_v55 = vpop.eup %2943  ;;  %2953 = vrcp.f32 %v1196_v4 }
 0x966   :  { %1430 = vadd.xlane.f32.xlu2 %v4066_v55  ;;  %v2946_v41 = vpop.eup %2945  ;;  %2955 = vrcp.f32 %v1198_v52 }
 0x967   :  { %v2948_v12 = vpop.eup %2947  ;;  %v957_v10 = vmul.f32 %v2946_v41, %v3921_v37  ;;  %2957 = vrcp.f32 %v909_v49 }
 0x968   :  { %v1486_v21 = vmul.f32 %v2948_v12, %v3937_v47  ;;  %2959 = vrcp.f32 %v1445_v36 }
 0x969   :  { %v2950_v35 = vpop.eup %2949 }
 0x96a   :  { %v2952_v22 = vpop.eup %2951  ;;  %v4069_v26 = vpop.xlane.xlu0 %1181  ;;  %v956_v39 = vmul.f32 %v2950_v35, %v3962_v62  ;;  %v4651_v35 = vld [vmem:[#allocation9_spill] sm:$0xff] }
 0x96b   :  { %v4071_v14 = vpop.xlane.xlu2 %1175  ;;  %v1487_v3 = vmul.f32 %v2952_v22, %v3964_v44  ;;  %v2954_v62 = vpop.eup %2953 }
 0x96c   :  { %v971_v57 = vpack.c.bf16 %v957_v10, %v956_v39  ;;  %v2956_v11 = vpop.eup %2955  ;;  %v4079_v4 = vpop.xlane.xlu1 %1173  ;;  %v1229_v30 = vmul.f32 %v2954_v62, %v3923_v28 }
 0x96d   :  { %v1497_v29 = vpack.c.bf16 %v1487_v3, %v1486_v21  ;;  %v2958_v37 = vpop.eup %2957  ;;  %v1230_v44 = vmul.f32 %v2956_v11, %v3935_v34 }
 0x96e   :  { %984 = vmatpush.bf16.xpose.msrb.mxu2 %v971_v57  ;;  %v2960_v13 = vpop.eup %2959  ;;  %v955_v7 = vmul.f32 %v2958_v37, %v3952_v23 }
 0x96f   :  { %1502 = vmatpush.bf16.xpose.msra.mxu1 %v1497_v29  ;;  %v1484_v58 = vmul.f32 %v2960_v13, %v3968_v50  ;;  %v1238_v12 = vpack.c.bf16 %v1230_v44, %v1229_v30  ;;  %v733_v50 = vpack.c.bf16 %v4651_v35, %v4651_v35 }
 0x972   :  { %v907_v1 = vpop.xlane.xlu0 %906 }
 0x973   :  { %v1447_v17 = vpop.xlane.xlu2 %1446  ;;  %2961 = vrcp.f32 %v907_v1 }
 0x974   :  { %2963 = vrcp.f32 %v1447_v17  ;;  %v4092_v22 = vpop.xlane.xlu1 %1167 }
 0x975   :  { %2965 = vrcp.f32 %v1194_v60 }
 0x976   :  { %2967 = vrcp.f32 %v4053_v32 }
 0x977   :  { %2969 = vrcp.f32 %v4051_v25 }
 0x978   :  { %2971 = vrcp.f32 %v4049_v61 }
 0x979   :  { %v2962_v47 = vpop.eup %2961  ;;  %2973 = vrcp.f32 %v4047_v40 }
 0x97a   :  { %v2964_v24 = vpop.eup %2963  ;;  %v1178_v52 = vpop.xlane.xlu0 %1177  ;;  %v954_v2 = vmul.f32 %v2962_v47, %v3996_v16 }
 0x97b   :  { %v1485_v49 = vmul.f32 %v2964_v24, %v3994_v9  ;;  %v2966_v34 = vpop.eup %2965  ;;  %v1441_v23 = vpop.xlane.xlu2 %1440 }
 0x97c   :  { %v970_v60 = vpack.c.bf16 %v955_v7, %v954_v2  ;;  %v2968_v32 = vpop.eup %2967  ;;  %v1228_v16 = vmul.f32 %v2966_v34, %v3912_v63  ;;  %2975 = vrcp.f32 %v1441_v23  ;;  %v1439_v29 = vpop.xlane.xlu1 %1438 }
 0x97d   :  { %v1496_v41 = vpack.c.bf16 %v1485_v49, %v1484_v58  ;;  %v1227_v9 = vmul.f32 %v2968_v32, %v3900_v38  ;;  %v2970_v10 = vpop.eup %2969  ;;  %2977 = vrcp.f32 %v4055_v54 }
 0x97e   :  { %985 = vmatpush.bf16.xpose.msrb.mxu2 %v970_v60  ;;  %v2972_v21 = vpop.eup %2971  ;;  %v1226_v63 = vmul.f32 %v2970_v10, %v3890_v27 }
 0x97f   :  { %1503 = vmatpush.bf16.xpose.msra.mxu1 %v1496_v41  ;;  %v1237_v39 = vpack.c.bf16 %v1228_v16, %v1227_v9  ;;  %v1225_v25 = vmul.f32 %v2972_v21, %v3884_v31  ;;  %v2974_v57 = vpop.eup %2973 }
 0x980   :  { %v1224_v40 = vmul.f32 %v2974_v57, %v3878_v42 }
 0x981   :  { %v1236_v38 = vpack.c.bf16 %v1226_v63, %v1225_v25  ;;  %v4655_v25 = vld [vmem:[#allocation17_spill] sm:$0xff] }
 0x982   :  { %v1172_v28 = vpop.xlane.xlu0 %1171  ;;  %v2976_v36 = vpop.eup %2975 }
 0x983   :  { %v1170_v3 = vpop.xlane.xlu2 %1169  ;;  %v2978_v1 = vpop.eup %2977  ;;  %v1482_v54 = vmul.f32 %v2976_v36, %v4010_v8 }
 0x984   :  { %v1223_v62 = vmul.f32 %v2978_v1, %v3872_v46 }
 0x985   :  { %986 = vmatmul.bf16.vlgmr.msrb.gmra.mxu2 %v733_v50 }
 0x986   :  { %1239 = vmatpush.bf16.xpose.msra.mxu2 %v1238_v12  ;;  %v1235_v37 = vpack.c.bf16 %v1224_v40, %v1223_v62 }
 0x98a   :  { %v1443_v61 = vpop.xlane.xlu0 %1442 }
 0x98b   :  { %2979 = vrcp.f32 %v1443_v61  ;;  %v1433_v47 = vpop.xlane.xlu2 %1432 }
 0x98c   :  { %2981 = vrcp.f32 %v4069_v26 }
 0x98d   :  { %2983 = vrcp.f32 %v1439_v29 }
 0x98e   :  { %1240 = vmatpush.bf16.xpose.msra.mxu2 %v1237_v39  ;;  %2985 = vrcp.f32 %v4061_v43  ;;  %v4654_v39 = vld [vmem:[#allocation15_spill] sm:$0xff] }
 0x98f   :  { %v1776_v10 = vpack.c.bf16 %v4654_v39, %v4654_v39 }
 0x991   :  { %v2980_v17 = vpop.eup %2979  ;;  %v1819_v61 = vsel %vm251_vm3, %v1776_v10, 0 }
 0x992   :  { %v1437_v27 = vpop.xlane.xlu0 %1436  ;;  %v1483_v31 = vmul.f32 %v2980_v17, %v4033_v59  ;;  %v2982_v13 = vpop.eup %2981 }
 0x993   :  { %2987 = vrcp.f32 %v1437_v27  ;;  %v2984_v26 = vpop.eup %2983  ;;  %v1222_v43 = vmul.f32 %v2982_v13, %v3979_v18 }
 0x994   :  { %v1495_v11 = vpack.c.bf16 %v1483_v31, %v1482_v54  ;;  %v2986_v44 = vpop.eup %2985  ;;  %2989 = vrcp.f32 %v1178_v52  ;;  %v1481_v46 = vmul.f32 %v2984_v26, %v4014_v5 }
 0x995   :  { %2991 = vrcp.f32 %v1433_v47  ;;  %v1221_v24 = vmul.f32 %v2986_v44, %v3950_v6 }
 0x996   :  { %1241 = vmatpush.bf16.xpose.msra.mxu2 %v1236_v38  ;;  %1504 = vmatpush.bf16.xpose.msra.mxu1 %v1495_v11  ;;  %2993 = vrcp.f32 %v4071_v14 }
 0x997   :  { %v1234_v7 = vpack.c.bf16 %v1222_v43, %v1221_v24 }
 0x999   :  { %v2988_v42 = vpop.eup %2987 }
 0x99a   :  { %v1435_v8 = vpop.xlane.xlu0 %1434  ;;  %v1480_v59 = vmul.f32 %v2988_v42, %v4041_v0  ;;  %v2990_v30 = vpop.eup %2989 }
 0x99b   :  { %2995 = vrcp.f32 %v1435_v8  ;;  %v2992_v58 = vpop.eup %2991  ;;  %v1220_v18 = vmul.f32 %v2990_v30, %v4012_v33 }
 0x99c   :  { %v1494_v2 = vpack.c.bf16 %v1481_v46, %v1480_v59  ;;  %v2994_v52 = vpop.eup %2993  ;;  %2997 = vrcp.f32 %v1172_v28  ;;  %v1478_v0 = vmul.f32 %v2992_v58, %v4035_v15 }
 0x99d   :  { %2999 = vrcp.f32 %v4079_v4  ;;  %v1219_v14 = vmul.f32 %v2994_v52, %v3981_v20  ;;  %v4652_v20 = vld [vmem:[#allocation14_spill] sm:$0xff] }
 0x99e   :  { %1242 = vmatpush.bf16.xpose.msra.mxu2 %v1235_v37  ;;  %1505 = vmatpush.bf16.xpose.msra.mxu1 %v1494_v2  ;;  %3001 = vrcp.f32 %v1170_v3  ;;  %v1515_v16 = vpack.c.bf16 %v4652_v20, %v4652_v20  ;;  %v1255_v3 = vpack.c.bf16 %v4655_v25, %v4655_v25 }
 0x99f   :  { %v1233_v60 = vpack.c.bf16 %v1220_v18, %v1219_v14  ;;  %3003 = vrcp.f32 %v4092_v22 }
 0x9a0   :  { %v1558_v35 = vsel %vm251_vm3, %v1515_v16, 0 }
 0x9a1   :  { %v2996_v49 = vpop.eup %2995 }
 0x9a2   :  { %v1479_v5 = vmul.f32 %v2996_v49, %v4044_v48  ;;  %v2998_v41 = vpop.eup %2997 }
 0x9a3   :  { %v3000_v12 = vpop.eup %2999  ;;  %v1217_v34 = vmul.f32 %v2998_v41, %v4024_v45  ;;  %v4653_v45 = vld [vmem:[#allocation10_spill] sm:$0xff] }
 0x9a4   :  { %v1493_v6 = vpack.c.bf16 %v1479_v5, %v1478_v0  ;;  %v1218_v33 = vmul.f32 %v3000_v12, %v3983_v19  ;;  %v3002_v32 = vpop.eup %3001  ;;  %v994_v50 = vpack.c.bf16 %v4653_v45, %v4653_v45  ;;  %v1429_v19 = vpop.xlane.xlu1 %1428 }
 0x9a5   :  { %v3004_v15 = vpop.eup %3003  ;;  %v1216_v48 = vmul.f32 %v3002_v32, %v4022_v56  ;;  %3005 = vrcp.f32 %v1429_v19 }
 0x9a6   :  { %1243 = vmatpush.bf16.xpose.msra.mxu2 %v1234_v7  ;;  %1506 = vmatpush.bf16.xpose.msra.mxu1 %v1493_v6  ;;  %v1232_v4 = vpack.c.bf16 %v1218_v33, %v1217_v34  ;;  %v1215_v23 = vmul.f32 %v3004_v15, %v3998_v51 }
 0x9a8   :  { %v1231_v28 = vpack.c.bf16 %v1216_v48, %v1215_v23 }
 0x9ab   :  { %v3006_v22 = vpop.eup %3005 }
 0x9ac   :  { %v1476_v51 = vmul.f32 %v3006_v22, %v4026_v53 }
 0x9ae   :  { %1244 = vmatpush.bf16.xpose.msra.mxu2 %v1233_v60 }
 0x9b6   :  { %1245 = vmatpush.bf16.xpose.msra.mxu2 %v1232_v4 }
 0x9be   :  { %1246 = vmatpush.bf16.xpose.msra.mxu2 %v1231_v28 }
 0x9c5   :  { %1247 = vmatmul.bf16.vlgmr.msra.gmra.mxu2 %v994_v50 }
 0x9c6   :  { %1567 = vmatpush.bf16.msrb.mxu2 %v1558_v35 }
 0x9d9   :  { %v1431_v9 = vpop.xlane.xlu2 %1430 }
 0x9da   :  { %3007 = vrcp.f32 %v1431_v9 }
 0x9e0   :  { %v3008_v56 = vpop.eup %3007 }
 0x9e1   :  { %v1477_v21 = vmul.f32 %v3008_v56, %v4066_v55 }
 0x9e3   :  { %v1492_v63 = vpack.c.bf16 %v1477_v21, %v1476_v51 }
 0x9e5   :  { %1507 = vmatpush.bf16.xpose.msra.mxu1 %v1492_v63 }
 0x9ec   :  { %1508 = vmatmul.bf16.vlgmr.msra.gmra.mxu1 %v1255_v3 }
 0x9ed   :  { %1828 = vmatpush.bf16.msrb.mxu1 %v1819_v61 }
 0x9fc   :  { %v2673_v38 = vpop.trf.xlu0 }
 0x9fd   :  { %2588 = vmatmul.msk.bf16.vlgmr.msrb.gmra.mxu2 %vm226_vm4, %v2673_v38 }
 0xa04   :  { %v2674_v57 = vpop.trf.xlu0 }
 0xa05   :  { %2596 = vmatmul.msk.bf16.vlgmr.msrb.gmra.mxu1 %vm226_vm4, %v2674_v57 }
 0xa08   :  { %v987_v29 = vpop.f32.mrf.mxu2 }
 0xa09   :  { %991 = vst [vmem:[#allocation2 + $0x20] sm:$0xff] %v987_v29 }
 0xa0c   :  { %v2675_v53 = vpop.trf.xlu0 }
 0xa0d   :  { %2589 = vmatmul.msk.bf16.gmra.mxu2 %vm226_vm4, %v2675_v53 }
 0xa10   :  { %v989_v55 = vpop.f32.mrf.mxu2 }
 0xa14   :  { %v2676_v36 = vpop.trf.xlu0 }
 0xa15   :  { %2597 = vmatmul.msk.bf16.gmra.mxu1 %vm226_vm4, %v2676_v36 }
 0xa1c   :  { %v2677_v1 = vpop.trf.xlu0 }
 0xa1d   :  { %2590 = vmatmul.msk.bf16.gmra.mxu2 %vm226_vm4, %v2677_v1 }
 0xa24   :  { %v2678_v17 = vpop.trf.xlu0 }
 0xa25   :  { %2598 = vmatmul.msk.bf16.gmra.mxu1 %vm226_vm4, %v2678_v17 }
 0xa2c   :  { %v2679_v40 = vpop.trf.xlu0 }
 0xa2d   :  { %2591 = vmatmul.msk.bf16.gmra.mxu2 %vm226_vm4, %v2679_v40 }
 0xa34   :  { %v2680_v27 = vpop.trf.xlu0 }
 0xa35   :  { %2599 = vmatmul.msk.bf16.gmra.mxu1 %vm226_vm4, %v2680_v27 }
 0xa3c   :  { %v2681_v54 = vpop.trf.xlu0 }
 0xa3d   :  { %2592 = vmatmul.msk.bf16.gmra.mxu2 %vm226_vm4, %v2681_v54 }
 0xa44   :  { %v2682_v62 = vpop.trf.xlu0 }
 0xa45   :  { %2600 = vmatmul.msk.bf16.gmra.mxu1 %vm226_vm4, %v2682_v62 }
 0xa48   :  { %v1248_v31 = vpop.f32.mrf.mxu2 }
 0xa49   :  { %1252 = vst [vmem:[#allocation2 + $0x30] sm:$0xff] %v1248_v31 }
 0xa4c   :  { %v2683_v37 = vpop.trf.xlu0 }
 0xa4d   :  { %2593 = vmatmul.msk.bf16.gmra.mxu2 %vm226_vm4, %v2683_v37 }
 0xa50   :  { %v1250_v11 = vpop.f32.mrf.mxu2 }
 0xa54   :  { %v2684_v13 = vpop.trf.xlu0 }
 0xa55   :  { %2601 = vmatmul.msk.bf16.gmra.mxu1 %vm226_vm4, %v2684_v13 }
 0xa5c   :  { %v2685_v47 = vpop.trf.xlu0 }
 0xa5d   :  { %2594 = vmatmul.msk.bf16.gmra.mxu2 %vm226_vm4, %v2685_v47 }
 0xa64   :  { %v2686_v26 = vpop.trf.xlu0 }
 0xa65   :  { %2602 = vmatmul.msk.bf16.gmra.mxu1 %vm226_vm4, %v2686_v26 }
 0xa69   :  { %v1509_v44 = vpop.f32.mrf.mxu1 }
 0xa6a   :  { %1513 = vst [vmem:[#allocation2 + $0x8] sm:$0xff] %v1509_v44 }
 0xa6c   :  { %v2687_v42 = vpop.trf.xlu0 }
 0xa6d   :  { %2595 = vmatmul.msk.bf16.gmra.mxu2 %vm226_vm4, %v2687_v42 }
 0xa71   :  { %v1511_v43 = vpop.f32.mrf.mxu1 }
 0xa74   :  { %v2688_v8 = vpop.trf.xlu0 }
 0xa75   :  { %2603 = vmatmul.msk.bf16.gmra.mxu1 %vm226_vm4, %v2688_v8 }
 0xa80   :  { %v4186_v12 = vpop.f32.mrf.mxu2 }
 0xa82   :  { %v4147_v59 = vpop.f32.mrf.mxu1 }
 0xa88   :  { %v4189_v34 = vpop.f32.mrf.mxu2 }
 0xa8a   :  { %v4149_v46 = vpop.f32.mrf.mxu1 }
 0xa90   :  { %v4191_v33 = vpop.f32.mrf.mxu2 }
 0xa92   :  { %v4151_v24 = vpop.f32.mrf.mxu1 }
 0xa98   :  { %v4193_v4 = vpop.f32.mrf.mxu2 }
 0xa9a   :  { %v4153_v2 = vpop.f32.mrf.mxu1 }
 0xaa0   :  { %v4195_v32 = vpop.f32.mrf.mxu2 }
 0xaa2   :  { %v4155_v7 = vpop.f32.mrf.mxu1 }
 0xaa8   :  { %v4199_v48 = vpop.f32.mrf.mxu2 }
 0xaaa   :  { %v4157_v30 = vpop.f32.mrf.mxu1 }
 0xab0   :  { %v4205_v23 = vpop.f32.mrf.mxu2 }
 0xab2   :  { %v4159_v58 = vpop.f32.mrf.mxu1 }
 0xab8   :  { %v4209_v35 = vpop.f32.mrf.mxu2 }
 0xaba   :  { %v4161_v52 = vpop.f32.mrf.mxu1 }
 0xac0   :  { %v4213_v22 = vpop.f32.mrf.mxu2 }
 0xac2   :  { %v4163_v49 = vpop.f32.mrf.mxu1 }
 0xac8   :  { %v4215_v21 = vpop.f32.mrf.mxu2 }
 0xaca   :  { %v4165_v18 = vpop.f32.mrf.mxu1 }
 0xad0   :  { %v4218_v61 = vpop.f32.mrf.mxu2 }
 0xad2   :  { %v4167_v0 = vpop.f32.mrf.mxu1 }
 0xad3   :  { %1890 = vmax.xlane.f32.xlu2 %v4167_v0 }
 0xad8   :  { %v4222_v25 = vpop.f32.mrf.mxu2 }
 0xada   :  { %v4170_v5 = vpop.f32.mrf.mxu1 }
 0xadb   :  { %1886 = vmax.xlane.f32.xlu2 %v4163_v49 }
 0xae0   :  { %v4228_v3 = vpop.f32.mrf.mxu2 }
 0xae2   :  { %v4173_v14 = vpop.f32.mrf.mxu1 }
 0xae3   :  { %1882 = vmax.xlane.f32.xlu2 %v4159_v58  ;;  %1894 = vmax.xlane.f32.xlu0 %v4173_v14 }
 0xae8   :  { %v4232_v38 = vpop.f32.mrf.mxu2 }
 0xaea   :  { %v4177_v6 = vpop.f32.mrf.mxu1 }
 0xaeb   :  { %1878 = vmax.xlane.f32.xlu2 %v4155_v7 }
 0xaf0   :  { %v4236_v57 = vpop.f32.mrf.mxu2 }
 0xaf2   :  { %v1865_v60 = vpop.f32.mrf.mxu1 }
 0xaf3   :  { %1874 = vmax.xlane.f32.xlu2 %v4151_v24  ;;  %1898 = vmax.xlane.f32.xlu1 %v1865_v60 }
 0xaf8   :  { %v4240_v53 = vpop.f32.mrf.mxu2 }
 0xafa   :  { %v1867_v41 = vpop.f32.mrf.mxu1 }
 0xafb   :  { %1896 = vmax.xlane.f32.xlu1 %v4177_v6  ;;  %1900 = vmax.xlane.f32.xlu2 %v1867_v41 }
 0xb03   :  { %1892 = vmax.xlane.f32.xlu1 %v4170_v5 }
 0xb0b   :  { %1888 = vmax.xlane.f32.xlu1 %v4165_v18 }
 0xb13   :  { %1884 = vmax.xlane.f32.xlu1 %v4161_v52 }
 0xb1b   :  { %1880 = vmax.xlane.f32.xlu1 %v4157_v30 }
 0xb23   :  { %1876 = vmax.xlane.f32.xlu1 %v4153_v2 }
 0xb46   :  { %v4197_v15 = vpop.xlane.xlu2 %1890 }
 0xb4e   :  { %v4201_v20 = vpop.xlane.xlu2 %1886 }
 0xb56   :  { %v4203_v16 = vpop.xlane.xlu2 %1882  ;;  %v1895_v29 = vpop.xlane.xlu0 %1894 }
 0xb57   :  { %v1914_v55 = vsub.f32 %v4173_v14, %v1895_v29 }
 0xb59   :  { %v1942_v1 = vmul.f32 1.442695, %v1914_v55 }
 0xb5e   :  { %v4207_v28 = vpop.xlane.xlu2 %1878 }
 0xb66   :  { %v4211_v45 = vpop.xlane.xlu2 %1874  ;;  %v1899_v50 = vpop.xlane.xlu1 %1898 }
 0xb67   :  { %v1916_v19 = vsub.f32 %v1865_v60, %v1899_v50 }
 0xb69   :  { %v1946_v9 = vmul.f32 1.442695, %v1916_v19 }
 0xb6b   :  { %3009 = vpow2.f32 %v1946_v9 }
 0xb6e   :  { %v1901_v56 = vpop.xlane.xlu2 %1900  ;;  %v1897_v36 = vpop.xlane.xlu1 %1896 }
 0xb6f   :  { %v1917_v39 = vsub.f32 %v1867_v41, %v1901_v56  ;;  %v1915_v17 = vsub.f32 %v4177_v6, %v1897_v36 }
 0xb71   :  { %v1948_v10 = vmul.f32 1.442695, %v1917_v39  ;;  %v3010_v51 = vpop.eup %3009  ;;  %v1944_v27 = vmul.f32 1.442695, %v1915_v17 }
 0xb72   :  { %1978 = vadd.xlane.f32.xlu2 %v3010_v51 }
 0xb73   :  { %3011 = vpow2.f32 %v1948_v10 }
 0xb74   :  { %3013 = vpow2.f32 %v1942_v1 }
 0xb75   :  { %3015 = vpow2.f32 %v1944_v27 }
 0xb76   :  { %v4248_v40 = vpop.xlane.xlu1 %1892 }
 0xb79   :  { %v3012_v63 = vpop.eup %3011 }
 0xb7a   :  { %1609 = vmax.xlane.f32.xlu2 %v4186_v12  ;;  %1980 = vadd.xlane.f32.xlu1 %v3012_v63  ;;  %v4250_v54 = vpop.eup %3013 }
 0xb7b   :  { %v4256_v62 = vpop.eup %3015 }
 0xb7e   :  { %v4254_v31 = vpop.xlane.xlu1 %1888 }
 0xb82   :  { %1613 = vmax.xlane.f32.xlu2 %v4191_v33  ;;  %1611 = vmax.xlane.f32.xlu1 %v4189_v34 }
 0xb86   :  { %v4259_v11 = vpop.xlane.xlu1 %1884 }
 0xb8a   :  { %1617 = vmax.xlane.f32.xlu2 %v4195_v32  ;;  %1615 = vmax.xlane.f32.xlu1 %v4193_v4 }
 0xb8e   :  { %v4261_v37 = vpop.xlane.xlu1 %1880 }
 0xb92   :  { %1621 = vmax.xlane.f32.xlu2 %v4205_v23  ;;  %1619 = vmax.xlane.f32.xlu1 %v4199_v48 }
 0xb96   :  { %v4263_v13 = vpop.xlane.xlu1 %1876 }
 0xb9a   :  { %1627 = vmax.xlane.f32.xlu2 %v4215_v21  ;;  %1623 = vmax.xlane.f32.xlu1 %v4209_v35 }
 0xba2   :  { %1631 = vmax.xlane.f32.xlu2 %v4222_v25  ;;  %1625 = vmax.xlane.f32.xlu1 %v4213_v22 }
 0xbaa   :  { %1635 = vmax.xlane.f32.xlu2 %v4232_v38  ;;  %1629 = vmax.xlane.f32.xlu1 %v4218_v61 }
 0xbb2   :  { %1639 = vmax.xlane.f32.xlu2 %v4240_v53  ;;  %1633 = vmax.xlane.f32.xlu1 %v4228_v3 }
 0xbba   :  { %1870 = vmax.xlane.f32.xlu2 %v4147_v59  ;;  %1637 = vmax.xlane.f32.xlu1 %v4236_v57 }
 0xbc2   :  { %1974 = vadd.xlane.f32.xlu2 %v4250_v54  ;;  %1872 = vmax.xlane.f32.xlu1 %v4149_v46 }
 0xbca   :  { %1976 = vadd.xlane.f32.xlu1 %v4256_v62 }
 0xbe5   :  { %v1979_v47 = vpop.xlane.xlu2 %1978 }
 0xbe6   :  { %3017 = vrcp.f32 %v1979_v47 }
 0xbec   :  { %v3018_v42 = vpop.eup %3017 }
 0xbed   :  { %v1981_v26 = vpop.xlane.xlu1 %1980  ;;  %v4265_v44 = vpop.xlane.xlu2 %1609  ;;  %v4267_v8 = vmul.f32 %v3018_v42, %v3010_v51 }
 0xbee   :  { %3019 = vrcp.f32 %v1981_v26 }
 0xbf4   :  { %v3020_v43 = vpop.eup %3019 }
 0xbf5   :  { %v4269_v14 = vmul.f32 %v3020_v43, %v3012_v63  ;;  %v4271_v6 = vpop.xlane.xlu1 %1611  ;;  %v4273_v60 = vpop.xlane.xlu2 %1613 }
 0xbf7   :  { %v2021_v41 = vpack.c.bf16 %v4269_v14, %v4267_v8 }
 0xbfd   :  { %v4277_v50 = vpop.xlane.xlu1 %1615  ;;  %v4279_v19 = vpop.xlane.xlu2 %1617 }
 0xc05   :  { %v4281_v9 = vpop.xlane.xlu1 %1619  ;;  %v1622_v56 = vpop.xlane.xlu2 %1621 }
 0xc06   :  { %v1647_v39 = vsub.f32 %v4205_v23, %v1622_v56 }
 0xc08   :  { %v1669_v10 = vmul.f32 1.442695, %v1647_v39 }
 0xc0a   :  { %3021 = vpow2.f32 %v1669_v10 }
 0xc0d   :  { %v1624_v51 = vpop.xlane.xlu1 %1623  ;;  %v1628_v63 = vpop.xlane.xlu2 %1627 }
 0xc0e   :  { %v1648_v29 = vsub.f32 %v4209_v35, %v1624_v51  ;;  %v1650_v1 = vsub.f32 %v4215_v21, %v1628_v63 }
 0xc10   :  { %v1671_v55 = vmul.f32 1.442695, %v1648_v29  ;;  %v4285_v36 = vpop.eup %3021  ;;  %v1675_v17 = vmul.f32 1.442695, %v1650_v1 }
 0xc11   :  { %1701 = vadd.xlane.f32.xlu2 %v4285_v36 }
 0xc12   :  { %3023 = vpow2.f32 %v1671_v55 }
 0xc13   :  { %3025 = vpow2.f32 %v1675_v17 }
 0xc15   :  { %v1626_v27 = vpop.xlane.xlu1 %1625  ;;  %v1632_v47 = vpop.xlane.xlu2 %1631 }
 0xc16   :  { %v1649_v26 = vsub.f32 %v4213_v22, %v1626_v27  ;;  %v1652_v43 = vsub.f32 %v4222_v25, %v1632_v47 }
 0xc18   :  { %v4290_v23 = vpop.eup %3023  ;;  %v1673_v42 = vmul.f32 1.442695, %v1649_v26  ;;  %v1679_v35 = vmul.f32 1.442695, %v1652_v43 }
 0xc19   :  { %1703 = vadd.xlane.f32.xlu1 %v4290_v23  ;;  %v4295_v10 = vpop.eup %3025 }
 0xc1a   :  { %3027 = vpow2.f32 %v1673_v42 }
 0xc1b   :  { %3029 = vpow2.f32 %v1679_v35 }
 0xc1d   :  { %v1630_v56 = vpop.xlane.xlu1 %1629  ;;  %v1636_v21 = vpop.xlane.xlu2 %1635 }
 0xc1e   :  { %v1651_v39 = vsub.f32 %v4218_v61, %v1630_v56  ;;  %v1654_v22 = vsub.f32 %v4232_v38, %v1636_v21  ;;  %v1912_v56 = vsub.f32 %v4167_v0, %v4197_v15  ;;  %v1646_v0 = vsub.f32 %v4199_v48, %v4281_v9 }
 0xc20   :  { %v4297_v51 = vpop.eup %3027  ;;  %v1677_v63 = vmul.f32 1.442695, %v1651_v39  ;;  %v1683_v25 = vmul.f32 1.442695, %v1654_v22  ;;  %v1938_v21 = vmul.f32 1.442695, %v1912_v56  ;;  %v1645_v22 = vsub.f32 %v4195_v32, %v4279_v19 }
 0xc21   :  { %1705 = vadd.xlane.f32.xlu2 %v4297_v51  ;;  %1707 = vadd.xlane.f32.xlu1 %v4295_v10  ;;  %v4303_v17 = vpop.eup %3029  ;;  %v1667_v15 = vmul.f32 1.442695, %v1646_v0  ;;  %v1911_v32 = vsub.f32 %v4165_v18, %v4254_v31 }
 0xc22   :  { %3031 = vpow2.f32 %v1677_v63 }
 0xc23   :  { %3033 = vpow2.f32 %v1683_v25  ;;  %v1936_v48 = vmul.f32 1.442695, %v1911_v32 }
 0xc25   :  { %v1634_v29 = vpop.xlane.xlu1 %1633  ;;  %v1640_v1 = vpop.xlane.xlu2 %1639 }
 0xc26   :  { %v1653_v55 = vsub.f32 %v4228_v3, %v1634_v29  ;;  %v1656_v47 = vsub.f32 %v4240_v53, %v1640_v1  ;;  %v1913_v53 = vsub.f32 %v4170_v5, %v4248_v40  ;;  %v1665_v5 = vmul.f32 1.442695, %v1645_v22 }
 0xc27   :  { %v1910_v29 = vsub.f32 %v4163_v49, %v4201_v20  ;;  %v1643_v1 = vsub.f32 %v4191_v33, %v4273_v60  ;;  %v1644_v49 = vsub.f32 %v4193_v4, %v4277_v50  ;;  %v1909_v33 = vsub.f32 %v4161_v52, %v4259_v11 }
 0xc28   :  { %v4305_v61 = vpop.eup %3031  ;;  %v1681_v27 = vmul.f32 1.442695, %v1653_v55  ;;  %v1687_v38 = vmul.f32 1.442695, %v1656_v47  ;;  %v1940_v39 = vmul.f32 1.442695, %v1913_v53  ;;  %v1908_v47 = vsub.f32 %v4159_v58, %v4203_v16 }
 0xc29   :  { %1709 = vadd.xlane.f32.xlu2 %v4305_v61  ;;  %1711 = vadd.xlane.f32.xlu1 %v4303_v17  ;;  %v4311_v43 = vpop.eup %3033  ;;  %v1934_v19 = vmul.f32 1.442695, %v1910_v29  ;;  %v1661_v18 = vmul.f32 1.442695, %v1643_v1  ;;  %v1663_v20 = vmul.f32 1.442695, %v1644_v49  ;;  %v1642_v58 = vsub.f32 %v4189_v34, %v4271_v6 }
 0xc2a   :  { %3035 = vpow2.f32 %v1681_v27  ;;  %v1930_v60 = vmul.f32 1.442695, %v1908_v47  ;;  %v1932_v4 = vmul.f32 1.442695, %v1909_v33  ;;  %v1904_v53 = vsub.f32 %v4151_v24, %v4211_v45 }
 0xc2b   :  { %3037 = vpow2.f32 %v1687_v38  ;;  %v1659_v16 = vmul.f32 1.442695, %v1642_v58 }
 0xc2d   :  { %v1638_v26 = vpop.xlane.xlu1 %1637 }
 0xc2e   :  { %v1655_v42 = vsub.f32 %v4236_v57, %v1638_v26  ;;  %v1641_v26 = vsub.f32 %v4186_v12, %v4265_v44  ;;  %v1907_v12 = vsub.f32 %v4157_v30, %v4261_v37  ;;  %v1922_v30 = vmul.f32 1.442695, %v1904_v53  ;;  %v1871_v37 = vpop.xlane.xlu2 %1870 }
 0xc2f   :  { %v1902_v0 = vsub.f32 %v4147_v59, %v1871_v37 }
 0xc30   :  { %v4313_v3 = vpop.eup %3035  ;;  %v1685_v35 = vmul.f32 1.442695, %v1655_v42  ;;  %v1657_v52 = vmul.f32 1.442695, %v1641_v26  ;;  %v1928_v34 = vmul.f32 1.442695, %v1907_v12 }
 0xc31   :  { %1713 = vadd.xlane.f32.xlu2 %v4313_v3  ;;  %1715 = vadd.xlane.f32.xlu1 %v4311_v43  ;;  %v4321_v57 = vpop.eup %3037  ;;  %v1918_v45 = vmul.f32 1.442695, %v1902_v0 }
 0xc32   :  { %3039 = vpow2.f32 %v1685_v35  ;;  %v1906_v35 = vsub.f32 %v4155_v7, %v4207_v28  ;;  %v1905_v7 = vsub.f32 %v4153_v2, %v4263_v13 }
 0xc33   :  { %3041 = vpow2.f32 %v1938_v21 }
 0xc34   :  { %3043 = vpow2.f32 %v1940_v39  ;;  %v1926_v44 = vmul.f32 1.442695, %v1906_v35  ;;  %v1924_v28 = vmul.f32 1.442695, %v1905_v7 }
 0xc35   :  { %3045 = vpow2.f32 %v1665_v5  ;;  %v1873_v39 = vpop.xlane.xlu1 %1872 }
 0xc36   :  { %3047 = vpow2.f32 %v1667_v15  ;;  %v1903_v24 = vsub.f32 %v4149_v46, %v1873_v39  ;;  %v4409_v29 = vpop.xlane.xlu2 %1974 }
 0xc37   :  { %3049 = vpow2.f32 %v1934_v19 }
 0xc38   :  { %v4323_v63 = vpop.eup %3039  ;;  %3051 = vpow2.f32 %v1936_v48  ;;  %v1920_v2 = vmul.f32 1.442695, %v1903_v24 }
 0xc39   :  { %1717 = vadd.xlane.f32.xlu2 %v4323_v63  ;;  %1719 = vadd.xlane.f32.xlu1 %v4321_v57  ;;  %v4331_v40 = vpop.eup %3041  ;;  %3053 = vpow2.f32 %v1661_v18 }
 0xc3a   :  { %v4333_v25 = vpop.eup %3043  ;;  %3055 = vpow2.f32 %v1663_v20 }
 0xc3b   :  { %v4341_v9 = vpop.eup %3045  ;;  %3057 = vpow2.f32 %v1930_v60 }
 0xc3c   :  { %v4343_v55 = vpop.eup %3047  ;;  %3059 = vpow2.f32 %v1932_v4 }
 0xc3d   :  { %v4351_v31 = vpop.eup %3049  ;;  %3061 = vpow2.f32 %v1657_v52  ;;  %v4413_v46 = vpop.xlane.xlu1 %1976  ;;  %v4656_v52 = vld [vmem:[#allocation13_spill] sm:$0xff] }
 0xc3e   :  { %v4353_v27 = vpop.eup %3051  ;;  %3063 = vpow2.f32 %v1659_v16  ;;  %v2036_v16 = vpack.c.bf16 %v4656_v52, %v4656_v52 }
 0xc3f   :  { %v4361_v50 = vpop.eup %3053  ;;  %3065 = vpow2.f32 %v1926_v44 }
 0xc40   :  { %v4363_v38 = vpop.eup %3055  ;;  %3067 = vpow2.f32 %v1928_v34 }
 0xc41   :  { %1970 = vadd.xlane.f32.xlu2 %v4331_v40  ;;  %1972 = vadd.xlane.f32.xlu1 %v4333_v25  ;;  %v4371_v11 = vpop.eup %3057  ;;  %3069 = vpow2.f32 %v1922_v30 }
 0xc42   :  { %v4373_v42 = vpop.eup %3059  ;;  %3071 = vpow2.f32 %v1924_v28 }
 0xc43   :  { %v4381_v6 = vpop.eup %3061  ;;  %3073 = vpow2.f32 %v1918_v45 }
 0xc44   :  { %v4383_v56 = vpop.eup %3063  ;;  %3075 = vpow2.f32 %v1920_v2 }
 0xc45   :  { %v4391_v21 = vpop.eup %3065 }
 0xc46   :  { %v4393_v22 = vpop.eup %3067 }
 0xc47   :  { %v4399_v13 = vpop.eup %3069 }
 0xc48   :  { %v4401_v5 = vpop.eup %3071 }
 0xc49   :  { %1697 = vadd.xlane.f32.xlu2 %v4341_v9  ;;  %1699 = vadd.xlane.f32.xlu1 %v4343_v55  ;;  %v4405_v59 = vpop.eup %3073 }
 0xc4a   :  { %v4407_v15 = vpop.eup %3075 }
 0xc51   :  { %1966 = vadd.xlane.f32.xlu2 %v4351_v31  ;;  %1968 = vadd.xlane.f32.xlu1 %v4353_v27 }
 0xc59   :  { %1693 = vadd.xlane.f32.xlu2 %v4361_v50  ;;  %1695 = vadd.xlane.f32.xlu1 %v4363_v38 }
 0xc61   :  { %1962 = vadd.xlane.f32.xlu2 %v4371_v11  ;;  %1964 = vadd.xlane.f32.xlu1 %v4373_v42 }
 0xc69   :  { %1689 = vadd.xlane.f32.xlu2 %v4381_v6  ;;  %1691 = vadd.xlane.f32.xlu1 %v4383_v56 }
 0xc71   :  { %1958 = vadd.xlane.f32.xlu2 %v4391_v21  ;;  %1960 = vadd.xlane.f32.xlu1 %v4393_v22 }
 0xc79   :  { %1954 = vadd.xlane.f32.xlu2 %v4399_v13  ;;  %1956 = vadd.xlane.f32.xlu1 %v4401_v5 }
 0xc81   :  { %1952 = vadd.xlane.f32.xlu1 %v4407_v15  ;;  %1950 = vadd.xlane.f32.xlu2 %v4405_v59 }
 0xc84   :  { %v1702_v32 = vpop.xlane.xlu2 %1701 }
 0xc85   :  { %3077 = vrcp.f32 %v1702_v32 }
 0xc8b   :  { %v3078_v48 = vpop.eup %3077 }
 0xc8c   :  { %v1704_v19 = vpop.xlane.xlu1 %1703  ;;  %v1743_v20 = vmul.f32 %v3078_v48, %v4285_v36 }
 0xc8d   :  { %3079 = vrcp.f32 %v1704_v19 }
 0xc93   :  { %v3080_v1 = vpop.eup %3079 }
 0xc94   :  { %v1708_v49 = vpop.xlane.xlu1 %1707  ;;  %v1706_v18 = vpop.xlane.xlu2 %1705  ;;  %v1744_v47 = vmul.f32 %v3080_v1, %v4290_v23 }
 0xc96   :  { %v1756_v33 = vpack.c.bf16 %v1744_v47, %v1743_v20 }
 0xc9c   :  { %v1712_v60 = vpop.xlane.xlu1 %1711  ;;  %v1710_v4 = vpop.xlane.xlu2 %1709 }
 0xca4   :  { %v1716_v26 = vpop.xlane.xlu1 %1715  ;;  %v1714_v58 = vpop.xlane.xlu2 %1713 }
 0xcaa   :  { %2039 = vxpose.xlu2.c.b16.start.end [1/1] (short) %v2036_v16, 128 }
 0xcac   :  { %v1720_v35 = vpop.xlane.xlu1 %1719  ;;  %v1718_v12 = vpop.xlane.xlu2 %1717 }
 0xcad   :  { %3081 = vrcp.f32 %v1720_v35 }
 0xcae   :  { %3083 = vrcp.f32 %v1718_v12 }
 0xcaf   :  { %3085 = vrcp.f32 %v1716_v26 }
 0xcb0   :  { %3087 = vrcp.f32 %v1714_v58 }
 0xcb1   :  { %3089 = vrcp.f32 %v1712_v60 }
 0xcb2   :  { %3091 = vrcp.f32 %v1710_v4 }
 0xcb3   :  { %v3082_v44 = vpop.eup %3081  ;;  %3093 = vrcp.f32 %v1708_v49 }
 0xcb4   :  { %v3084_v34 = vpop.eup %3083  ;;  %v1752_v36 = vmul.f32 %v3082_v44, %v4321_v57  ;;  %v4420_v23 = vpop.xlane.xlu1 %1972  ;;  %3095 = vrcp.f32 %v1706_v18 }
 0xcb5   :  { %v4422_v53 = vpop.xlane.xlu2 %1970  ;;  %v1751_v7 = vmul.f32 %v3084_v34, %v4323_v63  ;;  %v3086_v30 = vpop.eup %3085 }
 0xcb6   :  { %v3088_v37 = vpop.eup %3087  ;;  %v1750_v0 = vmul.f32 %v3086_v30, %v4311_v43 }
 0xcb7   :  { %v1760_v28 = vpack.c.bf16 %v1752_v36, %v1751_v7  ;;  %v1749_v39 = vmul.f32 %v3088_v37, %v4313_v3  ;;  %v3090_v2 = vpop.eup %3089 }
 0xcb8   :  { %v3092_v32 = vpop.eup %3091  ;;  %v1748_v19 = vmul.f32 %v3090_v2, %v4303_v17 }
 0xcb9   :  { %1761 = vmatpush.bf16.xpose.msra.mxu0 %v1760_v28  ;;  %v1759_v57 = vpack.c.bf16 %v1750_v0, %v1749_v39  ;;  %v1747_v63 = vmul.f32 %v3092_v32, %v4305_v61  ;;  %v3094_v20 = vpop.eup %3093 }
 0xcba   :  { %v3096_v60 = vpop.eup %3095  ;;  %v1746_v3 = vmul.f32 %v3094_v20, %v4295_v10 }
 0xcbb   :  { %v1758_v47 = vpack.c.bf16 %v1748_v19, %v1747_v63  ;;  %v1745_v43 = vmul.f32 %v3096_v60, %v4297_v51 }
 0xcbc   :  { %v1700_v24 = vpop.xlane.xlu1 %1699 }
 0xcbd   :  { %v1698_v45 = vpop.xlane.xlu2 %1697  ;;  %v1757_v58 = vpack.c.bf16 %v1746_v3, %v1745_v43  ;;  %3097 = vrcp.f32 %v1700_v24 }
 0xcbe   :  { %3099 = vrcp.f32 %v1698_v45 }
 0xcc1   :  { %1762 = vmatpush.bf16.xpose.msra.mxu0 %v1759_v57 }
 0xcc3   :  { %v3098_v18 = vpop.eup %3097 }
 0xcc4   :  { %v1969_v48 = vpop.xlane.xlu1 %1968  ;;  %v3100_v17 = vpop.eup %3099  ;;  %v1742_v16 = vmul.f32 %v3098_v18, %v4343_v55 }
 0xcc5   :  { %v1967_v1 = vpop.xlane.xlu2 %1966  ;;  %v1741_v52 = vmul.f32 %v3100_v17, %v4341_v9 }
 0xcc7   :  { %v1755_v12 = vpack.c.bf16 %v1742_v16, %v1741_v52  ;;  %v4659_v16 = vld [vmem:[#allocation19_spill] sm:$0xff] }
 0xcc9   :  { %1763 = vmatpush.bf16.xpose.msra.mxu0 %v1758_v47 }
 0xccc   :  { %v1696_v4 = vpop.xlane.xlu1 %1695 }
 0xccd   :  { %v1694_v26 = vpop.xlane.xlu2 %1693  ;;  %3101 = vrcp.f32 %v1696_v4 }
 0xcce   :  { %3103 = vrcp.f32 %v1694_v26 }
 0xcd1   :  { %1764 = vmatpush.bf16.xpose.msra.mxu0 %v1757_v58 }
 0xcd3   :  { %v3102_v35 = vpop.eup %3101 }
 0xcd4   :  { %v1965_v49 = vpop.xlane.xlu1 %1964  ;;  %v3104_v44 = vpop.eup %3103  ;;  %v1740_v36 = vmul.f32 %v3102_v35, %v4363_v38 }
 0xcd5   :  { %v1963_v61 = vpop.xlane.xlu2 %1962  ;;  %v1739_v34 = vmul.f32 %v3104_v44, %v4361_v50 }
 0xcd7   :  { %v1754_v30 = vpack.c.bf16 %v1740_v36, %v1739_v34 }
 0xcd9   :  { %1765 = vmatpush.bf16.xpose.msra.mxu0 %v1756_v33 }
 0xcdc   :  { %v1692_v51 = vpop.xlane.xlu1 %1691 }
 0xcdd   :  { %v1690_v10 = vpop.xlane.xlu2 %1689  ;;  %3105 = vrcp.f32 %v1692_v51 }
 0xcde   :  { %3107 = vrcp.f32 %v1690_v10 }
 0xcdf   :  { %3109 = vrcp.f32 %v4413_v46  ;;  %v4657_v46 = vld [vmem:[#allocation18_spill] sm:$0xff] }
 0xce0   :  { %3111 = vrcp.f32 %v4409_v29 }
 0xce1   :  { %1766 = vmatpush.bf16.xpose.msra.mxu0 %v1755_v12  ;;  %3113 = vrcp.f32 %v4420_v23 }
 0xce2   :  { %3115 = vrcp.f32 %v4422_v53 }
 0xce3   :  { %v3106_v7 = vpop.eup %3105  ;;  %3117 = vrcp.f32 %v1969_v48 }
 0xce4   :  { %v3108_v33 = vpop.eup %3107  ;;  %v1738_v55 = vmul.f32 %v3106_v7, %v4383_v56  ;;  %3119 = vrcp.f32 %v1967_v1 }
 0xce5   :  { %v1737_v9 = vmul.f32 %v3108_v33, %v4381_v6  ;;  %v3110_v37 = vpop.eup %3109  ;;  %v1516_v6 = vpack.c.bf16 %v4657_v46, %v4657_v46  ;;  %3121 = vrcp.f32 %v1965_v49  ;;  %v1959_v24 = vpop.xlane.xlu2 %1958 }
 0xce6   :  { %v3112_v50 = vpop.eup %3111  ;;  %v2011_v38 = vmul.f32 %v3110_v37, %v4256_v62  ;;  %3123 = vrcp.f32 %v1963_v61  ;;  %v1961_v62 = vpop.xlane.xlu1 %1960  ;;  %v4658_v61 = vld [vmem:[#allocation16_spill] sm:$0xff] }
 0xce7   :  { %v1753_v28 = vpack.c.bf16 %v1738_v55, %v1737_v9  ;;  %v2010_v56 = vmul.f32 %v3112_v50, %v4250_v54  ;;  %v3114_v29 = vpop.eup %3113  ;;  %3125 = vrcp.f32 %v1961_v62  ;;  %v2037_v18 = vpack.c.bf16 %v4658_v61, %v4658_v61 }
 0xce8   :  { %v3116_v0 = vpop.eup %3115  ;;  %v2009_v14 = vmul.f32 %v3114_v29, %v4333_v25  ;;  %3127 = vrcp.f32 %v1959_v24 }
 0xce9   :  { %1767 = vmatpush.bf16.xpose.msra.mxu0 %v1754_v30  ;;  %v2020_v39 = vpack.c.bf16 %v2011_v38, %v2010_v56  ;;  %v2008_v8 = vmul.f32 %v3116_v0, %v4331_v40  ;;  %v2080_v52 = vsel %vm251_vm3, %v2037_v18, 0 }
 0xceb   :  { %v2019_v23 = vpack.c.bf16 %v2009_v14, %v2008_v8 }
 0xced   :  { %v1955_v19 = vpop.xlane.xlu2 %1954 }
 0xcee   :  { %v1957_v63 = vpop.xlane.xlu1 %1956 }
 0xcef   :  { %3129 = vrcp.f32 %v1957_v63 }
 0xcf0   :  { %3131 = vrcp.f32 %v1955_v19 }
 0xcf1   :  { %1768 = vmatpush.bf16.xpose.msra.mxu0 %v1753_v28 }
 0xcf5   :  { %v1951_v43 = vpop.xlane.xlu2 %1950 }
 0xcf6   :  { %v1953_v47 = vpop.xlane.xlu1 %1952 }
 0xcf7   :  { %3133 = vrcp.f32 %v1953_v47 }
 0xcf8   :  { %1769 = vmatmul.bf16.vlgmr.msra.gmra.mxu0 %v1516_v6  ;;  %3135 = vrcp.f32 %v1951_v43 }
 0xcf9   :  { %2022 = vmatpush.bf16.xpose.msrb.mxu0 %v2021_v41  ;;  %v3118_v41 = vpop.eup %3117 }
 0xcfa   :  { %v3120_v53 = vpop.eup %3119  ;;  %v2007_v45 = vmul.f32 %v3118_v41, %v4353_v27 }
 0xcfb   :  { %v2006_v54 = vmul.f32 %v3120_v53, %v4351_v31  ;;  %v3122_v2 = vpop.eup %3121 }
 0xcfc   :  { %v3124_v32 = vpop.eup %3123  ;;  %v2005_v25 = vmul.f32 %v3122_v2, %v4373_v42 }
 0xcfd   :  { %v2018_v57 = vpack.c.bf16 %v2007_v45, %v2006_v54  ;;  %v2004_v40 = vmul.f32 %v3124_v32, %v4371_v11  ;;  %v3126_v48 = vpop.eup %3125 }
 0xcfe   :  { %v3128_v20 = vpop.eup %3127  ;;  %v2003_v27 = vmul.f32 %v3126_v48, %v4393_v22 }
 0xcff   :  { %v2017_v1 = vpack.c.bf16 %v2005_v25, %v2004_v40  ;;  %v2002_v31 = vmul.f32 %v3128_v20, %v4391_v21  ;;  %v3130_v60 = vpop.eup %3129 }
 0xd00   :  { %v3132_v4 = vpop.eup %3131  ;;  %v2001_v42 = vmul.f32 %v3130_v60, %v4401_v5 }
 0xd01   :  { %2023 = vmatpush.bf16.xpose.msrb.mxu0 %v2020_v39  ;;  %v2016_v3 = vpack.c.bf16 %v2003_v27, %v2002_v31  ;;  %v2000_v11 = vmul.f32 %v3132_v4, %v4399_v13  ;;  %v3134_v26 = vpop.eup %3133  ;;  %v1777_v13 = vpack.c.bf16 %v4659_v16, %v4659_v16 }
 0xd02   :  { %v3136_v49 = vpop.eup %3135  ;;  %v1999_v22 = vmul.f32 %v3134_v26, %v4407_v15 }
 0xd03   :  { %v2015_v58 = vpack.c.bf16 %v2001_v42, %v2000_v11  ;;  %v1998_v21 = vmul.f32 %v3136_v49, %v4405_v59 }
 0xd05   :  { %v2014_v17 = vpack.c.bf16 %v1999_v22, %v1998_v21 }
 0xd09   :  { %2024 = vmatpush.bf16.xpose.msrb.mxu0 %v2019_v23 }
 0xd11   :  { %2025 = vmatpush.bf16.xpose.msrb.mxu0 %v2018_v57 }
 0xd19   :  { %2026 = vmatpush.bf16.xpose.msrb.mxu0 %v2017_v1 }
 0xd21   :  { %2027 = vmatpush.bf16.xpose.msrb.mxu0 %v2016_v3 }
 0xd29   :  { %2028 = vmatpush.bf16.xpose.msrb.mxu0 %v2015_v58 }
 0xd31   :  { %2029 = vmatpush.bf16.xpose.msrb.mxu0 %v2014_v17 }
 0xd38   :  { %2030 = vmatmul.bf16.vlgmr.msrb.gmra.mxu0 %v1777_v13 }
 0xd39   :  { %2089 = vmatpush.bf16.msra.mxu0 %v2080_v52 }
 0xd4b   :  { %v2047_v5 = vpop.trf.xlu2 }
 0xd4c   :  { %2604 = vmatmul.msk.bf16.vlgmr.msra.gmra.mxu0 %vm226_vm4, %v2047_v5 }
 0xd5b   :  { %v2048_v51 = vpop.trf.xlu2 }
 0xd5c   :  { %2605 = vmatmul.msk.bf16.gmra.mxu0 %vm226_vm4, %v2048_v51 }
 0xd6b   :  { %v2049_v59 = vpop.trf.xlu2 }
 0xd6c   :  { %2606 = vmatmul.msk.bf16.gmra.mxu0 %vm226_vm4, %v2049_v59 }
 0xd75   :  { %v4468_v15 = vpop.f32.mrf.mxu0 }
 0xd7b   :  { %v2050_v35 = vpop.trf.xlu2 }
 0xd7c   :  { %2607 = vmatmul.msk.bf16.gmra.mxu0 %vm226_vm4, %v2050_v35 }
 0xd7d   :  { %v1772_v10 = vpop.f32.mrf.mxu0 }
 0xd8b   :  { %v2051_v12 = vpop.trf.xlu2 }
 0xd8c   :  { %2608 = vmatmul.msk.bf16.gmra.mxu0 %vm226_vm4, %v2051_v12 }
 0xd9b   :  { %v2052_v44 = vpop.trf.xlu2 }
 0xd9c   :  { %2609 = vmatmul.msk.bf16.gmra.mxu0 %vm226_vm4, %v2052_v44 }
 0xdab   :  { %v2053_v34 = vpop.trf.xlu2 }
 0xdac   :  { %2610 = vmatmul.msk.bf16.gmra.mxu0 %vm226_vm4, %v2053_v34 }
 0xdb5   :  { %v4474_v36 = vpop.f32.mrf.mxu0 }
 0xdbb   :  { %v2054_v30 = vpop.trf.xlu2 }
 0xdbc   :  { %2611 = vmatmul.msk.bf16.gmra.mxu0 %vm226_vm4, %v2054_v30 }
 0xdbd   :  { %v2033_v7 = vpop.f32.mrf.mxu0 }
 0xdc9   :  { %v4477_v33 = vpop.f32.mrf.mxu0 }
 0xdd1   :  { %v4479_v9 = vpop.f32.mrf.mxu0 }
 0xdd9   :  { %v4481_v55 = vpop.f32.mrf.mxu0 }
 0xde1   :  { %v4483_v28 = vpop.f32.mrf.mxu0 }
 0xde9   :  { %v4485_v37 = vpop.f32.mrf.mxu0 }
 0xdf1   :  { %v4487_v50 = vpop.f32.mrf.mxu0 }
 0xdf9   :  { %v4489_v38 = vpop.f32.mrf.mxu0 }
 0xe01   :  { %v4491_v46 = vpop.f32.mrf.mxu0 }
 0xe02   :  { %2145 = vmax.xlane.f32.xlu2 %v4491_v46 }
 0xe09   :  { %v2111_v6 = vpop.f32.mrf.mxu0 }
 0xe11   :  { %v4494_v56 = vpop.f32.mrf.mxu0 }
 0xe19   :  { %v2116_v29 = vpop.f32.mrf.mxu0 }
 0xe21   :  { %v2118_v39 = vpop.f32.mrf.mxu0 }
 0xe29   :  { %v2121_v0 = vpop.f32.mrf.mxu0 }
 0xe2a   :  { %2155 = vmax.xlane.f32.xlu1 %v2121_v0 }
 0xe31   :  { %v2123_v8 = vpop.f32.mrf.mxu0 }
 0xe39   :  { %v2126_v14 = vpop.f32.mrf.mxu0 }
 0xe3a   :  { %2159 = vmax.xlane.f32.xlu1 %v2126_v14 }
 0xe41   :  { %v2128_v41 = vpop.f32.mrf.mxu0 }
 0xe42   :  { %2151 = vmax.xlane.f32.xlu1 %v2116_v29  ;;  %2161 = vmax.xlane.f32.xlu0 %v2128_v41 }
 0xe4a   :  { %2147 = vmax.xlane.f32.xlu1 %v2111_v6  ;;  %2157 = vmax.xlane.f32.xlu0 %v2123_v8 }
 0xe52   :  { %2143 = vmax.xlane.f32.xlu1 %v4489_v38  ;;  %2153 = vmax.xlane.f32.xlu0 %v2118_v39 }
 0xe5a   :  { %2141 = vmax.xlane.f32.xlu1 %v4487_v50  ;;  %2149 = vmax.xlane.f32.xlu0 %v4494_v56 }
 0xe62   :  { %2137 = vmax.xlane.f32.xlu1 %v4483_v28  ;;  %2139 = vmax.xlane.f32.xlu0 %v4485_v37 }
 0xe6a   :  { %2133 = vmax.xlane.f32.xlu1 %v4479_v9  ;;  %2135 = vmax.xlane.f32.xlu0 %v4481_v55 }
 0xe72   :  { %2131 = vmax.xlane.f32.xlu0 %v4477_v33 }
 0xe75   :  { %v2146_v18 = vpop.xlane.xlu2 %2145 }
 0xe76   :  { %v2170_v13 = vsub.f32 %v4491_v46, %v2146_v18 }
 0xe78   :  { %v2193_v59 = vmul.f32 1.442695, %v2170_v13 }
 0xe9d   :  { %v2156_v23 = vpop.xlane.xlu1 %2155 }
 0xe9e   :  { %v2175_v54 = vsub.f32 %v2121_v0, %v2156_v23 }
 0xea0   :  { %v2203_v57 = vmul.f32 1.442695, %v2175_v54 }
 0xead   :  { %v2160_v53 = vpop.xlane.xlu1 %2159 }
 0xeae   :  { %v2177_v62 = vsub.f32 %v2126_v14, %v2160_v53 }
 0xeb0   :  { %v2207_v24 = vmul.f32 1.442695, %v2177_v62 }
 0xeb2   :  { %3137 = vpow2.f32 %v2207_v24 }
 0xeb3   :  { %3139 = vpow2.f32 %v2203_v57 }
 0xeb5   :  { %v2152_v45 = vpop.xlane.xlu1 %2151  ;;  %v2162_v2 = vpop.xlane.xlu0 %2161 }
 0xeb6   :  { %v2178_v32 = vsub.f32 %v2128_v41, %v2162_v2  ;;  %v2173_v63 = vsub.f32 %v2116_v29, %v2152_v45 }
 0xeb8   :  { %v4504_v40 = vpop.eup %3137  ;;  %v2209_v25 = vmul.f32 1.442695, %v2178_v32  ;;  %v2199_v1 = vmul.f32 1.442695, %v2173_v63 }
 0xeb9   :  { %2239 = vadd.xlane.f32.xlu0 %v4504_v40  ;;  %v4507_v31 = vpop.eup %3139 }
 0xeba   :  { %3141 = vpow2.f32 %v2209_v25 }
 0xebb   :  { %3143 = vpow2.f32 %v2199_v1 }
 0xebd   :  { %v2148_v19 = vpop.xlane.xlu1 %2147  ;;  %v2158_v48 = vpop.xlane.xlu0 %2157 }
 0xebe   :  { %v2176_v20 = vsub.f32 %v2123_v8, %v2158_v48  ;;  %v2171_v60 = vsub.f32 %v2111_v6, %v2148_v19 }
 0xec0   :  { %v2205_v27 = vmul.f32 1.442695, %v2176_v20  ;;  %v4509_v47 = vpop.eup %3141  ;;  %v2195_v3 = vmul.f32 1.442695, %v2171_v60 }
 0xec1   :  { %2235 = vadd.xlane.f32.xlu0 %v4507_v31  ;;  %2241 = vadd.xlane.f32.xlu1 %v4509_v47  ;;  %v4513_v42 = vpop.eup %3143 }
 0xec2   :  { %3145 = vpow2.f32 %v2205_v27 }
 0xec3   :  { %3147 = vpow2.f32 %v2195_v3 }
 0xec5   :  { %v2154_v43 = vpop.xlane.xlu0 %2153  ;;  %v2144_v11 = vpop.xlane.xlu1 %2143 }
 0xec6   :  { %v2174_v4 = vsub.f32 %v2118_v39, %v2154_v43  ;;  %v2169_v49 = vsub.f32 %v4489_v38, %v2144_v11  ;;  %v200_v11 = vlaneseq }
 0xec8   :  { %v2201_v26 = vmul.f32 1.442695, %v2174_v4  ;;  %v4515_v58 = vpop.eup %3145  ;;  %v2191_v22 = vmul.f32 1.442695, %v2169_v49  ;;  %vm202_vm5 = vcmp.lt.s32.totalorder %v200_v11, 256 }
 0xec9   :  { %2231 = vadd.xlane.f32.xlu0 %v4513_v42  ;;  %2237 = vadd.xlane.f32.xlu1 %v4515_v58  ;;  %v4521_v17 = vpop.eup %3147 }
 0xeca   :  { %3149 = vpow2.f32 %v2201_v26 }
 0xecb   :  { %3151 = vpow2.f32 %v2191_v22 }
 0xecd   :  { %v2150_v21 = vpop.xlane.xlu0 %2149  ;;  %v2142_v5 = vpop.xlane.xlu1 %2141 }
 0xece   :  { %v2172_v61 = vsub.f32 %v4494_v56, %v2150_v21  ;;  %v2168_v34 = vsub.f32 %v4487_v50, %v2142_v5 }
 0xed0   :  { %v2197_v52 = vmul.f32 1.442695, %v2172_v61  ;;  %v4523_v16 = vpop.eup %3149  ;;  %v2189_v30 = vmul.f32 1.442695, %v2168_v34  ;;  %v3265_v61 = vmov 1.0  }
 0xed1   :  { %2227 = vadd.xlane.f32.xlu0 %v4521_v17  ;;  %2233 = vadd.xlane.f32.xlu1 %v4523_v16  ;;  %v4529_v10 = vpop.eup %3151  ;;  %205 = vst.msk [vmem:[#allocation2 + $0x40] ss:$8 sm:$0x3] %vm202_vm5, %v3265_v61 }
 0xed2   :  { %3153 = vpow2.f32 %v2197_v52 }
 0xed3   :  { %3155 = vpow2.f32 %v2193_v59 }
 0xed5   :  { %v2140_v51 = vpop.xlane.xlu0 %2139  ;;  %v2138_v38 = vpop.xlane.xlu1 %2137 }
 0xed6   :  { %v2167_v35 = vsub.f32 %v4485_v37, %v2140_v51  ;;  %v2166_v50 = vsub.f32 %v4483_v28, %v2138_v38 }
 0xed8   :  { %v2187_v12 = vmul.f32 1.442695, %v2167_v35  ;;  %v4531_v44 = vpop.eup %3153  ;;  %v2185_v0 = vmul.f32 1.442695, %v2166_v50  ;;  %v2310_v38 = vld [vmem:[#allocation2 + $0x48] sm:$0x1] }
 0xed9   :  { %2223 = vadd.xlane.f32.xlu0 %v4529_v10  ;;  %2229 = vadd.xlane.f32.xlu1 %v4531_v44  ;;  %v4537_v6 = vpop.eup %3155  ;;  %v2408_v61 = vld [vmem:[#allocation2 + $0x40] sm:$0x1] }
 0xeda   :  { %3157 = vpow2.f32 %v2187_v12 }
 0xedb   :  { %3159 = vpow2.f32 %v2189_v30 }
 0xedd   :  { %v2136_v7 = vpop.xlane.xlu0 %2135 }
 0xede   :  { %v2165_v46 = vsub.f32 %v4481_v55, %v2136_v7  ;;  %v2134_v55 = vpop.xlane.xlu1 %2133 }
 0xedf   :  { %v2164_v23 = vsub.f32 %v4479_v9, %v2134_v55 }
 0xee0   :  { %v2183_v37 = vmul.f32 1.442695, %v2165_v46  ;;  %v4539_v56 = vpop.eup %3157 }
 0xee1   :  { %2219 = vadd.xlane.f32.xlu0 %v4539_v56  ;;  %2225 = vadd.xlane.f32.xlu1 %v4537_v6  ;;  %v4545_v8 = vpop.eup %3159  ;;  %v2181_v28 = vmul.f32 1.442695, %v2164_v23 }
 0xee2   :  { %3161 = vpow2.f32 %v2183_v37 }
 0xee5   :  { %v2132_v29 = vpop.xlane.xlu0 %2131 }
 0xee6   :  { %v2163_v39 = vsub.f32 %v4477_v33, %v2132_v29 }
 0xee8   :  { %v2179_v14 = vmul.f32 1.442695, %v2163_v39  ;;  %v4547_v41 = vpop.eup %3161 }
 0xee9   :  { %2215 = vadd.xlane.f32.xlu0 %v4547_v41  ;;  %2221 = vadd.xlane.f32.xlu1 %v4545_v8 }
 0xeea   :  { %3163 = vpow2.f32 %v2179_v14 }
 0xeeb   :  { %3165 = vpow2.f32 %v2185_v0 }
 0xeec   :  { %3167 = vpow2.f32 %v2181_v28 }
 0xef0   :  { %v4552_v53 = vpop.eup %3163 }
 0xef1   :  { %v4554_v62 = vpop.eup %3165  ;;  %2211 = vadd.xlane.f32.xlu0 %v4552_v53 }
 0xef2   :  { %2217 = vadd.xlane.f32.xlu1 %v4554_v62  ;;  %v4558_v33 = vpop.eup %3167 }
 0xefa   :  { %2213 = vadd.xlane.f32.xlu1 %v4558_v33 }
 0xf2c   :  { %v2240_v24 = vpop.xlane.xlu0 %2239 }
 0xf2d   :  { %3169 = vrcp.f32 %v2240_v24 }
 0xf33   :  { %v3170_v9 = vpop.eup %3169 }
 0xf34   :  { %v2236_v54 = vpop.xlane.xlu0 %2235  ;;  %v2242_v45 = vpop.xlane.xlu1 %2241  ;;  %v2273_v32 = vmul.f32 %v3170_v9, %v4504_v40 }
 0xf35   :  { %3171 = vrcp.f32 %v2242_v45 }
 0xf36   :  { %3173 = vrcp.f32 %v2236_v54 }
 0xf3b   :  { %v3172_v2 = vpop.eup %3171 }
 0xf3c   :  { %v2232_v57 = vpop.xlane.xlu0 %2231  ;;  %v2274_v25 = vmul.f32 %v3172_v2, %v4509_v47  ;;  %v2238_v63 = vpop.xlane.xlu1 %2237 }
 0xf3d   :  { %3175 = vrcp.f32 %v2238_v63  ;;  %v3174_v48 = vpop.eup %3173  ;;  %v2307_v63 = vld [vmem:[#allocation2 + $0x30] sm:$0xff] }
 0xf3e   :  { %v2282_v19 = vpack.c.bf16 %v2274_v25, %v2273_v32  ;;  %3177 = vrcp.f32 %v2232_v57  ;;  %v2271_v60 = vmul.f32 %v3174_v48, %v4507_v31  ;;  %v2303_v48 = vld [vmem:[#allocation2 + $0x10] sm:$0xff] }
 0xf40   :  { %2283 = vmatpush.bf16.xpose.msra.mxu2 %v2282_v19  ;;  %v2305_v19 = vld [vmem:[#allocation2 + $0x20] sm:$0xff] }
 0xf43   :  { %v3176_v1 = vpop.eup %3175 }
 0xf44   :  { %v2228_v20 = vpop.xlane.xlu0 %2227  ;;  %v2234_v27 = vpop.xlane.xlu1 %2233  ;;  %v2272_v43 = vmul.f32 %v3176_v1, %v4515_v58 }
 0xf45   :  { %3179 = vrcp.f32 %v2234_v27  ;;  %v3178_v4 = vpop.eup %3177 }
 0xf46   :  { %v2281_v3 = vpack.c.bf16 %v2272_v43, %v2271_v60  ;;  %3181 = vrcp.f32 %v2228_v20  ;;  %v2269_v49 = vmul.f32 %v3178_v4, %v4513_v42  ;;  %v2301_v20 = vld [vmem:[#allocation2] sm:$0xff]  ;;  %v2409_v60 = vld [vmem:[#allocation2 + $0x48] sm:$0x1] }
 0xf47   :  { %v2311_v27 = vpack.c.bf16 %v2303_v48, %v2301_v20  ;;  %v2415_v43 = vpack.c.bf16 %v2409_v60, %v2409_v60 }
 0xf48   :  { %2284 = vmatpush.bf16.xpose.msra.mxu2 %v2281_v3 }
 0xf4b   :  { %v3180_v40 = vpop.eup %3179 }
 0xf4c   :  { %v2224_v47 = vpop.xlane.xlu0 %2223  ;;  %v2230_v26 = vpop.xlane.xlu1 %2229  ;;  %v2270_v21 = vmul.f32 %v3180_v40, %v4523_v16 }
 0xf4d   :  { %3183 = vrcp.f32 %v2230_v26  ;;  %v3182_v31 = vpop.eup %3181 }
 0xf4e   :  { %v2280_v22 = vpack.c.bf16 %v2270_v21, %v2269_v49  ;;  %3185 = vrcp.f32 %v2224_v47  ;;  %v2267_v13 = vmul.f32 %v3182_v31, %v4521_v17  ;;  %v2316_v17 = vpack.c.bf16 %v2310_v38, %v2310_v38  ;;  %v2302_v47 = vld [vmem:[#allocation2 + $0x8] sm:$0xff] }
 0xf4f   :  { %v2312_v11 = vpack.c.bf16 %v4468_v15, %v2302_v47  ;;  %v2414_v31 = vpack.c.bf16 %v2408_v61, %v2408_v61 }
 0xf50   :  { %2285 = vmatpush.bf16.xpose.msra.mxu2 %v2280_v22 }
 0xf53   :  { %v3184_v58 = vpop.eup %3183 }
 0xf54   :  { %v2220_v18 = vpop.xlane.xlu0 %2219  ;;  %v2226_v52 = vpop.xlane.xlu1 %2225  ;;  %v2268_v5 = vmul.f32 %v3184_v58, %v4531_v44  ;;  %v3266_v44 = vmov 0  }
 0xf55   :  { %3187 = vrcp.f32 %v2226_v52  ;;  %v3186_v42 = vpop.eup %3185  ;;  %v4572_v37 = vsel %vm112_vm0, 65535, %v3266_v44 }
 0xf56   :  { %v2279_v51 = vpack.c.bf16 %v2268_v5, %v2267_v13  ;;  %3189 = vrcp.f32 %v2220_v18  ;;  %v2265_v35 = vmul.f32 %v3186_v42, %v4529_v10  ;;  %v2436_v3 = vand.u32 %v2415_v43, %v4572_v37  ;;  %v2644_v42 = vld [vmem:[%s4614_s3] sm:$0xff] }
 0xf57   :  { %v2433_v58 = vand.u32 %v2414_v31, %v4572_v37 }
 0xf58   :  { %2286 = vmatpush.bf16.xpose.msra.mxu2 %v2279_v51  ;;  %2462 = vmatpush.bf16.msra.mxu1 %v2436_v3 }
 0xf5b   :  { %v3188_v16 = vpop.eup %3187 }
 0xf5c   :  { %v2222_v59 = vpop.xlane.xlu1 %2221  ;;  %v2266_v12 = vmul.f32 %v3188_v16, %v4537_v6  ;;  %v2216_v34 = vpop.xlane.xlu0 %2215  ;;  %v2340_v6 = vand.u32 %v4572_v37, %v2316_v17 }
 0xf5d   :  { %3191 = vrcp.f32 %v2222_v59  ;;  %v3190_v30 = vpop.eup %3189 }
 0xf5e   :  { %v2278_v7 = vpack.c.bf16 %v2266_v12, %v2265_v35  ;;  %3193 = vrcp.f32 %v2216_v34  ;;  %v2263_v29 = vmul.f32 %v3190_v30, %v4539_v56  ;;  %2366 = vmatpush.bf16.msra.mxu3 %v2340_v6  ;;  %v2309_v56 = vld [vmem:[#allocation2 + $0x40] sm:$0x1]  ;;  %v2645_v35 = vld [vmem:[%s4614_s3 + $0x8] sm:$0xff]  ;;  %s3267_s3 = smov [#allocation6]  }
 0xf5f   :  { %v3202_v6 = vld [vmem:[#allocation3 + $0x10] sm:$0xff]  ;;  %s2497_s13 = sshll.u32 %s3267_s3, 4  ;;  %s2498_s13 = int_to_ptr.vmem [resolvable:$true] %s2497_s13 }
 0xf60   :  { %2287 = vmatpush.bf16.xpose.msra.mxu2 %v2278_v7 }
 0xf63   :  { %v3192_v46 = vpop.eup %3191 }
 0xf64   :  { %v2264_v10 = vmul.f32 %v3192_v46, %v4545_v8  ;;  %v2212_v0 = vpop.xlane.xlu0 %2211  ;;  %v3194_v55 = vpop.eup %3193  ;;  %v2315_v8 = vpack.c.bf16 %v2309_v56, %v2309_v56  ;;  %v3205_v56 = vld [vmem:[#allocation3 + $0x8] sm:$0xff] }
 0xf65   :  { %v2218_v50 = vpop.xlane.xlu1 %2217  ;;  %v2261_v28 = vmul.f32 %v3194_v55, %v4547_v41  ;;  %v2313_v41 = vpack.c.bf16 %v2307_v63, %v2305_v19  ;;  %v3203_v55 = vld [vmem:[#allocation3 + $0x20] sm:$0xff]  ;;  %v3208_v19 = vld [vmem:[#allocation3 + $0x38] sm:$0xff] }
 0xf66   :  { %3195 = vrcp.f32 %v2218_v50  ;;  %v2277_v39 = vpack.c.bf16 %v2264_v10, %v2263_v29  ;;  %v2337_v25 = vand.u32 %v4572_v37, %v2315_v8  ;;  %v3201_v50 = vld [vmem:[#allocation3] sm:$0xff] }
 0xf67   :  { %3197 = vrcp.f32 %v2212_v0 }
 0xf68   :  { %2288 = vmatpush.bf16.xpose.msra.mxu2 %v2277_v39 }
 0xf6c   :  { %v3196_v14 = vpop.eup %3195 }
 0xf6d   :  { %v2214_v23 = vpop.xlane.xlu1 %2213  ;;  %v2262_v24 = vmul.f32 %v3196_v14, %v4554_v62  ;;  %v3198_v45 = vpop.eup %3197  ;;  %v4660_v62 = vld [vmem:[#allocation20_spill] sm:$0xff] }
 0xf6e   :  { %3199 = vrcp.f32 %v2214_v23  ;;  %v2259_v2 = vmul.f32 %v3198_v45, %v4552_v53  ;;  %v2038_v1 = vpack.c.bf16 %v4660_v62, %v4660_v62  ;;  %v2642_v53 = vld [vmem:[%s4613_s2] sm:$0xff] }
 0xf6f   :  { %v2276_v54 = vpack.c.bf16 %v2262_v24, %v2261_v28  ;;  %v3204_v28 = vld [vmem:[#allocation3 + $0x30] sm:$0xff] }
 0xf71   :  { %2289 = vmatpush.bf16.xpose.msra.mxu2 %v2276_v54 }
 0xf74   :  { %v3200_v9 = vpop.eup %3199 }
 0xf75   :  { %v2260_v57 = vmul.f32 %v3200_v9, %v4558_v33  ;;  %v2643_v33 = vld [vmem:[%s4613_s2 + $0x8] sm:$0xff] }
 0xf76   :  { %v3206_v9 = vld [vmem:[#allocation3 + $0x18] sm:$0xff] }
 0xf77   :  { %v2275_v32 = vpack.c.bf16 %v2260_v57, %v2259_v2 }
 0xf79   :  { %2290 = vmatpush.bf16.xpose.msra.mxu2 %v2275_v32  ;;  %v3207_v32 = vld [vmem:[#allocation3 + $0x28] sm:$0xff] }
 0xf80   :  { %2291 = vmatmul.bf16.vlgmr.msra.gmra.mxu2 %v2038_v1 }
 0xf81   :  { %2347 = vmatpush.bf16.msrb.mxu2 %v2337_v25 }
 0xf85   :  { %2348 = vmatpush.bf16.msrb.mxu2 %v2313_v41 }
 0xf89   :  { %2349 = vmatpush.bf16.msrb.mxu2 %v2311_v27 }
 0xf8d   :  { %2443 = vmatpush.bf16.msra.mxu2 %v2433_v58 }
 0xf90   :  { %2620 = vmatmul.msk.bf16.vlgmr.msrb.gmra.mxu2 %vm2327_vm6, %v2642_v53 }
 0xfa0   :  { %2621 = vmatmul.msk.bf16.gmra.mxu2 %vm2327_vm6, %v2643_v33 }
0x1003   :  { %v2292_v4 = vpop.f32.mrf.mxu2 }
0x1004   :  { %v2314_v40 = vpack.c.bf16 %v2292_v4, %v4474_v36 }
0x1006   :  { %2367 = vmatpush.bf16.msra.mxu3 %v2314_v40 }
0x100a   :  { %2368 = vmatpush.bf16.msra.mxu3 %v2312_v11 }
0x100b   :  { %v2294_v26 = vpop.f32.mrf.mxu2 }
0x100d   :  { %2622 = vmatmul.msk.bf16.vlgmr.msra.gmra.mxu3 %vm2327_vm6, %v2642_v53 }
0x1013   :  { %v2351_v49 = vpop.f32.mrf.mxu2 }
0x1014   :  { %v2380_v15 = vmax.f32 %v2351_v49, 0.0 }
0x1016   :  { %2388 = vst [vmem:[#allocation2] sm:$0xff] %v2380_v15 }
0x101b   :  { %v2353_v21 = vpop.f32.mrf.mxu2 }
0x101c   :  { %v2382_v5 = vmax.f32 %v2353_v21, 0.0 }
0x101d   :  { %2623 = vmatmul.msk.bf16.gmra.mxu3 %vm2327_vm6, %v2643_v33 }
0x101e   :  { %v2410_v51 = vpack.c.bf16 %v2382_v5, %v2380_v15  ;;  %2390 = vst [vmem:[#allocation2 + $0x10] sm:$0xff] %v2382_v5 }
0x1023   :  { %v2356_v22 = vpop.f32.mrf.mxu2 }
0x1024   :  { %v2384_v52 = vmax.f32 %v2356_v22, 0.0 }
0x1026   :  { %2392 = vst [vmem:[#allocation2 + $0x20] sm:$0xff] %v2384_v52 }
0x102b   :  { %v2358_v18 = vpop.f32.mrf.mxu2 }
0x102c   :  { %v2386_v36 = vmax.f32 %v2358_v18, 0.0 }
0x102e   :  { %v2412_v13 = vpack.c.bf16 %v2386_v36, %v2384_v52  ;;  %2394 = vst [vmem:[#allocation2 + $0x30] sm:$0xff] %v2386_v36 }
0x1030   :  { %2444 = vmatpush.bf16.msra.mxu2 %v2412_v13 }
0x1034   :  { %2445 = vmatpush.bf16.msra.mxu2 %v2410_v51 }
0x1037   :  { %2632 = vmatmul.msk.bf16.vlgmr.msra.gmra.mxu2 %vm2327_vm6, %v2644_v42 }
0x1047   :  { %2633 = vmatmul.msk.bf16.gmra.mxu2 %vm2327_vm6, %v2645_v35 }
0x1090   :  { %v2370_v16 = vpop.f32.mrf.mxu3 }
0x1091   :  { %v2381_v59 = vmax.f32 %v2370_v16, 0.0 }
0x1093   :  { %2389 = vst [vmem:[#allocation2 + $0x8] sm:$0xff] %v2381_v59 }
0x1098   :  { %v2372_v12 = vpop.f32.mrf.mxu3 }
0x1099   :  { %v2383_v34 = vmax.f32 %v2372_v12, 0.0 }
0x109b   :  { %v2411_v44 = vpack.c.bf16 %v2383_v34, %v2381_v59 }
0x10a0   :  { %v2375_v7 = vpop.f32.mrf.mxu3 }
0x10a1   :  { %v2385_v30 = vmax.f32 %v2375_v7, 0.0 }
0x10a8   :  { %v2377_v38 = vpop.f32.mrf.mxu3 }
0x10a9   :  { %v2387_v17 = vmax.f32 %v2377_v38, 0.0 }
0x10ab   :  { %v2413_v46 = vpack.c.bf16 %v2387_v17, %v2385_v30 }
0x10ad   :  { %2463 = vmatpush.bf16.msra.mxu1 %v2413_v46 }
0x10b1   :  { %2464 = vmatpush.bf16.msra.mxu1 %v2411_v44 }
0x10b4   :  { %2634 = vmatmul.msk.bf16.vlgmr.msra.gmra.mxu1 %vm2327_vm6, %v2644_v42 }
0x10ba   :  { %v2447_v37 = vpop.f32.mrf.mxu2 }
0x10bb   :  { %v2476_v29 = vadd.f32 %v3201_v50, %v2447_v37 }
0x10bd   :  { %2480 = vst [vmem:[#allocation6] sm:$0xff] %v2476_v29 }
0x10c2   :  { %v2449_v10 = vpop.f32.mrf.mxu2 }
0x10c3   :  { %v2477_v39 = vadd.f32 %v3202_v6, %v2449_v10 }
0x10c4   :  { %2635 = vmatmul.msk.bf16.gmra.mxu1 %vm2327_vm6, %v2645_v35 }
0x10c5   :  { %2481 = vst [vmem:[#allocation6 + $0x8] sm:$0xff] %v2477_v39 }
0x10ca   :  { %v2452_v0 = vpop.f32.mrf.mxu2 }
0x10cb   :  { %v2478_v14 = vadd.f32 %v3203_v55, %v2452_v0 }
0x10cd   :  { %2482 = vst [vmem:[#allocation6 + $0x10] sm:$0xff] %v2478_v14 }
0x10d2   :  { %v2454_v23 = vpop.f32.mrf.mxu2 }
0x10d3   :  { %v2479_v24 = vadd.f32 %v3204_v28, %v2454_v23 }
0x10d5   :  { %2483 = vst [vmem:[#allocation6 + $0x18] sm:$0xff] %v2479_v24 }
0x1131   :  { %v2466_v54 = vpop.f32.mrf.mxu1 }
0x1132   :  { %v2484_v45 = vadd.f32 %v3205_v56, %v2466_v54 }
0x1134   :  { %2489 = vst [vmem:[#allocation6 + $0x20] sm:$0xff] %v2484_v45 }
0x1139   :  { %v2468_v8 = vpop.f32.mrf.mxu1 }
0x113a   :  { %v2485_v2 = vadd.f32 %v3206_v9, %v2468_v8 }
0x113c   :  { %2490 = vst [vmem:[#allocation6 + $0x28] sm:$0xff] %v2485_v2 }
0x1141   :  { %v2471_v57 = vpop.f32.mrf.mxu1 }
0x1142   :  { %v2486_v25 = vadd.f32 %v3207_v32, %v2471_v57 }
0x1144   :  { %2491 = vst [vmem:[#allocation6 + $0x30] sm:$0xff] %v2486_v25 }
0x1149   :  { %v2473_v63 = vpop.f32.mrf.mxu1 }
0x114a   :  { %v2487_v41 = vadd.f32 %v3208_v19, %v2473_v63 }
0x114c   :  { %2492 = vst [vmem:[#allocation6 + $0x38] sm:$0xff] %v2487_v41 }
0x114d   :  { %2505 = dma.vmem_to_hbm [thread:$0]  %s2498_s13, 1024, %s2500_s16, [#allocation5], %s3268_s17, %s3268_s17, %s3269_s18  }
0x114e   :  { %3259 = dma.done.wait [#allocation5], 1024  }
0x114f   :  { %3260 = vsyncadd [#allocation5], 4294966272 }
0x1150   :  { %2510 = vsyncpa [#allocation4], 1 }
0x1151   :  { %2511 = vsyncpa [#allocation5], 1 }

</bundles_post_ra>
